<compile_context>
chip_gen: v6e
topology: v6e:2x2x1
jax: 0.10.0
libtpu: 0.0.40
codegen_flags: <defaults>
</compile_context>

<pallas_src>
import jax
import jax.numpy as jnp
from jax import lax
from jax.experimental import pallas as pl
from jax.experimental.pallas import tpu as pltpu

MATMUL_DTYPE = jnp.bfloat16   # MXU operand dtype (accumulation is always f32)
ACT_DTYPE = jnp.bfloat16      # intermediate activation storage dtype
CPAD = 128                    # conv out-channels padded to one full lane width
FPAD = 128                    # fc out-features padded to one full lane width
MAX_TM = 512                  # max rows per grid step (~3 MB VMEM/step, /16 ok)


def _round_up(x, m):
    return ((x + m - 1) // m) * m


def _row_tiling(m):
    tm = min(m, MAX_TM)
    return tm, _round_up(m, tm)


# ---------------------------------------------------------------------------
# Kernels
# ---------------------------------------------------------------------------

def _conv_relu_pool_kernel(p00_ref, p01_ref, p10_ref, p11_ref, w_ref, b_ref,
                           o_ref):
    """4x (TM, CKK)@(CKK, 128) conv matmuls (one per 2x2-pool offset) sharing
    one weight tile, bias + ReLU, then a 4-way max = fused maxpool."""
    w = w_ref[...]                       # (CKK, 128) bf16
    b = b_ref[...]                       # (1, 128)   f32

    def branch(p_ref):
        acc = jnp.dot(p_ref[...].astype(MATMUL_DTYPE), w,
                      preferred_element_type=jnp.float32)
        return jnp.maximum(acc + b, 0.0)

    pooled = jnp.maximum(jnp.maximum(branch(p00_ref), branch(p01_ref)),
                         jnp.maximum(branch(p10_ref), branch(p11_ref)))
    o_ref[...] = pooled.astype(o_ref.dtype)


def _fc3_kernel(x_ref, w1_ref, b1_ref, w2_ref, b2_ref, w3_ref, b3_ref, o_ref):
    """fc1 -> ReLU -> fc2 -> ReLU -> fc3 fused (all layers lane-padded to 128,
    so every dot and every store is a full, unmasked 128-lane tile)."""
    h = x_ref[...].astype(MATMUL_DTYPE)
    h = jnp.dot(h, w1_ref[...], preferred_element_type=jnp.float32) + b1_ref[...]
    h = jnp.maximum(h, 0.0).astype(MATMUL_DTYPE)
    h = jnp.dot(h, w2_ref[...], preferred_element_type=jnp.float32) + b2_ref[...]
    h = jnp.maximum(h, 0.0).astype(MATMUL_DTYPE)
    y = jnp.dot(h, w3_ref[...], preferred_element_type=jnp.float32) + b3_ref[...]
    o_ref[...] = y.astype(o_ref.dtype)


# ---------------------------------------------------------------------------
# Wrappers
# ---------------------------------------------------------------------------

def conv_relu_pool(patches, w, b):
    """patches: 4 x (Mp, CKK) bf16 quadrant im2col matrices; w: (CKK, 128)
    bf16; b: (1, 128) f32.  Returns the pooled activation as (Mp, 128) bf16."""
    mp, ckk = patches[0].shape
    tm, mpad = _row_tiling(mp)
    if mpad != mp:
        patches = [jnp.pad(p, ((0, mpad - mp), (0, 0))) for p in patches]
    p_spec = pl.BlockSpec((tm, ckk), lambda i: (i, 0))
    out = pl.pallas_call(
        _conv_relu_pool_kernel,
        out_shape=jax.ShapeDtypeStruct((mpad, CPAD), ACT_DTYPE),
        grid=(mpad // tm,),
        in_specs=[p_spec, p_spec, p_spec, p_spec,
                  pl.BlockSpec((ckk, CPAD), lambda i: (0, 0)),
                  pl.BlockSpec((1, CPAD), lambda i: (0, 0))],
        out_specs=pl.BlockSpec((tm, CPAD), lambda i: (i, 0)),
        compiler_params=pltpu.CompilerParams(
            dimension_semantics=("parallel",)),
    )(*patches, w, b)
    return out[:mp] if mpad != mp else out


def fc_stack(x, w1, b1, w2, b2, w3, b3, n_out):
    nb = x.shape[0]
    tb, npad = _row_tiling(nb)
    if npad != nb:
        x = jnp.pad(x, ((0, npad - nb), (0, 0)))

    def full(a):
        return pl.BlockSpec(a.shape, lambda i: (0,) * a.ndim)

    out = pl.pallas_call(
        _fc3_kernel,
        out_shape=jax.ShapeDtypeStruct((npad, FPAD), jnp.float32),
        grid=(npad // tb,),
        in_specs=[pl.BlockSpec((tb, x.shape[1]), lambda i: (i, 0)),
                  full(w1), full(b1), full(w2), full(b2), full(w3), full(b3)],
        out_specs=pl.BlockSpec((tb, FPAD), lambda i: (i, 0)),
        compiler_params=pltpu.CompilerParams(
            dimension_semantics=("parallel",)),
    )(x, w1, b1, w2, b2, w3, b3)
    return out[:nb, :n_out]


def quadrant_patches(x_nhwc, k):
    """im2col for each of the four 2x2-pool offsets (stride-2 windows).

    Quadrant (a, b)'s row (n, hp, wp) is the flattened receptive field of conv
    output pixel (2*hp + a, 2*wp + b).  Feature order from
    lax.conv_general_dilated_patches is (cin, kh, kw), matching PyTorch's
    (Cout, Cin, KH, KW).reshape(Cout, -1) weight flattening.
    """
    # TODO(synk): patch extraction stays as XLA glue (one fused XLA op per
    # quadrant); doing the 25 shifted dots fully in-kernel needs relayouts of
    # non-(8,128)-aligned 4-D tiles that Mosaic does not lower robustly.
    n, h, w, c = x_nhwc.shape
    ho, wo = h - k + 1, w - k + 1
    assert ho % 2 == 0 and wo % 2 == 0, "2x2/2 maxpool needs even conv output"
    hp, wp = ho // 2, wo // 2
    out = []
    for a in (0, 1):
        for b in (0, 1):
            p = lax.conv_general_dilated_patches(
                x_nhwc[:, a:, b:, :], filter_shape=(k, k),
                window_strides=(2, 2), padding="VALID",
                dimension_numbers=("NHWC", "HWIO", "NHWC"))
            assert p.shape == (n, hp, wp, c * k * k)
            out.append(p.reshape(n * hp * wp, c * k * k))
    return out, (n, hp, wp)


def prepare_params(p):
    """One-time conversion of PyTorch-layout params into kernel-ready form:
    conv weights -> (Cin*K*K, 128) lane-padded bf16 matmul matrices; fc weights
    transposed to (in, out) bf16 and zero-padded to 128 output lanes (fc2/fc3
    input rows also padded so the zero lanes pass through harmlessly); fc1's
    columns are permuted from the (c, h, w) PyTorch flatten order to the NHWC
    (h, w, c) flatten order; biases stay f32 row vectors padded to 128."""
    def conv(w, b):
        cout = w.shape[0]
        wm = w.reshape(cout, -1).T.astype(MATMUL_DTYPE)       # (Cin*K*K, Cout)
        wm = jnp.pad(wm, ((0, 0), (0, CPAD - cout)))
        bm = jnp.pad(b.astype(jnp.float32), (0, CPAD - cout)).reshape(1, CPAD)
        return wm, bm

    c1w, c1b = conv(p["conv1_w"], p["conv1_b"])
    c2w, c2b = conv(p["conv2_w"], p["conv2_b"])

    f1w = (p["fc1_w"].reshape(120, 16, 5, 5).transpose(0, 2, 3, 1)
           .reshape(120, 400).T.astype(MATMUL_DTYPE))         # (400, 120)
    f1w = jnp.pad(f1w, ((0, 0), (0, FPAD - 120)))             # (400, 128)
    f1b = jnp.pad(p["fc1_b"].astype(jnp.float32),
                  (0, FPAD - 120)).reshape(1, FPAD)

    f2w = p["fc2_w"].T.astype(MATMUL_DTYPE)                   # (120, 84)
    f2w = jnp.pad(f2w, ((0, FPAD - 120), (0, FPAD - 84)))     # (128, 128)
    f2b = jnp.pad(p["fc2_b"].astype(jnp.float32),
                  (0, FPAD - 84)).reshape(1, FPAD)

    f3w = p["fc3_w"].T.astype(MATMUL_DTYPE)                   # (84, 10)
    f3w = jnp.pad(f3w, ((0, FPAD - 84), (0, FPAD - 10)))      # (128, 128)
    f3b = jnp.pad(p["fc3_b"].astype(jnp.float32),
                  (0, FPAD - 10)).reshape(1, FPAD)

    return {
        "conv1_w": c1w, "conv1_b": c1b,
        "conv2_w": c2w, "conv2_b": c2b,
        "fc1_w": f1w, "fc1_b": f1b,
        "fc2_w": f2w, "fc2_b": f2b,
        "fc3_w": f3w, "fc3_b": f3b,
    }


def net_forward(x_nchw, kp):
    """Forward pass.  kp: kernel-ready params from prepare_params()."""
    n = x_nchw.shape[0]
    # NCHW -> NHWC; cast to bf16 once (it would be rounded to bf16 for the MXU
    # anyway, so this only halves the patch DMA bytes).
    x = jnp.transpose(x_nchw, (0, 2, 3, 1)).astype(ACT_DTYPE)

    # stage 1: conv1(3->6, 5x5) + ReLU + 2x2 maxpool, fused
    p4, (_, hp, wp) = quadrant_patches(x, 5)                  # 4 x (N*14*14, 75)
    h1 = conv_relu_pool(p4, kp["conv1_w"], kp["conv1_b"])     # (N*14*14, 128) bf16
    x = h1[:, :6].reshape(n, hp, wp, 6)                       # (N, 14, 14, 6)

    # stage 2: conv2(6->16, 5x5) + ReLU + 2x2 maxpool, fused
    p4, (_, hp, wp) = quadrant_patches(x, 5)                  # 4 x (N*5*5, 150)
    h2 = conv_relu_pool(p4, kp["conv2_w"], kp["conv2_b"])     # (N*5*5, 128) bf16

    # flatten in (h, w, c) order; fc1's columns were pre-permuted to match, so
    # no NHWC->NCHW transpose of the activation is needed on the hot path.
    feat = h2[:, :16].reshape(n, hp * wp * 16)                # (N, 400)

    # fc1 -> ReLU -> fc2 -> ReLU -> fc3, fused in one kernel (f32 logits)
    return fc_stack(feat, kp["fc1_w"], kp["fc1_b"],
                    kp["fc2_w"], kp["fc2_b"],
                    kp["fc3_w"], kp["fc3_b"], n_out=10)       # (N, 10)


def init_params(key):
    # Deterministic init mimicking PyTorch's default U(-1/sqrt(fan_in), +...).
    def uniform(k, shape, fan_in):
        bound = 1.0 / float(fan_in) ** 0.5
        return jax.random.uniform(k, shape, jnp.float32, -bound, bound)

    ks = jax.random.split(key, 10)
    return {
        "conv1_w": uniform(ks[0], (6, 3, 5, 5), 3 * 5 * 5),
        "conv1_b": uniform(ks[1], (6,), 3 * 5 * 5),
        "conv2_w": uniform(ks[2], (16, 6, 5, 5), 6 * 5 * 5),
        "conv2_b": uniform(ks[3], (16,), 6 * 5 * 5),
        "fc1_w": uniform(ks[4], (120, 400), 400),
        "fc1_b": uniform(ks[5], (120,), 400),
        "fc2_w": uniform(ks[6], (84, 120), 120),
        "fc2_b": uniform(ks[7], (84,), 120),
        "fc3_w": uniform(ks[8], (10, 84), 84),
        "fc3_b": uniform(ks[9], (10,), 84),
    }


if __name__ == "__main__":
    key = jax.random.PRNGKey(0)
    pkey, xkey = jax.random.split(key)
    params = init_params(pkey)
    kparams = prepare_params(params)   # one-time weight prep (outside forward)
    # CIFAR-like NCHW input; 32x32 is required by the module (two valid 5x5
    # convs + two 2x2 pools must yield 16*5*5 features for fc1).
    x = jax.random.normal(xkey, (2, 3, 32, 32), jnp.float32)
    out = jax.jit(net_forward)(x, kparams)
    out = jax.block_until_ready(out)
    assert out.shape == (2, 10) and out.dtype == jnp.float32
    print("KERNEL_OK")
</pallas_src>

<mosaic_0001>
module attributes {stable_mosaic.version = 11 : i64} {
  func.func @_conv_relu_pool_kernel(%arg0: i32, %arg1: memref<392x75xbf16, #tpu.memory_space<vmem>>, %arg2: memref<392x75xbf16, #tpu.memory_space<vmem>>, %arg3: memref<392x75xbf16, #tpu.memory_space<vmem>>, %arg4: memref<392x75xbf16, #tpu.memory_space<vmem>>, %arg5: memref<75x128xbf16, #tpu.memory_space<vmem>>, %arg6: memref<1x128xf32, #tpu.memory_space<vmem>>, %arg7: memref<392x128xbf16, #tpu.memory_space<vmem>>) attributes {dimension_semantics = [#tpu.dimension_semantics<parallel>], iteration_bounds = array<i64: 1>, scalar_prefetch = 0 : i64, scratch_operands = 0 : i64, tpu.core_type = #tpu.core_type<tc>, window_params = [{transform_indices = @transform_0, window_bounds = array<i64: 392, 75>}, {transform_indices = @transform_1, window_bounds = array<i64: 392, 75>}, {transform_indices = @transform_2, window_bounds = array<i64: 392, 75>}, {transform_indices = @transform_3, window_bounds = array<i64: 392, 75>}, {pipeline_mode = #tpu.pipeline_mode<synchronous>, transform_indices = @transform_4, window_bounds = array<i64: 75, 128>}, {pipeline_mode = #tpu.pipeline_mode<synchronous>, transform_indices = @transform_5, window_bounds = array<i64: 1, 128>}, {transform_indices = @transform_6, window_bounds = array<i64: 392, 128>}]} {
    %c0 = arith.constant 0 : index
    %c0_0 = arith.constant 0 : index
    %0 = vector.load %arg5[%c0, %c0_0] : memref<75x128xbf16, #tpu.memory_space<vmem>>, vector<75x128xbf16>
    %c0_1 = arith.constant 0 : index
    %c0_2 = arith.constant 0 : index
    %1 = vector.load %arg6[%c0_1, %c0_2] : memref<1x128xf32, #tpu.memory_space<vmem>>, vector<1x128xf32>
    %c0_3 = arith.constant 0 : index
    %c0_4 = arith.constant 0 : index
    %2 = vector.load %arg1[%c0_3, %c0_4] : memref<392x75xbf16, #tpu.memory_space<vmem>>, vector<392x75xbf16>
    %cst = arith.constant dense<0.000000e+00> : vector<392x128xf32>
    %3 = tpu.matmul %2, %0, %cst {dimension_numbers = #tpu.dot_dimension_numbers<[1], [0], [0], [1], [0, 0, 1, 1], [], []>} : vector<392x75xbf16>, vector<75x128xbf16>, vector<392x128xf32> -> vector<392x128xf32>
    %4 = vector.broadcast %1 : vector<1x128xf32> to vector<392x128xf32>
    %5 = arith.addf %3, %4 : vector<392x128xf32>
    %cst_5 = arith.constant 0.000000e+00 : f32
    %6 = vector.broadcast %cst_5 : f32 to vector<392x128xf32>
    %7 = arith.maximumf %5, %6 : vector<392x128xf32>
    %c0_6 = arith.constant 0 : index
    %c0_7 = arith.constant 0 : index
    %8 = vector.load %arg2[%c0_6, %c0_7] : memref<392x75xbf16, #tpu.memory_space<vmem>>, vector<392x75xbf16>
    %cst_8 = arith.constant dense<0.000000e+00> : vector<392x128xf32>
    %9 = tpu.matmul %8, %0, %cst_8 {dimension_numbers = #tpu.dot_dimension_numbers<[1], [0], [0], [1], [0, 0, 1, 1], [], []>} : vector<392x75xbf16>, vector<75x128xbf16>, vector<392x128xf32> -> vector<392x128xf32>
    %10 = vector.broadcast %1 : vector<1x128xf32> to vector<392x128xf32>
    %11 = arith.addf %9, %10 : vector<392x128xf32>
    %cst_9 = arith.constant 0.000000e+00 : f32
    %12 = vector.broadcast %cst_9 : f32 to vector<392x128xf32>
    %13 = arith.maximumf %11, %12 : vector<392x128xf32>
    %14 = arith.maximumf %7, %13 : vector<392x128xf32>
    %c0_10 = arith.constant 0 : index
    %c0_11 = arith.constant 0 : index
    %15 = vector.load %arg3[%c0_10, %c0_11] : memref<392x75xbf16, #tpu.memory_space<vmem>>, vector<392x75xbf16>
    %cst_12 = arith.constant dense<0.000000e+00> : vector<392x128xf32>
    %16 = tpu.matmul %15, %0, %cst_12 {dimension_numbers = #tpu.dot_dimension_numbers<[1], [0], [0], [1], [0, 0, 1, 1], [], []>} : vector<392x75xbf16>, vector<75x128xbf16>, vector<392x128xf32> -> vector<392x128xf32>
    %17 = vector.broadcast %1 : vector<1x128xf32> to vector<392x128xf32>
    %18 = arith.addf %16, %17 : vector<392x128xf32>
    %cst_13 = arith.constant 0.000000e+00 : f32
    %19 = vector.broadcast %cst_13 : f32 to vector<392x128xf32>
    %20 = arith.maximumf %18, %19 : vector<392x128xf32>
    %c0_14 = arith.constant 0 : index
    %c0_15 = arith.constant 0 : index
    %21 = vector.load %arg4[%c0_14, %c0_15] : memref<392x75xbf16, #tpu.memory_space<vmem>>, vector<392x75xbf16>
    %cst_16 = arith.constant dense<0.000000e+00> : vector<392x128xf32>
    %22 = tpu.matmul %21, %0, %cst_16 {dimension_numbers = #tpu.dot_dimension_numbers<[1], [0], [0], [1], [0, 0, 1, 1], [], []>} : vector<392x75xbf16>, vector<75x128xbf16>, vector<392x128xf32> -> vector<392x128xf32>
    %23 = vector.broadcast %1 : vector<1x128xf32> to vector<392x128xf32>
    %24 = arith.addf %22, %23 : vector<392x128xf32>
    %cst_17 = arith.constant 0.000000e+00 : f32
    %25 = vector.broadcast %cst_17 : f32 to vector<392x128xf32>
    %26 = arith.maximumf %24, %25 : vector<392x128xf32>
    %27 = arith.maximumf %20, %26 : vector<392x128xf32>
    %28 = arith.maximumf %14, %27 : vector<392x128xf32>
    %29 = arith.truncf %28 : vector<392x128xf32> to vector<392x128xbf16>
    %c0_18 = arith.constant 0 : index
    %c0_19 = arith.constant 0 : index
    %30 = vector.load %arg7[%c0_18, %c0_19] : memref<392x128xbf16, #tpu.memory_space<vmem>>, vector<392x128xbf16>
    tpu.vector_store %arg7[%c0_18, %c0_19], %29 {strides = array<i32>} : memref<392x128xbf16, #tpu.memory_space<vmem>>, vector<392x128xbf16>,
    return
  }
  func.func @transform_0(%arg0: i32) -> (i32, i32) {
    %c0_i32 = arith.constant 0 : i32
    %c0_i32_0 = arith.constant 0 : i32
    return %arg0, %c0_i32 : i32, i32
  }
  func.func @transform_1(%arg0: i32) -> (i32, i32) {
    %c0_i32 = arith.constant 0 : i32
    %c0_i32_0 = arith.constant 0 : i32
    return %arg0, %c0_i32 : i32, i32
  }
  func.func @transform_2(%arg0: i32) -> (i32, i32) {
    %c0_i32 = arith.constant 0 : i32
    %c0_i32_0 = arith.constant 0 : i32
    return %arg0, %c0_i32 : i32, i32
  }
  func.func @transform_3(%arg0: i32) -> (i32, i32) {
    %c0_i32 = arith.constant 0 : i32
    %c0_i32_0 = arith.constant 0 : i32
    return %arg0, %c0_i32 : i32, i32
  }
  func.func @transform_4(%arg0: i32) -> (i32, i32) {
    %c0_i32 = arith.constant 0 : i32
    %c0_i32_0 = arith.constant 0 : i32
    %c0_i32_1 = arith.constant 0 : i32
    return %c0_i32, %c0_i32_0 : i32, i32
  }
  func.func @transform_5(%arg0: i32) -> (i32, i32) {
    %c0_i32 = arith.constant 0 : i32
    %c0_i32_0 = arith.constant 0 : i32
    %c0_i32_1 = arith.constant 0 : i32
    return %c0_i32, %c0_i32_0 : i32, i32
  }
  func.func @transform_6(%arg0: i32) -> (i32, i32) {
    %c0_i32 = arith.constant 0 : i32
    %c0_i32_0 = arith.constant 0 : i32
    return %arg0, %c0_i32 : i32, i32
  }
}

module attributes {stable_mosaic.version = 11 : i64} {
  func.func @_conv_relu_pool_kernel(%arg0: i32, %arg1: memref<50x150xbf16, #tpu.memory_space<vmem>>, %arg2: memref<50x150xbf16, #tpu.memory_space<vmem>>, %arg3: memref<50x150xbf16, #tpu.memory_space<vmem>>, %arg4: memref<50x150xbf16, #tpu.memory_space<vmem>>, %arg5: memref<150x128xbf16, #tpu.memory_space<vmem>>, %arg6: memref<1x128xf32, #tpu.memory_space<vmem>>, %arg7: memref<50x128xbf16, #tpu.memory_space<vmem>>) attributes {dimension_semantics = [#tpu.dimension_semantics<parallel>], iteration_bounds = array<i64: 1>, scalar_prefetch = 0 : i64, scratch_operands = 0 : i64, tpu.core_type = #tpu.core_type<tc>, window_params = [{transform_indices = @transform_0, window_bounds = array<i64: 50, 150>}, {transform_indices = @transform_1, window_bounds = array<i64: 50, 150>}, {transform_indices = @transform_2, window_bounds = array<i64: 50, 150>}, {transform_indices = @transform_3, window_bounds = array<i64: 50, 150>}, {pipeline_mode = #tpu.pipeline_mode<synchronous>, transform_indices = @transform_4, window_bounds = array<i64: 150, 128>}, {pipeline_mode = #tpu.pipeline_mode<synchronous>, transform_indices = @transform_5, window_bounds = array<i64: 1, 128>}, {transform_indices = @transform_6, window_bounds = array<i64: 50, 128>}]} {
    %c0 = arith.constant 0 : index
    %c0_0 = arith.constant 0 : index
    %0 = vector.load %arg5[%c0, %c0_0] : memref<150x128xbf16, #tpu.memory_space<vmem>>, vector<150x128xbf16>
    %c0_1 = arith.constant 0 : index
    %c0_2 = arith.constant 0 : index
    %1 = vector.load %arg6[%c0_1, %c0_2] : memref<1x128xf32, #tpu.memory_space<vmem>>, vector<1x128xf32>
    %c0_3 = arith.constant 0 : index
    %c0_4 = arith.constant 0 : index
    %2 = vector.load %arg1[%c0_3, %c0_4] : memref<50x150xbf16, #tpu.memory_space<vmem>>, vector<50x150xbf16>
    %cst = arith.constant dense<0.000000e+00> : vector<50x128xf32>
    %3 = tpu.matmul %2, %0, %cst {dimension_numbers = #tpu.dot_dimension_numbers<[1], [0], [0], [1], [0, 0, 1, 1], [], []>} : vector<50x150xbf16>, vector<150x128xbf16>, vector<50x128xf32> -> vector<50x128xf32>
    %4 = vector.broadcast %1 : vector<1x128xf32> to vector<50x128xf32>
    %5 = arith.addf %3, %4 : vector<50x128xf32>
    %cst_5 = arith.constant 0.000000e+00 : f32
    %6 = vector.broadcast %cst_5 : f32 to vector<50x128xf32>
    %7 = arith.maximumf %5, %6 : vector<50x128xf32>
    %c0_6 = arith.constant 0 : index
    %c0_7 = arith.constant 0 : index
    %8 = vector.load %arg2[%c0_6, %c0_7] : memref<50x150xbf16, #tpu.memory_space<vmem>>, vector<50x150xbf16>
    %cst_8 = arith.constant dense<0.000000e+00> : vector<50x128xf32>
    %9 = tpu.matmul %8, %0, %cst_8 {dimension_numbers = #tpu.dot_dimension_numbers<[1], [0], [0], [1], [0, 0, 1, 1], [], []>} : vector<50x150xbf16>, vector<150x128xbf16>, vector<50x128xf32> -> vector<50x128xf32>
    %10 = vector.broadcast %1 : vector<1x128xf32> to vector<50x128xf32>
    %11 = arith.addf %9, %10 : vector<50x128xf32>
    %cst_9 = arith.constant 0.000000e+00 : f32
    %12 = vector.broadcast %cst_9 : f32 to vector<50x128xf32>
    %13 = arith.maximumf %11, %12 : vector<50x128xf32>
    %14 = arith.maximumf %7, %13 : vector<50x128xf32>
    %c0_10 = arith.constant 0 : index
    %c0_11 = arith.constant 0 : index
    %15 = vector.load %arg3[%c0_10, %c0_11] : memref<50x150xbf16, #tpu.memory_space<vmem>>, vector<50x150xbf16>
    %cst_12 = arith.constant dense<0.000000e+00> : vector<50x128xf32>
    %16 = tpu.matmul %15, %0, %cst_12 {dimension_numbers = #tpu.dot_dimension_numbers<[1], [0], [0], [1], [0, 0, 1, 1], [], []>} : vector<50x150xbf16>, vector<150x128xbf16>, vector<50x128xf32> -> vector<50x128xf32>
    %17 = vector.broadcast %1 : vector<1x128xf32> to vector<50x128xf32>
    %18 = arith.addf %16, %17 : vector<50x128xf32>
    %cst_13 = arith.constant 0.000000e+00 : f32
    %19 = vector.broadcast %cst_13 : f32 to vector<50x128xf32>
    %20 = arith.maximumf %18, %19 : vector<50x128xf32>
    %c0_14 = arith.constant 0 : index
    %c0_15 = arith.constant 0 : index
    %21 = vector.load %arg4[%c0_14, %c0_15] : memref<50x150xbf16, #tpu.memory_space<vmem>>, vector<50x150xbf16>
    %cst_16 = arith.constant dense<0.000000e+00> : vector<50x128xf32>
    %22 = tpu.matmul %21, %0, %cst_16 {dimension_numbers = #tpu.dot_dimension_numbers<[1], [0], [0], [1], [0, 0, 1, 1], [], []>} : vector<50x150xbf16>, vector<150x128xbf16>, vector<50x128xf32> -> vector<50x128xf32>
    %23 = vector.broadcast %1 : vector<1x128xf32> to vector<50x128xf32>
    %24 = arith.addf %22, %23 : vector<50x128xf32>
    %cst_17 = arith.constant 0.000000e+00 : f32
    %25 = vector.broadcast %cst_17 : f32 to vector<50x128xf32>
    %26 = arith.maximumf %24, %25 : vector<50x128xf32>
    %27 = arith.maximumf %20, %26 : vector<50x128xf32>
    %28 = arith.maximumf %14, %27 : vector<50x128xf32>
    %29 = arith.truncf %28 : vector<50x128xf32> to vector<50x128xbf16>
    %c0_18 = arith.constant 0 : index
    %c0_19 = arith.constant 0 : index
    %30 = vector.load %arg7[%c0_18, %c0_19] : memref<50x128xbf16, #tpu.memory_space<vmem>>, vector<50x128xbf16>
    tpu.vector_store %arg7[%c0_18, %c0_19], %29 {strides = array<i32>} : memref<50x128xbf16, #tpu.memory_space<vmem>>, vector<50x128xbf16>,
    return
  }
  func.func @transform_0(%arg0: i32) -> (i32, i32) {
    %c0_i32 = arith.constant 0 : i32
    %c0_i32_0 = arith.constant 0 : i32
    return %arg0, %c0_i32 : i32, i32
  }
  func.func @transform_1(%arg0: i32) -> (i32, i32) {
    %c0_i32 = arith.constant 0 : i32
    %c0_i32_0 = arith.constant 0 : i32
    return %arg0, %c0_i32 : i32, i32
  }
  func.func @transform_2(%arg0: i32) -> (i32, i32) {
    %c0_i32 = arith.constant 0 : i32
    %c0_i32_0 = arith.constant 0 : i32
    return %arg0, %c0_i32 : i32, i32
  }
  func.func @transform_3(%arg0: i32) -> (i32, i32) {
    %c0_i32 = arith.constant 0 : i32
    %c0_i32_0 = arith.constant 0 : i32
    return %arg0, %c0_i32 : i32, i32
  }
  func.func @transform_4(%arg0: i32) -> (i32, i32) {
    %c0_i32 = arith.constant 0 : i32
    %c0_i32_0 = arith.constant 0 : i32
    %c0_i32_1 = arith.constant 0 : i32
    return %c0_i32, %c0_i32_0 : i32, i32
  }
  func.func @transform_5(%arg0: i32) -> (i32, i32) {
    %c0_i32 = arith.constant 0 : i32
    %c0_i32_0 = arith.constant 0 : i32
    %c0_i32_1 = arith.constant 0 : i32
    return %c0_i32, %c0_i32_0 : i32, i32
  }
  func.func @transform_6(%arg0: i32) -> (i32, i32) {
    %c0_i32 = arith.constant 0 : i32
    %c0_i32_0 = arith.constant 0 : i32
    return %arg0, %c0_i32 : i32, i32
  }
}

module attributes {stable_mosaic.version = 11 : i64} {
  func.func @_fc3_kernel(%arg0: i32, %arg1: memref<2x400xbf16, #tpu.memory_space<vmem>>, %arg2: memref<400x128xbf16, #tpu.memory_space<vmem>>, %arg3: memref<1x128xf32, #tpu.memory_space<vmem>>, %arg4: memref<128x128xbf16, #tpu.memory_space<vmem>>, %arg5: memref<1x128xf32, #tpu.memory_space<vmem>>, %arg6: memref<128x128xbf16, #tpu.memory_space<vmem>>, %arg7: memref<1x128xf32, #tpu.memory_space<vmem>>, %arg8: memref<2x128xf32, #tpu.memory_space<vmem>>) attributes {dimension_semantics = [#tpu.dimension_semantics<parallel>], iteration_bounds = array<i64: 1>, scalar_prefetch = 0 : i64, scratch_operands = 0 : i64, tpu.core_type = #tpu.core_type<tc>, window_params = [{transform_indices = @transform_0, window_bounds = array<i64: 2, 400>}, {pipeline_mode = #tpu.pipeline_mode<synchronous>, transform_indices = @transform_1, window_bounds = array<i64: 400, 128>}, {pipeline_mode = #tpu.pipeline_mode<synchronous>, transform_indices = @transform_2, window_bounds = array<i64: 1, 128>}, {pipeline_mode = #tpu.pipeline_mode<synchronous>, transform_indices = @transform_3, window_bounds = array<i64: 128, 128>}, {pipeline_mode = #tpu.pipeline_mode<synchronous>, transform_indices = @transform_4, window_bounds = array<i64: 1, 128>}, {pipeline_mode = #tpu.pipeline_mode<synchronous>, transform_indices = @transform_5, window_bounds = array<i64: 128, 128>}, {pipeline_mode = #tpu.pipeline_mode<synchronous>, transform_indices = @transform_6, window_bounds = array<i64: 1, 128>}, {transform_indices = @transform_7, window_bounds = array<i64: 2, 128>}]} {
    %c0 = arith.constant 0 : index
    %c0_0 = arith.constant 0 : index
    %0 = vector.load %arg1[%c0, %c0_0] : memref<2x400xbf16, #tpu.memory_space<vmem>>, vector<2x400xbf16>
    %c0_1 = arith.constant 0 : index
    %c0_2 = arith.constant 0 : index
    %1 = vector.load %arg2[%c0_1, %c0_2] : memref<400x128xbf16, #tpu.memory_space<vmem>>, vector<400x128xbf16>
    %cst = arith.constant dense<0.000000e+00> : vector<2x128xf32>
    %2 = tpu.matmul %0, %1, %cst {dimension_numbers = #tpu.dot_dimension_numbers<[1], [0], [0], [1], [0, 0, 1, 1], [], []>} : vector<2x400xbf16>, vector<400x128xbf16>, vector<2x128xf32> -> vector<2x128xf32>
    %c0_3 = arith.constant 0 : index
    %c0_4 = arith.constant 0 : index
    %3 = vector.load %arg3[%c0_3, %c0_4] : memref<1x128xf32, #tpu.memory_space<vmem>>, vector<1x128xf32>
    %4 = vector.broadcast %3 : vector<1x128xf32> to vector<2x128xf32>
    %5 = arith.addf %2, %4 : vector<2x128xf32>
    %cst_5 = arith.constant 0.000000e+00 : f32
    %6 = vector.broadcast %cst_5 : f32 to vector<2x128xf32>
    %7 = arith.maximumf %5, %6 : vector<2x128xf32>
    %8 = arith.truncf %7 : vector<2x128xf32> to vector<2x128xbf16>
    %c0_6 = arith.constant 0 : index
    %c0_7 = arith.constant 0 : index
    %9 = vector.load %arg4[%c0_6, %c0_7] : memref<128x128xbf16, #tpu.memory_space<vmem>>, vector<128x128xbf16>
    %cst_8 = arith.constant dense<0.000000e+00> : vector<2x128xf32>
    %10 = tpu.matmul %8, %9, %cst_8 {dimension_numbers = #tpu.dot_dimension_numbers<[1], [0], [0], [1], [0, 0, 1, 1], [], []>} : vector<2x128xbf16>, vector<128x128xbf16>, vector<2x128xf32> -> vector<2x128xf32>
    %c0_9 = arith.constant 0 : index
    %c0_10 = arith.constant 0 : index
    %11 = vector.load %arg5[%c0_9, %c0_10] : memref<1x128xf32, #tpu.memory_space<vmem>>, vector<1x128xf32>
    %12 = vector.broadcast %11 : vector<1x128xf32> to vector<2x128xf32>
    %13 = arith.addf %10, %12 : vector<2x128xf32>
    %cst_11 = arith.constant 0.000000e+00 : f32
    %14 = vector.broadcast %cst_11 : f32 to vector<2x128xf32>
    %15 = arith.maximumf %13, %14 : vector<2x128xf32>
    %16 = arith.truncf %15 : vector<2x128xf32> to vector<2x128xbf16>
    %c0_12 = arith.constant 0 : index
    %c0_13 = arith.constant 0 : index
    %17 = vector.load %arg6[%c0_12, %c0_13] : memref<128x128xbf16, #tpu.memory_space<vmem>>, vector<128x128xbf16>
    %cst_14 = arith.constant dense<0.000000e+00> : vector<2x128xf32>
    %18 = tpu.matmul %16, %17, %cst_14 {dimension_numbers = #tpu.dot_dimension_numbers<[1], [0], [0], [1], [0, 0, 1, 1], [], []>} : vector<2x128xbf16>, vector<128x128xbf16>, vector<2x128xf32> -> vector<2x128xf32>
    %c0_15 = arith.constant 0 : index
    %c0_16 = arith.constant 0 : index
    %19 = vector.load %arg7[%c0_15, %c0_16] : memref<1x128xf32, #tpu.memory_space<vmem>>, vector<1x128xf32>
    %20 = vector.broadcast %19 : vector<1x128xf32> to vector<2x128xf32>
    %21 = arith.addf %18, %20 : vector<2x128xf32>
    %c0_17 = arith.constant 0 : index
    %c0_18 = arith.constant 0 : index
    %22 = vector.load %arg8[%c0_17, %c0_18] : memref<2x128xf32, #tpu.memory_space<vmem>>, vector<2x128xf32>
    tpu.vector_store %arg8[%c0_17, %c0_18], %21 {strides = array<i32>} : memref<2x128xf32, #tpu.memory_space<vmem>>, vector<2x128xf32>,
    return
  }
  func.func @transform_0(%arg0: i32) -> (i32, i32) {
    %c0_i32 = arith.constant 0 : i32
    %c0_i32_0 = arith.constant 0 : i32
    return %arg0, %c0_i32 : i32, i32
  }
  func.func @transform_1(%arg0: i32) -> (i32, i32) {
    %c0_i32 = arith.constant 0 : i32
    %c0_i32_0 = arith.constant 0 : i32
    %c0_i32_1 = arith.constant 0 : i32
    return %c0_i32, %c0_i32_0 : i32, i32
  }
  func.func @transform_2(%arg0: i32) -> (i32, i32) {
    %c0_i32 = arith.constant 0 : i32
    %c0_i32_0 = arith.constant 0 : i32
    %c0_i32_1 = arith.constant 0 : i32
    return %c0_i32, %c0_i32_0 : i32, i32
  }
  func.func @transform_3(%arg0: i32) -> (i32, i32) {
    %c0_i32 = arith.constant 0 : i32
    %c0_i32_0 = arith.constant 0 : i32
    %c0_i32_1 = arith.constant 0 : i32
    return %c0_i32, %c0_i32_0 : i32, i32
  }
  func.func @transform_4(%arg0: i32) -> (i32, i32) {
    %c0_i32 = arith.constant 0 : i32
    %c0_i32_0 = arith.constant 0 : i32
    %c0_i32_1 = arith.constant 0 : i32
    return %c0_i32, %c0_i32_0 : i32, i32
  }
  func.func @transform_5(%arg0: i32) -> (i32, i32) {
    %c0_i32 = arith.constant 0 : i32
    %c0_i32_0 = arith.constant 0 : i32
    %c0_i32_1 = arith.constant 0 : i32
    return %c0_i32, %c0_i32_0 : i32, i32
  }
  func.func @transform_6(%arg0: i32) -> (i32, i32) {
    %c0_i32 = arith.constant 0 : i32
    %c0_i32_0 = arith.constant 0 : i32
    %c0_i32_1 = arith.constant 0 : i32
    return %c0_i32, %c0_i32_0 : i32, i32
  }
  func.func @transform_7(%arg0: i32) -> (i32, i32) {
    %c0_i32 = arith.constant 0 : i32
    %c0_i32_0 = arith.constant 0 : i32
    return %arg0, %c0_i32 : i32, i32
  }
}

</mosaic_0001>

<bundles_post_ra>
// kernel: net_forward.4
= control target key start
LH: loop header
LB: loop body
LE: loop exit
PB: predicated region body
PF: predicated region fallthrough
CT: control target
= control target key end

     0   :  { %v810_v0 = vmov 0   ;;  %vm147_vm0 = vcmask 179200   ;;  %vm160_vm1 = vcmask 1042432   ;;  %s1139_s4 = inlined_call_operand.vmem [shape: bf16[150,128], index: 4, kind: input, shape index: {}]   ;;  %s1140_s0 = inlined_call_operand.vmem [shape: bf16[50,150], index: 0, kind: input, shape index: {}]   ;;  %s1141_s1 = inlined_call_operand.vmem [shape: bf16[50,150], index: 1, kind: input, shape index: {}]   ;;  %s1142_s2 = inlined_call_operand.vmem [shape: bf16[50,150], index: 2, kind: input, shape index: {}]   ;;  %s1143_s3 = inlined_call_operand.vmem [shape: bf16[50,150], index: 3, kind: input, shape index: {}]   ;;  %s1144_s5 = inlined_call_operand.vmem [shape: f32[1,128], index: 5, kind: input, shape index: {}]   ;;  %s1145_s6 = inlined_call_operand.vmem [shape: bf16[50,128], index: 6, kind: output, shape index: {}]  }
   0x1   :  { %164 = vmatprep.subr.bf16.mxu0 %v810_v0  ;;  %287 = vmatprep.subr.bf16.mxu1 %v810_v0  ;;  %v851_v1 = vld [vmem:[%s1139_s4 + $0x38] sm:$0xff]   ;;  %v858_v2 = vld [vmem:[%s1139_s4 + $0x30] sm:$0xff]   ;;  %v867_v3 = vld [vmem:[%s1139_s4 + $0x28] sm:$0xff]  }
   0x2   :  { %165 = vmatpush1.bf16.msra.mxu0 %v851_v1  ;;  %288 = vmatpush1.bf16.msra.mxu1 %v851_v1  ;;  %v876_v4 = vld [vmem:[%s1139_s4 + $0x20] sm:$0xff]   ;;  %v892_v7 = vld [vmem:[%s1139_s4 + $0x18] sm:$0xff]   ;;  %v902_v8 = vld [vmem:[%s1139_s4 + $0x10] sm:$0xff]  }
   0x3   :  { %166 = vmatprep.subr.bf16.mxu0 %v810_v0  ;;  %289 = vmatprep.subr.bf16.mxu1 %v810_v0  ;;  %v768_v5 = vld [vmem:[%s1140_s0 + $0x4] ss:$8 sps:$4 sm:$0xff]   ;;  %v764_v11 = vld [vmem:[%s1139_s4 + $0x48] ss:$0 sps:$4 sm:$0x77]  }
   0x4   :  { %684 = vmatprep.mubr.msk.bf16.mxu0 %vm147_vm0, %v768_v5  ;;  %v771_v6 = vld [vmem:[%s1141_s1 + $0x4] ss:$8 sps:$4 sm:$0xff]   ;;  %v931_v12 = vsel %vm160_vm1, %v764_v11, 0  ;;  %v766_v14 = vld [vmem:[%s1140_s0] ss:$8 sps:$4 sm:$0xff]  }
   0x5   :  { %696 = vmatprep.mubr.msk.bf16.mxu1 %vm147_vm0, %v771_v6  ;;  %v911_v9 = vld [vmem:[%s1139_s4 + $0x8] sm:$0xff]   ;;  %v920_v10 = vld [vmem:[%s1139_s4] sm:$0xff]   ;;  %v772_v16 = vld [vmem:[%s1140_s0 + $0x14] ss:$8 sps:$4 sm:$0xff]  }
   0x6   :  { %167 = vmatpush1.bf16.msra.mxu0 %v858_v2  ;;  %290 = vmatpush1.bf16.msra.mxu1 %v858_v2  ;;  %v938_v13 = vld [vmem:[%s1139_s4 + $0x40] sm:$0xff]   ;;  %v774_v17 = vld [vmem:[%s1141_s1 + $0x14] ss:$8 sps:$4 sm:$0xff]   ;;  %v776_v18 = vld [vmem:[%s1140_s0 + $0x10] ss:$8 sps:$4 sm:$0xff]  }
   0x7   :  { %168 = vmatprep.subr.bf16.mxu0 %v810_v0  ;;  %291 = vmatprep.subr.bf16.mxu1 %v810_v0  ;;  %v769_v15 = vld [vmem:[%s1141_s1] ss:$8 sps:$4 sm:$0xff]   ;;  %v777_v19 = vld [vmem:[%s1141_s1 + $0x10] ss:$8 sps:$4 sm:$0xff]   ;;  %v778_v20 = vld [vmem:[%s1140_s0 + $0x24] ss:$8 sps:$4 sm:$0xff]  }
   0x8   :  { %v780_v21 = vld [vmem:[%s1141_s1 + $0x24] ss:$8 sps:$4 sm:$0xff]   ;;  %v782_v22 = vld [vmem:[%s1140_s0 + $0x20] ss:$8 sps:$4 sm:$0xff]   ;;  %v50_v24 = vld [vmem:[%s1140_s0 + $0x30] sm:$0x11] }
   0x9   :  { %v783_v23 = vld [vmem:[%s1141_s1 + $0x20] ss:$8 sps:$4 sm:$0xff]   ;;  %v241_v25 = vld [vmem:[%s1141_s1 + $0x30] sm:$0x11]  ;;  %v673_v26 = vcombine.high %v50_v24, %v50_v24  ;;  %v672_v28 = vcombine.low %v50_v24, %v50_v24  ;;  %v790_v30 = vld [vmem:[%s1142_s2 + $0x4] ss:$8 sps:$4 sm:$0xff]  }
   0xa   :  { %169 = vmatpush1.bf16.msra.mxu0 %v867_v3  ;;  %292 = vmatpush1.bf16.msra.mxu1 %v867_v3  ;;  %v695_v27 = vcombine.high %v241_v25, %v241_v25  ;;  %v694_v29 = vcombine.low %v241_v25, %v241_v25  ;;  %v793_v31 = vld [vmem:[%s1143_s3 + $0x4] ss:$8 sps:$4 sm:$0xff]   ;;  %v788_v32 = vld [vmem:[%s1142_s2] ss:$8 sps:$4 sm:$0xff]   ;;  %v794_v34 = vld [vmem:[%s1142_s2 + $0x14] ss:$8 sps:$4 sm:$0xff]  }
   0xb   :  { %170 = vmatprep.subr.bf16.mxu0 %v810_v0  ;;  %293 = vmatprep.subr.bf16.mxu1 %v810_v0  ;;  %v791_v33 = vld [vmem:[%s1143_s3] ss:$8 sps:$4 sm:$0xff]   ;;  %v796_v35 = vld [vmem:[%s1143_s3 + $0x14] ss:$8 sps:$4 sm:$0xff]   ;;  %v798_v36 = vld [vmem:[%s1142_s2 + $0x10] ss:$8 sps:$4 sm:$0xff]  }
   0xc   :  { %v799_v37 = vld [vmem:[%s1143_s3 + $0x10] ss:$8 sps:$4 sm:$0xff]   ;;  %v800_v38 = vld [vmem:[%s1142_s2 + $0x24] ss:$8 sps:$4 sm:$0xff]   ;;  %v804_v42 = vld [vmem:[%s1142_s2 + $0x20] ss:$8 sps:$4 sm:$0xff]  }
   0xd   :  { %v802_v39 = vld [vmem:[%s1143_s3 + $0x24] ss:$8 sps:$4 sm:$0xff]   ;;  %v371_v40 = vld [vmem:[%s1142_s2 + $0x30] sm:$0x11]  ;;  %v805_v43 = vld [vmem:[%s1143_s3 + $0x20] ss:$8 sps:$4 sm:$0xff]  }
   0xe   :  { %171 = vmatpush1.bf16.msra.mxu0 %v876_v4  ;;  %294 = vmatpush1.bf16.msra.mxu1 %v876_v4  ;;  %v494_v41 = vld [vmem:[%s1143_s3 + $0x30] sm:$0x11]  ;;  %v707_v44 = vcombine.high %v371_v40, %v371_v40  ;;  %v706_v46 = vcombine.low %v371_v40, %v371_v40 }
   0xf   :  { %172 = vmatprep.subr.bf16.mxu0 %v810_v0  ;;  %295 = vmatprep.subr.bf16.mxu1 %v810_v0  ;;  %v719_v45 = vcombine.high %v494_v41, %v494_v41  ;;  %v718_v47 = vcombine.low %v494_v41, %v494_v41 }
  0x12   :  { %173 = vmatpush1.bf16.msra.mxu0 %v892_v7  ;;  %296 = vmatpush1.bf16.msra.mxu1 %v892_v7 }
  0x13   :  { %174 = vmatprep.subr.bf16.mxu0 %v810_v0  ;;  %297 = vmatprep.subr.bf16.mxu1 %v810_v0 }
  0x16   :  { %175 = vmatpush1.bf16.msra.mxu0 %v902_v8  ;;  %298 = vmatpush1.bf16.msra.mxu1 %v902_v8 }
  0x17   :  { %176 = vmatprep.subr.bf16.mxu0 %v810_v0  ;;  %299 = vmatprep.subr.bf16.mxu1 %v810_v0 }
  0x1a   :  { %177 = vmatpush1.bf16.msra.mxu0 %v911_v9  ;;  %300 = vmatpush1.bf16.msra.mxu1 %v911_v9 }
  0x1b   :  { %178 = vmatprep.subr.bf16.mxu0 %v810_v0  ;;  %301 = vmatprep.subr.bf16.mxu1 %v810_v0 }
  0x1e   :  { %179 = vmatpush1.bf16.msra.mxu0 %v920_v10  ;;  %302 = vmatpush1.bf16.msra.mxu1 %v920_v10 }
  0x1f   :  { %192 = vmatprep.subr.bf16.mxu0 %v810_v0  ;;  %315 = vmatprep.subr.bf16.mxu1 %v810_v0 }
  0x22   :  { %193 = vmatpush2.bf16.msra.mxu0 %v931_v12  ;;  %316 = vmatpush2.bf16.msra.mxu1 %v931_v12 }
  0x23   :  { %194 = vmatprep.subr.bf16.mxu0 %v810_v0  ;;  %317 = vmatprep.subr.bf16.mxu1 %v810_v0 }
  0x26   :  { %195 = vmatpush2.bf16.msra.mxu0 %v938_v13  ;;  %318 = vmatpush2.bf16.msra.mxu1 %v938_v13 }
  0x27   :  { %417 = vmatprep.subr.bf16.mxu0 %v810_v0  ;;  %540 = vmatprep.subr.bf16.mxu1 %v810_v0 }
  0x29   :  { %197 = vmatmul.mubr.bf16.vlgmr.msra.gmra.mxu0 %v766_v14  ;;  %320 = vmatmul.mubr.bf16.vlgmr.msra.gmra.mxu1 %v769_v15 }
  0x2a   :  { %418 = vmatpush1.bf16.msra.mxu0 %v851_v1  ;;  %541 = vmatpush1.bf16.msra.mxu1 %v851_v1 }
  0x2b   :  { %419 = vmatprep.subr.bf16.mxu0 %v810_v0  ;;  %542 = vmatprep.subr.bf16.mxu1 %v810_v0 }
  0x2c   :  { %685 = vmatprep.mubr.msk.bf16.mxu0 %vm147_vm0, %v772_v16  ;;  %697 = vmatprep.mubr.msk.bf16.mxu1 %vm147_vm0, %v774_v17  ;;  %v1091_v16 = vld [vmem:[%s1144_s5] ss:$0 sm:$0xff] }
  0x2e   :  { %420 = vmatpush1.bf16.msra.mxu0 %v858_v2  ;;  %543 = vmatpush1.bf16.msra.mxu1 %v858_v2 }
  0x2f   :  { %421 = vmatprep.subr.bf16.mxu0 %v810_v0  ;;  %544 = vmatprep.subr.bf16.mxu1 %v810_v0 }
  0x31   :  { %205 = vmatmul.mubr.bf16.gmra.mxu0 %v776_v18  ;;  %328 = vmatmul.mubr.bf16.gmra.mxu1 %v777_v19 }
  0x32   :  { %422 = vmatpush1.bf16.msra.mxu0 %v867_v3  ;;  %545 = vmatpush1.bf16.msra.mxu1 %v867_v3 }
  0x33   :  { %423 = vmatprep.subr.bf16.mxu0 %v810_v0  ;;  %546 = vmatprep.subr.bf16.mxu1 %v810_v0 }
  0x34   :  { %686 = vmatprep.mubr.msk.bf16.mxu0 %vm147_vm0, %v778_v20  ;;  %698 = vmatprep.mubr.msk.bf16.mxu1 %vm147_vm0, %v780_v21 }
  0x36   :  { %424 = vmatpush1.bf16.msra.mxu0 %v876_v4  ;;  %547 = vmatpush1.bf16.msra.mxu1 %v876_v4 }
  0x37   :  { %425 = vmatprep.subr.bf16.mxu0 %v810_v0  ;;  %548 = vmatprep.subr.bf16.mxu1 %v810_v0 }
  0x39   :  { %213 = vmatmul.mubr.bf16.gmra.mxu0 %v782_v22  ;;  %336 = vmatmul.mubr.bf16.gmra.mxu1 %v783_v23 }
  0x3a   :  { %426 = vmatpush1.bf16.msra.mxu0 %v892_v7  ;;  %549 = vmatpush1.bf16.msra.mxu1 %v892_v7 }
  0x3b   :  { %427 = vmatprep.subr.bf16.mxu0 %v810_v0  ;;  %550 = vmatprep.subr.bf16.mxu1 %v810_v0 }
  0x3c   :  { %687 = vmatprep.mubr.msk.bf16.mxu0 %vm147_vm0, %v673_v26  ;;  %699 = vmatprep.mubr.msk.bf16.mxu1 %vm147_vm0, %v695_v27 }
  0x3e   :  { %428 = vmatpush1.bf16.msra.mxu0 %v902_v8  ;;  %551 = vmatpush1.bf16.msra.mxu1 %v902_v8 }
  0x3f   :  { %429 = vmatprep.subr.bf16.mxu0 %v810_v0  ;;  %552 = vmatprep.subr.bf16.mxu1 %v810_v0 }
  0x41   :  { %221 = vmatmul.mubr.bf16.gmra.mxu0 %v672_v28  ;;  %344 = vmatmul.mubr.bf16.gmra.mxu1 %v694_v29 }
  0x42   :  { %430 = vmatpush1.bf16.msra.mxu0 %v911_v9  ;;  %553 = vmatpush1.bf16.msra.mxu1 %v911_v9 }
  0x43   :  { %431 = vmatprep.subr.bf16.mxu0 %v810_v0  ;;  %554 = vmatprep.subr.bf16.mxu1 %v810_v0 }
  0x44   :  { %708 = vmatprep.mubr.msk.bf16.mxu0 %vm147_vm0, %v790_v30  ;;  %720 = vmatprep.mubr.msk.bf16.mxu1 %vm147_vm0, %v793_v31 }
  0x46   :  { %432 = vmatpush1.bf16.msra.mxu0 %v920_v10  ;;  %555 = vmatpush1.bf16.msra.mxu1 %v920_v10 }
  0x47   :  { %445 = vmatprep.subr.bf16.mxu0 %v810_v0  ;;  %568 = vmatprep.subr.bf16.mxu1 %v810_v0 }
  0x4a   :  { %446 = vmatpush2.bf16.msra.mxu0 %v931_v12  ;;  %569 = vmatpush2.bf16.msra.mxu1 %v931_v12 }
  0x4b   :  { %447 = vmatprep.subr.bf16.mxu0 %v810_v0  ;;  %570 = vmatprep.subr.bf16.mxu1 %v810_v0 }
  0x4e   :  { %448 = vmatpush2.bf16.msra.mxu0 %v938_v13  ;;  %571 = vmatpush2.bf16.msra.mxu1 %v938_v13 }
  0x51   :  { %450 = vmatmul.mubr.bf16.vlgmr.msra.gmra.mxu0 %v788_v32  ;;  %573 = vmatmul.mubr.bf16.vlgmr.msra.gmra.mxu1 %v791_v33 }
  0x52   :  { %709 = vmatprep.mubr.msk.bf16.mxu0 %vm147_vm0, %v794_v34  ;;  %721 = vmatprep.mubr.msk.bf16.mxu1 %vm147_vm0, %v796_v35 }
  0x59   :  { %458 = vmatmul.mubr.bf16.gmra.mxu0 %v798_v36  ;;  %581 = vmatmul.mubr.bf16.gmra.mxu1 %v799_v37 }
  0x5a   :  { %710 = vmatprep.mubr.msk.bf16.mxu0 %vm147_vm0, %v800_v38  ;;  %722 = vmatprep.mubr.msk.bf16.mxu1 %vm147_vm0, %v802_v39 }
  0x61   :  { %466 = vmatmul.mubr.bf16.gmra.mxu0 %v804_v42  ;;  %589 = vmatmul.mubr.bf16.gmra.mxu1 %v805_v43 }
  0x62   :  { %711 = vmatprep.mubr.msk.bf16.mxu0 %vm147_vm0, %v707_v44  ;;  %723 = vmatprep.mubr.msk.bf16.mxu1 %vm147_vm0, %v719_v45 }
  0x69   :  { %474 = vmatmul.mubr.bf16.gmra.mxu0 %v706_v46  ;;  %597 = vmatmul.mubr.bf16.gmra.mxu1 %v718_v47 }
  0xe9   :  { %v198_v48 = vpop.f32.mrf.mxu0  ;;  %v321_v49 = vpop.f32.mrf.mxu1 }
  0xea   :  { %v199_v17 = vadd.f32 %v1091_v16, %v198_v48  ;;  %v322_v18 = vadd.f32 %v1091_v16, %v321_v49 }
  0xeb   :  { %v200_v50 = vpop.f32.mrf.mxu0  ;;  %v323_v51 = vpop.f32.mrf.mxu1 }
  0xec   :  { %v228_v27 = vmax.f32 %v199_v17, 0.0  ;;  %v351_v28 = vmax.f32 %v322_v18, 0.0 }
  0xed   :  { %v201_v52 = vpop.f32.mrf.mxu0  ;;  %v324_v53 = vpop.f32.mrf.mxu1 }
  0xee   :  { %v202_v19 = vadd.f32 %v1091_v16, %v201_v52  ;;  %v325_v20 = vadd.f32 %v1091_v16, %v324_v53  ;;  %v358_v39 = vmax.f32 %v228_v27, %v351_v28 }
  0xef   :  { %v203_v54 = vpop.f32.mrf.mxu0  ;;  %v326_v55 = vpop.f32.mrf.mxu1 }
  0xf0   :  { %v229_v31 = vmax.f32 %v202_v19, 0.0  ;;  %v352_v32 = vmax.f32 %v325_v20, 0.0 }
  0xf1   :  { %v206_v56 = vpop.f32.mrf.mxu0  ;;  %v329_v57 = vpop.f32.mrf.mxu1 }
  0xf2   :  { %v359_v43 = vmax.f32 %v229_v31, %v352_v32  ;;  %v207_v44 = vadd.f32 %v1091_v16, %v206_v56  ;;  %v330_v45 = vadd.f32 %v1091_v16, %v329_v57 }
  0xf3   :  { %v208_v58 = vpop.f32.mrf.mxu0  ;;  %v331_v59 = vpop.f32.mrf.mxu1 }
  0xf4   :  { %v230_v56 = vmax.f32 %v207_v44, 0.0 }
  0xf5   :  { %v209_v60 = vpop.f32.mrf.mxu0  ;;  %v332_v61 = vpop.f32.mrf.mxu1 }
  0xf6   :  { %v210_v46 = vadd.f32 %v1091_v16, %v209_v60  ;;  %v333_v49 = vadd.f32 %v1091_v16, %v332_v61 }
  0xf7   :  { %v211_v62 = vpop.f32.mrf.mxu0  ;;  %v334_v63 = vpop.f32.mrf.mxu1 }
  0xf8   :  { %v353_v63 = vmax.f32 %v330_v45, 0.0  ;;  %v231_v57 = vmax.f32 %v210_v46, 0.0 }
  0xf9   :  { %v1076_v0 = vpop.f32.mrf.mxu0  ;;  %v1078_v1 = vpop.f32.mrf.mxu1 }
  0xfa   :  { %v360_v17 = vmax.f32 %v230_v56, %v353_v63  ;;  %v338_v18 = vadd.f32 %v1091_v16, %v1078_v1 }
  0xfb   :  { %v216_v2 = vpop.f32.mrf.mxu0  ;;  %v339_v3 = vpop.f32.mrf.mxu1 }
  0xfc   :  { %v354_v3 = vmax.f32 %v333_v49, 0.0  ;;  %v355_v32 = vmax.f32 %v338_v18, 0.0 }
  0xfd   :  { %v1080_v4 = vpop.f32.mrf.mxu0  ;;  %v1082_v5 = vpop.f32.mrf.mxu1 }
  0xfe   :  { %v218_v19 = vadd.f32 %v1091_v16, %v1080_v4  ;;  %v341_v20 = vadd.f32 %v1091_v16, %v1082_v5 }
  0xff   :  { %v219_v6 = vpop.f32.mrf.mxu0  ;;  %v342_v7 = vpop.f32.mrf.mxu1 }
 0x100   :  { %v233_v4 = vmax.f32 %v218_v19, 0.0 }
 0x101   :  { %v1084_v8 = vpop.f32.mrf.mxu0  ;;  %v1086_v9 = vpop.f32.mrf.mxu1 }
 0x102   :  { %v223_v5 = vadd.f32 %v1091_v16, %v1084_v8 }
 0x103   :  { %v224_v10 = vpop.f32.mrf.mxu0  ;;  %v347_v11 = vpop.f32.mrf.mxu1 }
 0x104   :  { %v215_v10 = vadd.f32 %v1091_v16, %v1076_v0  ;;  %v234_v46 = vmax.f32 %v223_v5, 0.0 }
 0x105   :  { %v225_v12 = vpop.f32.mrf.mxu0  ;;  %v348_v13 = vpop.f32.mrf.mxu1 }
 0x107   :  { %v226_v14 = vpop.f32.mrf.mxu0  ;;  %v349_v15 = vpop.f32.mrf.mxu1 }
 0x111   :  { %v451_v21 = vpop.f32.mrf.mxu0  ;;  %v574_v22 = vpop.f32.mrf.mxu1 }
 0x112   :  { %v452_v23 = vadd.f32 %v1091_v16, %v451_v21  ;;  %v575_v24 = vadd.f32 %v1091_v16, %v574_v22  ;;  %v361_v22 = vmax.f32 %v231_v57, %v354_v3 }
 0x113   :  { %v453_v25 = vpop.f32.mrf.mxu0  ;;  %v576_v26 = vpop.f32.mrf.mxu1 }
 0x114   :  { %v481_v29 = vmax.f32 %v452_v23, 0.0  ;;  %v604_v30 = vmax.f32 %v575_v24, 0.0  ;;  %v232_v26 = vmax.f32 %v215_v10, 0.0 }
 0x115   :  { %v454_v33 = vpop.f32.mrf.mxu0  ;;  %v577_v34 = vpop.f32.mrf.mxu1 }
 0x116   :  { %v455_v35 = vadd.f32 %v1091_v16, %v454_v33  ;;  %v578_v36 = vadd.f32 %v1091_v16, %v577_v34  ;;  %v611_v40 = vmax.f32 %v481_v29, %v604_v30  ;;  %v356_v33 = vmax.f32 %v341_v20, 0.0 }
 0x117   :  { %v456_v37 = vpop.f32.mrf.mxu0  ;;  %v579_v38 = vpop.f32.mrf.mxu1  ;;  %v362_v8 = vmax.f32 %v232_v26, %v355_v32 }
 0x118   :  { %v482_v41 = vmax.f32 %v455_v35, 0.0  ;;  %v605_v42 = vmax.f32 %v578_v36, 0.0  ;;  %v618_v55 = vmax.f32 %v358_v39, %v611_v40  ;;  %v346_v36 = vadd.f32 %v1091_v16, %v1086_v9 }
 0x119   :  { %v459_v47 = vpop.f32.mrf.mxu0  ;;  %v582_v48 = vpop.f32.mrf.mxu1  ;;  %v363_v45 = vmax.f32 %v233_v4, %v356_v33 }
 0x11a   :  { %v612_v50 = vmax.f32 %v482_v41, %v605_v42  ;;  %v460_v51 = vadd.f32 %v1091_v16, %v459_v47  ;;  %v583_v52 = vadd.f32 %v1091_v16, %v582_v48  ;;  %v357_v9 = vmax.f32 %v346_v36, 0.0 }
 0x11b   :  { %v461_v53 = vpop.f32.mrf.mxu0  ;;  %v584_v54 = vpop.f32.mrf.mxu1 }
 0x11c   :  { %v619_v58 = vmax.f32 %v359_v43, %v612_v50  ;;  %v483_v59 = vmax.f32 %v460_v51, 0.0  ;;  %v606_v62 = vmax.f32 %v583_v52, 0.0  ;;  %v364_v63 = vmax.f32 %v234_v46, %v357_v9 }
 0x11d   :  { %v462_v2 = vpop.f32.mrf.mxu0  ;;  %v585_v60 = vpop.f32.mrf.mxu1 }
 0x11e   :  { %v741_v6 = vpack.c.bf16 %v619_v58, %v618_v55  ;;  %v463_v61 = vadd.f32 %v1091_v16, %v462_v2  ;;  %v586_v7 = vadd.f32 %v1091_v16, %v585_v60  ;;  %v613_v13 = vmax.f32 %v483_v59, %v606_v62 }
 0x11f   :  { %v464_v11 = vpop.f32.mrf.mxu0  ;;  %v587_v12 = vpop.f32.mrf.mxu1 }
 0x120   :  { %742 = vst [vmem:[%s1145_s6] sm:$0xff] %v741_v6   ;;  %v484_v14 = vmax.f32 %v463_v61, 0.0  ;;  %v607_v15 = vmax.f32 %v586_v7, 0.0  ;;  %v620_v29 = vmax.f32 %v360_v17, %v613_v13 }
 0x121   :  { %v467_v0 = vpop.f32.mrf.mxu0  ;;  %v590_v21 = vpop.f32.mrf.mxu1 }
 0x122   :  { %v614_v23 = vmax.f32 %v484_v14, %v607_v15  ;;  %v468_v24 = vadd.f32 %v1091_v16, %v467_v0  ;;  %v591_v25 = vadd.f32 %v1091_v16, %v590_v21 }
 0x123   :  { %v469_v27 = vpop.f32.mrf.mxu0  ;;  %v592_v28 = vpop.f32.mrf.mxu1 }
 0x124   :  { %v621_v30 = vmax.f32 %v361_v22, %v614_v23  ;;  %v485_v1 = vmax.f32 %v468_v24, 0.0  ;;  %v608_v31 = vmax.f32 %v591_v25, 0.0 }
 0x125   :  { %v470_v34 = vpop.f32.mrf.mxu0  ;;  %v593_v35 = vpop.f32.mrf.mxu1 }
 0x126   :  { %v746_v37 = vpack.c.bf16 %v621_v30, %v620_v29  ;;  %v471_v38 = vadd.f32 %v1091_v16, %v470_v34  ;;  %v594_v39 = vadd.f32 %v1091_v16, %v593_v35  ;;  %v615_v42 = vmax.f32 %v485_v1, %v608_v31 }
 0x127   :  { %v472_v40 = vpop.f32.mrf.mxu0  ;;  %v595_v41 = vpop.f32.mrf.mxu1 }
 0x128   :  { %753 = vst [vmem:[%s1145_s6 + $0x8] sm:$0xff] %v746_v37   ;;  %v486_v43 = vmax.f32 %v471_v38, 0.0  ;;  %v609_v44 = vmax.f32 %v594_v39, 0.0  ;;  %v622_v54 = vmax.f32 %v362_v8, %v615_v42 }
 0x129   :  { %v475_v47 = vpop.f32.mrf.mxu0  ;;  %v598_v48 = vpop.f32.mrf.mxu1 }
 0x12a   :  { %v616_v49 = vmax.f32 %v486_v43, %v609_v44  ;;  %v476_v50 = vadd.f32 %v1091_v16, %v475_v47  ;;  %v599_v51 = vadd.f32 %v1091_v16, %v598_v48 }
 0x12b   :  { %v477_v52 = vpop.f32.mrf.mxu0  ;;  %v600_v53 = vpop.f32.mrf.mxu1 }
 0x12c   :  { %v623_v55 = vmax.f32 %v363_v45, %v616_v49  ;;  %v487_v58 = vmax.f32 %v476_v50, 0.0  ;;  %v610_v59 = vmax.f32 %v599_v51, 0.0 }
 0x12d   :  { %v478_v62 = vpop.f32.mrf.mxu0  ;;  %v601_v56 = vpop.f32.mrf.mxu1 }
 0x12e   :  { %v751_v57 = vpack.c.bf16 %v623_v55, %v622_v54  ;;  %v617_v2 = vmax.f32 %v487_v58, %v610_v59 }
 0x12f   :  { %v479_v60 = vpop.f32.mrf.mxu0  ;;  %v602_v3 = vpop.f32.mrf.mxu1 }
 0x130   :  { %754 = vst [vmem:[%s1145_s6 + $0x10] sm:$0xff] %v751_v57   ;;  %v624_v6 = vmax.f32 %v364_v63, %v617_v2 }
 0x132   :  { %v737_v61 = vpack.c.bf16 %v624_v6, %v624_v6 }
 0x134   :  { %660 = vst [vmem:[%s1145_s6 + $0x18] sm:$0x1] %v737_v61 }

// kernel: net_forward.3
= control target key start
LH: loop header
LB: loop body
LE: loop exit
PB: predicated region body
PF: predicated region fallthrough
CT: control target
= control target key end

     0   :  { %vm318_vm0 = vcmask 1044480   ;;  %vm319_vm1 = vcmask 1045504   ;;  %v4817_v0 = vmov 0.0   ;;  %v3705_v2 = vmov 65535   ;;  %s4810_s4 = inlined_call_operand.vmem [shape: bf16[75,128], index: 4, kind: input, shape index: {}]   ;;  %s4811_s0 = inlined_call_operand.vmem [shape: bf16[392,75], index: 0, kind: input, shape index: {}]   ;;  %s4812_s1 = inlined_call_operand.vmem [shape: bf16[392,75], index: 1, kind: input, shape index: {}]   ;;  %s4813_s2 = inlined_call_operand.vmem [shape: bf16[392,75], index: 2, kind: input, shape index: {}]   ;;  %s4814_s3 = inlined_call_operand.vmem [shape: bf16[392,75], index: 3, kind: input, shape index: {}]   ;;  %s4815_s5 = inlined_call_operand.vmem [shape: f32[1,128], index: 5, kind: input, shape index: {}]   ;;  %s4816_s6 = inlined_call_operand.vmem [shape: bf16[392,128], index: 6, kind: output, shape index: {}]  }
   0x1   :  { %3154 = vmatprep.subr.bf16.mxu0 %v4817_v0  ;;  %3264 = vmatprep.subr.bf16.mxu1 %v4817_v0  ;;  %v3597_v1 = vld [vmem:[%s4810_s4 + $0x20] sm:$0x3f]   ;;  %v320_v3 = vsel %vm318_vm0, 4294967295, %v3705_v2  ;;  %vm3706_vm2 = vmmov 0   ;;  %v3598_v6 = vld [vmem:[%s4810_s4 + $0x18] sm:$0xff]   ;;  %v3599_v7 = vld [vmem:[%s4810_s4 + $0x10] sm:$0xff]  }
   0x2   :  { %v321_v4 = vsel %vm319_vm1, %v320_v3, 0  ;;  %3164 = vmatprep.mubr.msk.bf16.mxu0 %vm3706_vm2, %v4817_v0  ;;  %3274 = vmatprep.mubr.msk.bf16.mxu1 %vm3706_vm2, %v4817_v0  ;;  %v3600_v8 = vld [vmem:[%s4810_s4 + $0x8] sm:$0xff]   ;;  %v3601_v9 = vld [vmem:[%s4810_s4] sm:$0xff]   ;;  %vm242_vm3 = vcmask 613376   ;;  %v3606_v14 = vld [vmem:[%s4811_s0 + $0x10] sm:$0xff]  }
   0x3   :  { %v323_v5 = vand.u32 %v3597_v1, %v321_v4  ;;  %v3602_v10 = vld [vmem:[%s4811_s0] sm:$0xff]   ;;  %v3604_v12 = vld [vmem:[%s4811_s0 + $0x8] sm:$0xff]   ;;  %v3607_v15 = vld [vmem:[%s4812_s1 + $0x10] sm:$0xff]  }
   0x4   :  { %v3603_v11 = vld [vmem:[%s4812_s1] sm:$0xff]   ;;  %v3605_v13 = vld [vmem:[%s4812_s1 + $0x8] sm:$0xff]   ;;  %v3608_v16 = vld [vmem:[%s4811_s0 + $0x18] sm:$0xff]  }
   0x5   :  { %3155 = vmatpush3.bf16.msra.mxu0 %v323_v5  ;;  %3265 = vmatpush3.bf16.msra.mxu1 %v323_v5  ;;  %v3609_v17 = vld [vmem:[%s4812_s1 + $0x18] sm:$0xff]   ;;  %v3610_v18 = vld [vmem:[%s4811_s0 + $0x20] sm:$0xff]   ;;  %v3612_v20 = vld [vmem:[%s4811_s0 + $0x28] sm:$0xff]  }
   0x6   :  { %3156 = vmatprep.subr.bf16.mxu0 %v4817_v0  ;;  %3266 = vmatprep.subr.bf16.mxu1 %v4817_v0  ;;  %v3611_v19 = vld [vmem:[%s4812_s1 + $0x20] sm:$0xff]   ;;  %v3613_v21 = vld [vmem:[%s4812_s1 + $0x28] sm:$0xff]   ;;  %v3614_v22 = vld [vmem:[%s4811_s0 + $0x30] sm:$0xff]  }
   0x7   :  { %v3615_v23 = vld [vmem:[%s4812_s1 + $0x30] sm:$0xff]   ;;  %v3616_v24 = vld [vmem:[%s4811_s0 + $0x38] sm:$0xff]   ;;  %v3618_v26 = vld [vmem:[%s4811_s0 + $0x40] sm:$0xff]  }
   0x8   :  { %v3617_v25 = vld [vmem:[%s4812_s1 + $0x38] sm:$0xff]   ;;  %v3619_v27 = vld [vmem:[%s4812_s1 + $0x40] sm:$0xff]   ;;  %v3620_v28 = vld [vmem:[%s4811_s0 + $0x48] sm:$0xff]  }
   0x9   :  { %3157 = vmatpush3.bf16.msra.mxu0 %v3598_v6  ;;  %3267 = vmatpush3.bf16.msra.mxu1 %v3598_v6  ;;  %v3621_v29 = vld [vmem:[%s4812_s1 + $0x48] sm:$0xff]   ;;  %v3622_v30 = vld [vmem:[%s4811_s0 + $0x50] sm:$0xff]   ;;  %v3624_v32 = vld [vmem:[%s4811_s0 + $0x58] sm:$0xff]  }
   0xa   :  { %3158 = vmatprep.subr.bf16.mxu0 %v4817_v0  ;;  %3268 = vmatprep.subr.bf16.mxu1 %v4817_v0  ;;  %v3623_v31 = vld [vmem:[%s4812_s1 + $0x50] sm:$0xff]   ;;  %v3625_v33 = vld [vmem:[%s4812_s1 + $0x58] sm:$0xff]   ;;  %v3626_v34 = vld [vmem:[%s4811_s0 + $0x60] sm:$0xff]  }
   0xb   :  { %v3627_v35 = vld [vmem:[%s4812_s1 + $0x60] sm:$0xff]   ;;  %v3628_v36 = vld [vmem:[%s4811_s0 + $0x68] sm:$0xff]   ;;  %v3630_v38 = vld [vmem:[%s4811_s0 + $0x70] sm:$0xff]  }
   0xc   :  { %v3629_v37 = vld [vmem:[%s4812_s1 + $0x68] sm:$0xff]   ;;  %v3631_v39 = vld [vmem:[%s4812_s1 + $0x70] sm:$0xff]   ;;  %v3632_v40 = vld [vmem:[%s4811_s0 + $0x78] sm:$0xff]  }
   0xd   :  { %3159 = vmatpush3.bf16.msra.mxu0 %v3599_v7  ;;  %3269 = vmatpush3.bf16.msra.mxu1 %v3599_v7  ;;  %v3633_v41 = vld [vmem:[%s4812_s1 + $0x78] sm:$0xff]   ;;  %v3634_v42 = vld [vmem:[%s4811_s0 + $0x80] sm:$0xff]   ;;  %v3636_v44 = vld [vmem:[%s4811_s0 + $0x88] sm:$0xff]  }
   0xe   :  { %3160 = vmatprep.subr.bf16.mxu0 %v4817_v0  ;;  %3270 = vmatprep.subr.bf16.mxu1 %v4817_v0  ;;  %v3635_v43 = vld [vmem:[%s4812_s1 + $0x80] sm:$0xff]   ;;  %v3637_v45 = vld [vmem:[%s4812_s1 + $0x88] sm:$0xff]   ;;  %v3638_v46 = vld [vmem:[%s4811_s0 + $0x90] sm:$0xff]  }
   0xf   :  { %v3639_v47 = vld [vmem:[%s4812_s1 + $0x90] sm:$0xff]   ;;  %v3640_v48 = vld [vmem:[%s4811_s0 + $0x98] sm:$0xff]   ;;  %v3642_v50 = vld [vmem:[%s4811_s0 + $0xa0] sm:$0xff]  }
  0x10   :  { %v3641_v49 = vld [vmem:[%s4812_s1 + $0x98] sm:$0xff]   ;;  %v3643_v51 = vld [vmem:[%s4812_s1 + $0xa0] sm:$0xff]   ;;  %v3644_v52 = vld [vmem:[%s4811_s0 + $0xa8] sm:$0xff]  }
  0x11   :  { %3161 = vmatpush3.bf16.msra.mxu0 %v3600_v8  ;;  %3271 = vmatpush3.bf16.msra.mxu1 %v3600_v8  ;;  %v3645_v53 = vld [vmem:[%s4812_s1 + $0xa8] sm:$0xff]   ;;  %v3646_v54 = vld [vmem:[%s4811_s0 + $0xb0] sm:$0xff]   ;;  %v3648_v56 = vld [vmem:[%s4811_s0 + $0xb8] sm:$0xff]  }
  0x12   :  { %3162 = vmatprep.subr.bf16.mxu0 %v4817_v0  ;;  %3272 = vmatprep.subr.bf16.mxu1 %v4817_v0  ;;  %v3647_v55 = vld [vmem:[%s4812_s1 + $0xb0] sm:$0xff]   ;;  %v3649_v57 = vld [vmem:[%s4812_s1 + $0xb8] sm:$0xff]   ;;  %v3650_v58 = vld [vmem:[%s4811_s0 + $0xc0] ss:$0 sps:$4 sm:$0xff]  }
  0x13   :  { %v3651_v59 = vld [vmem:[%s4812_s1 + $0xc0] ss:$0 sps:$4 sm:$0xff]  }
  0x14   :  { %v4078_v60 = vld [vmem:[%s4815_s5] ss:$0 sm:$0xff] }
  0x15   :  { %3163 = vmatpush3.bf16.msra.mxu0 %v3601_v9  ;;  %3273 = vmatpush3.bf16.msra.mxu1 %v3601_v9 }
  0x16   :  { %3374 = vmatprep.subr.bf16.mxu0 %v4817_v0  ;;  %3484 = vmatprep.subr.bf16.mxu1 %v4817_v0 }
  0x18   :  { %3165 = vmatmul.mubr.msk.bf16.vlgmr.msra.gmra.mxu0 %vm242_vm3, %v3602_v10  ;;  %3275 = vmatmul.mubr.msk.bf16.vlgmr.msra.gmra.mxu1 %vm242_vm3, %v3603_v11 }
  0x19   :  { %3375 = vmatpush3.bf16.msra.mxu0 %v323_v5  ;;  %3485 = vmatpush3.bf16.msra.mxu1 %v323_v5 }
  0x1a   :  { %3168 = vmatprep.mubr.msk.bf16.mxu0 %vm3706_vm2, %v4817_v0  ;;  %3278 = vmatprep.mubr.msk.bf16.mxu1 %vm3706_vm2, %v4817_v0 }
  0x1b   :  { %3376 = vmatprep.subr.bf16.mxu0 %v4817_v0  ;;  %3486 = vmatprep.subr.bf16.mxu1 %v4817_v0 }
  0x1d   :  { %3377 = vmatpush3.bf16.msra.mxu0 %v3598_v6  ;;  %3487 = vmatpush3.bf16.msra.mxu1 %v3598_v6 }
  0x1e   :  { %3378 = vmatprep.subr.bf16.mxu0 %v4817_v0  ;;  %3488 = vmatprep.subr.bf16.mxu1 %v4817_v0 }
  0x20   :  { %3169 = vmatmul.mubr.msk.bf16.gmra.mxu0 %vm242_vm3, %v3604_v12  ;;  %3279 = vmatmul.mubr.msk.bf16.gmra.mxu1 %vm242_vm3, %v3605_v13 }
  0x21   :  { %3172 = vmatprep.mubr.msk.bf16.mxu0 %vm3706_vm2, %v4817_v0  ;;  %3282 = vmatprep.mubr.msk.bf16.mxu1 %vm3706_vm2, %v4817_v0 }
  0x22   :  { %3379 = vmatpush3.bf16.msra.mxu0 %v3599_v7  ;;  %3489 = vmatpush3.bf16.msra.mxu1 %v3599_v7 }
  0x23   :  { %3380 = vmatprep.subr.bf16.mxu0 %v4817_v0  ;;  %3490 = vmatprep.subr.bf16.mxu1 %v4817_v0 }
  0x26   :  { %3381 = vmatpush3.bf16.msra.mxu0 %v3600_v8  ;;  %3491 = vmatpush3.bf16.msra.mxu1 %v3600_v8  ;;  %v3652_v8 = vld [vmem:[%s4813_s2] sm:$0xff]  }
  0x27   :  { %3382 = vmatprep.subr.bf16.mxu0 %v4817_v0  ;;  %3492 = vmatprep.subr.bf16.mxu1 %v4817_v0 }
  0x28   :  { %3173 = vmatmul.mubr.msk.bf16.gmra.mxu0 %vm242_vm3, %v3606_v14  ;;  %3283 = vmatmul.mubr.msk.bf16.gmra.mxu1 %vm242_vm3, %v3607_v15 }
  0x29   :  { %3176 = vmatprep.mubr.msk.bf16.mxu0 %vm3706_vm2, %v4817_v0  ;;  %3286 = vmatprep.mubr.msk.bf16.mxu1 %vm3706_vm2, %v4817_v0 }
  0x2a   :  { %3383 = vmatpush3.bf16.msra.mxu0 %v3601_v9  ;;  %3493 = vmatpush3.bf16.msra.mxu1 %v3601_v9  ;;  %v3653_v9 = vld [vmem:[%s4814_s3] sm:$0xff]  }
  0x30   :  { %3177 = vmatmul.mubr.msk.bf16.gmra.mxu0 %vm242_vm3, %v3608_v16  ;;  %3287 = vmatmul.mubr.msk.bf16.gmra.mxu1 %vm242_vm3, %v3609_v17 }
  0x31   :  { %3180 = vmatprep.mubr.msk.bf16.mxu0 %vm3706_vm2, %v4817_v0  ;;  %3290 = vmatprep.mubr.msk.bf16.mxu1 %vm3706_vm2, %v4817_v0 }
  0x38   :  { %3181 = vmatmul.mubr.msk.bf16.gmra.mxu0 %vm242_vm3, %v3610_v18  ;;  %3291 = vmatmul.mubr.msk.bf16.gmra.mxu1 %vm242_vm3, %v3611_v19 }
  0x39   :  { %3184 = vmatprep.mubr.msk.bf16.mxu0 %vm3706_vm2, %v4817_v0  ;;  %3294 = vmatprep.mubr.msk.bf16.mxu1 %vm3706_vm2, %v4817_v0 }
  0x40   :  { %3185 = vmatmul.mubr.msk.bf16.gmra.mxu0 %vm242_vm3, %v3612_v20  ;;  %3295 = vmatmul.mubr.msk.bf16.gmra.mxu1 %vm242_vm3, %v3613_v21 }
  0x41   :  { %3188 = vmatprep.mubr.msk.bf16.mxu0 %vm3706_vm2, %v4817_v0  ;;  %3298 = vmatprep.mubr.msk.bf16.mxu1 %vm3706_vm2, %v4817_v0 }
  0x48   :  { %3189 = vmatmul.mubr.msk.bf16.gmra.mxu0 %vm242_vm3, %v3614_v22  ;;  %3299 = vmatmul.mubr.msk.bf16.gmra.mxu1 %vm242_vm3, %v3615_v23 }
  0x49   :  { %3192 = vmatprep.mubr.msk.bf16.mxu0 %vm3706_vm2, %v4817_v0  ;;  %3302 = vmatprep.mubr.msk.bf16.mxu1 %vm3706_vm2, %v4817_v0 }
  0x50   :  { %3193 = vmatmul.mubr.msk.bf16.gmra.mxu0 %vm242_vm3, %v3616_v24  ;;  %3303 = vmatmul.mubr.msk.bf16.gmra.mxu1 %vm242_vm3, %v3617_v25 }
  0x51   :  { %3196 = vmatprep.mubr.msk.bf16.mxu0 %vm3706_vm2, %v4817_v0  ;;  %3306 = vmatprep.mubr.msk.bf16.mxu1 %vm3706_vm2, %v4817_v0 }
  0x58   :  { %3197 = vmatmul.mubr.msk.bf16.gmra.mxu0 %vm242_vm3, %v3618_v26  ;;  %3307 = vmatmul.mubr.msk.bf16.gmra.mxu1 %vm242_vm3, %v3619_v27 }
  0x59   :  { %3200 = vmatprep.mubr.msk.bf16.mxu0 %vm3706_vm2, %v4817_v0  ;;  %3310 = vmatprep.mubr.msk.bf16.mxu1 %vm3706_vm2, %v4817_v0 }
  0x60   :  { %3201 = vmatmul.mubr.msk.bf16.gmra.mxu0 %vm242_vm3, %v3620_v28  ;;  %3311 = vmatmul.mubr.msk.bf16.gmra.mxu1 %vm242_vm3, %v3621_v29  ;;  %v3654_v28 = vld [vmem:[%s4813_s2 + $0x8] sm:$0xff]  }
  0x61   :  { %3204 = vmatprep.mubr.msk.bf16.mxu0 %vm3706_vm2, %v4817_v0  ;;  %3314 = vmatprep.mubr.msk.bf16.mxu1 %vm3706_vm2, %v4817_v0  ;;  %v3655_v29 = vld [vmem:[%s4814_s3 + $0x8] sm:$0xff]  }
  0x68   :  { %3205 = vmatmul.mubr.msk.bf16.gmra.mxu0 %vm242_vm3, %v3622_v30  ;;  %3315 = vmatmul.mubr.msk.bf16.gmra.mxu1 %vm242_vm3, %v3623_v31 }
  0x69   :  { %3208 = vmatprep.mubr.msk.bf16.mxu0 %vm3706_vm2, %v4817_v0  ;;  %3318 = vmatprep.mubr.msk.bf16.mxu1 %vm3706_vm2, %v4817_v0 }
  0x70   :  { %3209 = vmatmul.mubr.msk.bf16.gmra.mxu0 %vm242_vm3, %v3624_v32  ;;  %3319 = vmatmul.mubr.msk.bf16.gmra.mxu1 %vm242_vm3, %v3625_v33 }
  0x71   :  { %3212 = vmatprep.mubr.msk.bf16.mxu0 %vm3706_vm2, %v4817_v0  ;;  %3322 = vmatprep.mubr.msk.bf16.mxu1 %vm3706_vm2, %v4817_v0 }
  0x78   :  { %3213 = vmatmul.mubr.msk.bf16.gmra.mxu0 %vm242_vm3, %v3626_v34  ;;  %3323 = vmatmul.mubr.msk.bf16.gmra.mxu1 %vm242_vm3, %v3627_v35 }
  0x79   :  { %3216 = vmatprep.mubr.msk.bf16.mxu0 %vm3706_vm2, %v4817_v0  ;;  %3326 = vmatprep.mubr.msk.bf16.mxu1 %vm3706_vm2, %v4817_v0 }
  0x80   :  { %3217 = vmatmul.mubr.msk.bf16.gmra.mxu0 %vm242_vm3, %v3628_v36  ;;  %3327 = vmatmul.mubr.msk.bf16.gmra.mxu1 %vm242_vm3, %v3629_v37 }
  0x81   :  { %3220 = vmatprep.mubr.msk.bf16.mxu0 %vm3706_vm2, %v4817_v0  ;;  %3330 = vmatprep.mubr.msk.bf16.mxu1 %vm3706_vm2, %v4817_v0 }
  0x88   :  { %3221 = vmatmul.mubr.msk.bf16.gmra.mxu0 %vm242_vm3, %v3630_v38  ;;  %3331 = vmatmul.mubr.msk.bf16.gmra.mxu1 %vm242_vm3, %v3631_v39 }
  0x89   :  { %3224 = vmatprep.mubr.msk.bf16.mxu0 %vm3706_vm2, %v4817_v0  ;;  %3334 = vmatprep.mubr.msk.bf16.mxu1 %vm3706_vm2, %v4817_v0 }
  0x90   :  { %3225 = vmatmul.mubr.msk.bf16.gmra.mxu0 %vm242_vm3, %v3632_v40  ;;  %3335 = vmatmul.mubr.msk.bf16.gmra.mxu1 %vm242_vm3, %v3633_v41 }
  0x91   :  { %3228 = vmatprep.mubr.msk.bf16.mxu0 %vm3706_vm2, %v4817_v0  ;;  %3338 = vmatprep.mubr.msk.bf16.mxu1 %vm3706_vm2, %v4817_v0 }
  0x98   :  { %3229 = vmatmul.mubr.msk.bf16.gmra.mxu0 %vm242_vm3, %v3634_v42  ;;  %3339 = vmatmul.mubr.msk.bf16.gmra.mxu1 %vm242_vm3, %v3635_v43 }
  0x99   :  { %3232 = vmatprep.mubr.msk.bf16.mxu0 %vm3706_vm2, %v4817_v0  ;;  %3342 = vmatprep.mubr.msk.bf16.mxu1 %vm3706_vm2, %v4817_v0 }
  0xa0   :  { %3233 = vmatmul.mubr.msk.bf16.gmra.mxu0 %vm242_vm3, %v3636_v44  ;;  %3343 = vmatmul.mubr.msk.bf16.gmra.mxu1 %vm242_vm3, %v3637_v45 }
  0xa1   :  { %3236 = vmatprep.mubr.msk.bf16.mxu0 %vm3706_vm2, %v4817_v0  ;;  %3346 = vmatprep.mubr.msk.bf16.mxu1 %vm3706_vm2, %v4817_v0 }
  0xa8   :  { %3237 = vmatmul.mubr.msk.bf16.gmra.mxu0 %vm242_vm3, %v3638_v46  ;;  %3347 = vmatmul.mubr.msk.bf16.gmra.mxu1 %vm242_vm3, %v3639_v47 }
  0xa9   :  { %3240 = vmatprep.mubr.msk.bf16.mxu0 %vm3706_vm2, %v4817_v0  ;;  %3350 = vmatprep.mubr.msk.bf16.mxu1 %vm3706_vm2, %v4817_v0 }
  0xb0   :  { %3241 = vmatmul.mubr.msk.bf16.gmra.mxu0 %vm242_vm3, %v3640_v48  ;;  %3351 = vmatmul.mubr.msk.bf16.gmra.mxu1 %vm242_vm3, %v3641_v49  ;;  %v3656_v48 = vld [vmem:[%s4813_s2 + $0x10] sm:$0xff]  }
  0xb1   :  { %3244 = vmatprep.mubr.msk.bf16.mxu0 %vm3706_vm2, %v4817_v0  ;;  %3354 = vmatprep.mubr.msk.bf16.mxu1 %vm3706_vm2, %v4817_v0  ;;  %v3657_v49 = vld [vmem:[%s4814_s3 + $0x10] sm:$0xff]  }
  0xb8   :  { %3245 = vmatmul.mubr.msk.bf16.gmra.mxu0 %vm242_vm3, %v3642_v50  ;;  %3355 = vmatmul.mubr.msk.bf16.gmra.mxu1 %vm242_vm3, %v3643_v51 }
  0xb9   :  { %3248 = vmatprep.mubr.msk.bf16.mxu0 %vm3706_vm2, %v4817_v0  ;;  %3358 = vmatprep.mubr.msk.bf16.mxu1 %vm3706_vm2, %v4817_v0 }
  0xc0   :  { %3249 = vmatmul.mubr.msk.bf16.gmra.mxu0 %vm242_vm3, %v3644_v52  ;;  %3359 = vmatmul.mubr.msk.bf16.gmra.mxu1 %vm242_vm3, %v3645_v53 }
  0xc1   :  { %3252 = vmatprep.mubr.msk.bf16.mxu0 %vm3706_vm2, %v4817_v0  ;;  %3362 = vmatprep.mubr.msk.bf16.mxu1 %vm3706_vm2, %v4817_v0 }
  0xc8   :  { %3253 = vmatmul.mubr.msk.bf16.gmra.mxu0 %vm242_vm3, %v3646_v54  ;;  %3363 = vmatmul.mubr.msk.bf16.gmra.mxu1 %vm242_vm3, %v3647_v55 }
  0xc9   :  { %3256 = vmatprep.mubr.msk.bf16.mxu0 %vm3706_vm2, %v4817_v0  ;;  %3366 = vmatprep.mubr.msk.bf16.mxu1 %vm3706_vm2, %v4817_v0 }
  0xd0   :  { %3257 = vmatmul.mubr.msk.bf16.gmra.mxu0 %vm242_vm3, %v3648_v56  ;;  %3367 = vmatmul.mubr.msk.bf16.gmra.mxu1 %vm242_vm3, %v3649_v57 }
  0xd1   :  { %3260 = vmatprep.mubr.msk.bf16.mxu0 %vm3706_vm2, %v4817_v0  ;;  %3370 = vmatprep.mubr.msk.bf16.mxu1 %vm3706_vm2, %v4817_v0 }
  0xd8   :  { %v359_v61 = vpop.f32.mrf.mxu0  ;;  %3261 = vmatmul.mubr.msk.bf16.gmra.mxu0 %vm242_vm3, %v3650_v58  ;;  %v887_v62 = vpop.f32.mrf.mxu1  ;;  %3371 = vmatmul.mubr.msk.bf16.gmra.mxu1 %vm242_vm3, %v3651_v59 }
  0xd9   :  { %v360_v63 = vadd.f32 %v4078_v60, %v359_v61  ;;  %v888_v1 = vadd.f32 %v4078_v60, %v887_v62  ;;  %3384 = vmatprep.mubr.msk.bf16.mxu0 %vm3706_vm2, %v4817_v0  ;;  %3494 = vmatprep.mubr.msk.bf16.mxu1 %vm3706_vm2, %v4817_v0 }
  0xda   :  { %v3166_v2 = vpop.f32.mrf.mxu0  ;;  %v3276_v3 = vpop.f32.mrf.mxu1 }
  0xdb   :  { %v557_v4 = vmax.f32 %v360_v63, 0.0  ;;  %v1085_v5 = vmax.f32 %v888_v1, 0.0 }
  0xdc   :  { %v362_v6 = vpop.f32.mrf.mxu0  ;;  %v890_v7 = vpop.f32.mrf.mxu1 }
  0xdd   :  { %v4094_v10 = vmax.f32 %v557_v4, %v1085_v5  ;;  %v363_v11 = vadd.f32 %v4078_v60, %v362_v6  ;;  %v891_v12 = vadd.f32 %v4078_v60, %v890_v7  ;;  %v3658_v6 = vld [vmem:[%s4813_s2 + $0x18] sm:$0xff]  }
  0xde   :  { %v3167_v13 = vpop.f32.mrf.mxu0  ;;  %v3277_v14 = vpop.f32.mrf.mxu1  ;;  %v3659_v7 = vld [vmem:[%s4814_s3 + $0x18] sm:$0xff]  }
  0xdf   :  { %v558_v15 = vmax.f32 %v363_v11, 0.0  ;;  %v1086_v16 = vmax.f32 %v891_v12, 0.0 }
  0xe0   :  { %v367_v17 = vpop.f32.mrf.mxu0  ;;  %v895_v18 = vpop.f32.mrf.mxu1  ;;  %3385 = vmatmul.mubr.msk.bf16.vlgmr.msra.gmra.mxu0 %vm242_vm3, %v3652_v8  ;;  %3495 = vmatmul.mubr.msk.bf16.vlgmr.msra.gmra.mxu1 %vm242_vm3, %v3653_v9 }
  0xe1   :  { %v4100_v19 = vmax.f32 %v558_v15, %v1086_v16  ;;  %v368_v20 = vadd.f32 %v4078_v60, %v367_v17  ;;  %v896_v21 = vadd.f32 %v4078_v60, %v895_v18  ;;  %3388 = vmatprep.mubr.msk.bf16.mxu0 %vm3706_vm2, %v4817_v0  ;;  %3498 = vmatprep.mubr.msk.bf16.mxu1 %vm3706_vm2, %v4817_v0 }
  0xe2   :  { %v3170_v22 = vpop.f32.mrf.mxu0  ;;  %v3280_v23 = vpop.f32.mrf.mxu1 }
  0xe3   :  { %v559_v24 = vmax.f32 %v368_v20, 0.0  ;;  %v1087_v25 = vmax.f32 %v896_v21, 0.0 }
  0xe4   :  { %v370_v26 = vpop.f32.mrf.mxu0  ;;  %v898_v27 = vpop.f32.mrf.mxu1 }
  0xe5   :  { %v4114_v30 = vmax.f32 %v559_v24, %v1087_v25  ;;  %v371_v31 = vadd.f32 %v4078_v60, %v370_v26  ;;  %v899_v32 = vadd.f32 %v4078_v60, %v898_v27 }
  0xe6   :  { %v3171_v33 = vpop.f32.mrf.mxu0  ;;  %v3281_v34 = vpop.f32.mrf.mxu1 }
  0xe7   :  { %v560_v35 = vmax.f32 %v371_v31, 0.0  ;;  %v1088_v36 = vmax.f32 %v899_v32, 0.0 }
  0xe8   :  { %v375_v37 = vpop.f32.mrf.mxu0  ;;  %v903_v38 = vpop.f32.mrf.mxu1  ;;  %3389 = vmatmul.mubr.msk.bf16.gmra.mxu0 %vm242_vm3, %v3654_v28  ;;  %3499 = vmatmul.mubr.msk.bf16.gmra.mxu1 %vm242_vm3, %v3655_v29  ;;  %v3660_v28 = vld [vmem:[%s4813_s2 + $0x20] sm:$0xff]  }
  0xe9   :  { %v4120_v39 = vmax.f32 %v560_v35, %v1088_v36  ;;  %v376_v40 = vadd.f32 %v4078_v60, %v375_v37  ;;  %v904_v41 = vadd.f32 %v4078_v60, %v903_v38  ;;  %3392 = vmatprep.mubr.msk.bf16.mxu0 %vm3706_vm2, %v4817_v0  ;;  %3502 = vmatprep.mubr.msk.bf16.mxu1 %vm3706_vm2, %v4817_v0  ;;  %v3661_v29 = vld [vmem:[%s4814_s3 + $0x20] sm:$0xff]  }
  0xea   :  { %v3174_v42 = vpop.f32.mrf.mxu0  ;;  %v3284_v43 = vpop.f32.mrf.mxu1 }
  0xeb   :  { %v561_v44 = vmax.f32 %v376_v40, 0.0  ;;  %v1089_v45 = vmax.f32 %v904_v41, 0.0 }
  0xec   :  { %v378_v46 = vpop.f32.mrf.mxu0  ;;  %v906_v47 = vpop.f32.mrf.mxu1 }
  0xed   :  { %v4134_v50 = vmax.f32 %v561_v44, %v1089_v45  ;;  %v379_v51 = vadd.f32 %v4078_v60, %v378_v46  ;;  %v907_v52 = vadd.f32 %v4078_v60, %v906_v47 }
  0xee   :  { %v3175_v53 = vpop.f32.mrf.mxu0  ;;  %v3285_v54 = vpop.f32.mrf.mxu1 }
  0xef   :  { %v562_v55 = vmax.f32 %v379_v51, 0.0  ;;  %v1090_v56 = vmax.f32 %v907_v52, 0.0  ;;  %v3662_v51 = vld [vmem:[%s4813_s2 + $0x28] sm:$0xff]  }
  0xf0   :  { %v383_v57 = vpop.f32.mrf.mxu0  ;;  %v911_v58 = vpop.f32.mrf.mxu1  ;;  %3393 = vmatmul.mubr.msk.bf16.gmra.mxu0 %vm242_vm3, %v3656_v48  ;;  %3503 = vmatmul.mubr.msk.bf16.gmra.mxu1 %vm242_vm3, %v3657_v49  ;;  %v3663_v52 = vld [vmem:[%s4814_s3 + $0x28] sm:$0xff]  }
  0xf1   :  { %v4140_v59 = vmax.f32 %v562_v55, %v1090_v56  ;;  %v384_v61 = vadd.f32 %v4078_v60, %v383_v57  ;;  %v912_v62 = vadd.f32 %v4078_v60, %v911_v58  ;;  %3396 = vmatprep.mubr.msk.bf16.mxu0 %vm3706_vm2, %v4817_v0  ;;  %3506 = vmatprep.mubr.msk.bf16.mxu1 %vm3706_vm2, %v4817_v0 }
  0xf2   :  { %v3178_v63 = vpop.f32.mrf.mxu0  ;;  %v3288_v1 = vpop.f32.mrf.mxu1 }
  0xf3   :  { %v563_v2 = vmax.f32 %v384_v61, 0.0  ;;  %v1091_v3 = vmax.f32 %v912_v62, 0.0 }
  0xf4   :  { %v386_v4 = vpop.f32.mrf.mxu0  ;;  %v914_v5 = vpop.f32.mrf.mxu1 }
  0xf5   :  { %v4154_v8 = vmax.f32 %v563_v2, %v1091_v3  ;;  %v387_v9 = vadd.f32 %v4078_v60, %v386_v4  ;;  %v915_v11 = vadd.f32 %v4078_v60, %v914_v5 }
  0xf6   :  { %v3179_v12 = vpop.f32.mrf.mxu0  ;;  %v3289_v13 = vpop.f32.mrf.mxu1 }
  0xf7   :  { %v564_v14 = vmax.f32 %v387_v9, 0.0  ;;  %v1092_v15 = vmax.f32 %v915_v11, 0.0  ;;  %v3664_v12 = vld [vmem:[%s4813_s2 + $0x30] sm:$0xff]  }
  0xf8   :  { %v391_v16 = vpop.f32.mrf.mxu0  ;;  %v919_v17 = vpop.f32.mrf.mxu1  ;;  %3397 = vmatmul.mubr.msk.bf16.gmra.mxu0 %vm242_vm3, %v3658_v6  ;;  %3507 = vmatmul.mubr.msk.bf16.gmra.mxu1 %vm242_vm3, %v3659_v7  ;;  %v3665_v13 = vld [vmem:[%s4814_s3 + $0x30] sm:$0xff]  }
  0xf9   :  { %v4160_v18 = vmax.f32 %v564_v14, %v1092_v15  ;;  %v392_v20 = vadd.f32 %v4078_v60, %v391_v16  ;;  %v920_v21 = vadd.f32 %v4078_v60, %v919_v17  ;;  %3400 = vmatprep.mubr.msk.bf16.mxu0 %vm3706_vm2, %v4817_v0  ;;  %3510 = vmatprep.mubr.msk.bf16.mxu1 %vm3706_vm2, %v4817_v0 }
  0xfa   :  { %v3182_v22 = vpop.f32.mrf.mxu0  ;;  %v3292_v23 = vpop.f32.mrf.mxu1 }
  0xfb   :  { %v565_v24 = vmax.f32 %v392_v20, 0.0  ;;  %v1093_v25 = vmax.f32 %v920_v21, 0.0 }
  0xfc   :  { %v394_v26 = vpop.f32.mrf.mxu0  ;;  %v922_v27 = vpop.f32.mrf.mxu1 }
  0xfd   :  { %v4174_v31 = vmax.f32 %v565_v24, %v1093_v25  ;;  %v395_v32 = vadd.f32 %v4078_v60, %v394_v26  ;;  %v923_v33 = vadd.f32 %v4078_v60, %v922_v27 }
  0xfe   :  { %v3183_v34 = vpop.f32.mrf.mxu0  ;;  %v3293_v35 = vpop.f32.mrf.mxu1 }
  0xff   :  { %v566_v36 = vmax.f32 %v395_v32, 0.0  ;;  %v1094_v37 = vmax.f32 %v923_v33, 0.0 }
 0x100   :  { %v399_v38 = vpop.f32.mrf.mxu0  ;;  %v927_v40 = vpop.f32.mrf.mxu1  ;;  %3401 = vmatmul.mubr.msk.bf16.gmra.mxu0 %vm242_vm3, %v3660_v28  ;;  %3511 = vmatmul.mubr.msk.bf16.gmra.mxu1 %vm242_vm3, %v3661_v29 }
 0x101   :  { %v4180_v41 = vmax.f32 %v566_v36, %v1094_v37  ;;  %v400_v42 = vadd.f32 %v4078_v60, %v399_v38  ;;  %v928_v43 = vadd.f32 %v4078_v60, %v927_v40  ;;  %3404 = vmatprep.mubr.msk.bf16.mxu0 %vm3706_vm2, %v4817_v0  ;;  %3514 = vmatprep.mubr.msk.bf16.mxu1 %vm3706_vm2, %v4817_v0  ;;  %v3666_v36 = vld [vmem:[%s4813_s2 + $0x38] sm:$0xff]  }
 0x102   :  { %v3186_v44 = vpop.f32.mrf.mxu0  ;;  %v3296_v45 = vpop.f32.mrf.mxu1  ;;  %v3667_v37 = vld [vmem:[%s4814_s3 + $0x38] sm:$0xff]  }
 0x103   :  { %v567_v46 = vmax.f32 %v400_v42, 0.0  ;;  %v1095_v47 = vmax.f32 %v928_v43, 0.0 }
 0x104   :  { %v402_v48 = vpop.f32.mrf.mxu0  ;;  %v930_v49 = vpop.f32.mrf.mxu1 }
 0x105   :  { %v4194_v53 = vmax.f32 %v567_v46, %v1095_v47  ;;  %v403_v54 = vadd.f32 %v4078_v60, %v402_v48  ;;  %v931_v55 = vadd.f32 %v4078_v60, %v930_v49 }
 0x106   :  { %v3187_v56 = vpop.f32.mrf.mxu0  ;;  %v3297_v57 = vpop.f32.mrf.mxu1 }
 0x107   :  { %v568_v58 = vmax.f32 %v403_v54, 0.0  ;;  %v1096_v61 = vmax.f32 %v931_v55, 0.0 }
 0x108   :  { %v407_v62 = vpop.f32.mrf.mxu0  ;;  %v935_v63 = vpop.f32.mrf.mxu1  ;;  %3405 = vmatmul.mubr.msk.bf16.gmra.mxu0 %vm242_vm3, %v3662_v51  ;;  %3515 = vmatmul.mubr.msk.bf16.gmra.mxu1 %vm242_vm3, %v3663_v52 }
 0x109   :  { %v4200_v1 = vmax.f32 %v568_v58, %v1096_v61  ;;  %v408_v2 = vadd.f32 %v4078_v60, %v407_v62  ;;  %v936_v3 = vadd.f32 %v4078_v60, %v935_v63  ;;  %3408 = vmatprep.mubr.msk.bf16.mxu0 %vm3706_vm2, %v4817_v0  ;;  %3518 = vmatprep.mubr.msk.bf16.mxu1 %vm3706_vm2, %v4817_v0  ;;  %v3668_v62 = vld [vmem:[%s4813_s2 + $0x40] sm:$0xff]  }
 0x10a   :  { %v3190_v4 = vpop.f32.mrf.mxu0  ;;  %v3300_v5 = vpop.f32.mrf.mxu1  ;;  %v3669_v63 = vld [vmem:[%s4814_s3 + $0x40] sm:$0xff]  }
 0x10b   :  { %v569_v6 = vmax.f32 %v408_v2, 0.0  ;;  %v1097_v7 = vmax.f32 %v936_v3, 0.0 }
 0x10c   :  { %v410_v9 = vpop.f32.mrf.mxu0  ;;  %v938_v11 = vpop.f32.mrf.mxu1 }
 0x10d   :  { %v4214_v14 = vmax.f32 %v569_v6, %v1097_v7  ;;  %v411_v15 = vadd.f32 %v4078_v60, %v410_v9  ;;  %v939_v16 = vadd.f32 %v4078_v60, %v938_v11 }
 0x10e   :  { %v3191_v17 = vpop.f32.mrf.mxu0  ;;  %v3301_v20 = vpop.f32.mrf.mxu1 }
 0x10f   :  { %v570_v21 = vmax.f32 %v411_v15, 0.0  ;;  %v1098_v22 = vmax.f32 %v939_v16, 0.0 }
 0x110   :  { %v415_v23 = vpop.f32.mrf.mxu0  ;;  %v943_v24 = vpop.f32.mrf.mxu1  ;;  %3409 = vmatmul.mubr.msk.bf16.gmra.mxu0 %vm242_vm3, %v3664_v12  ;;  %3519 = vmatmul.mubr.msk.bf16.gmra.mxu1 %vm242_vm3, %v3665_v13 }
 0x111   :  { %v4220_v25 = vmax.f32 %v570_v21, %v1098_v22  ;;  %v416_v26 = vadd.f32 %v4078_v60, %v415_v23  ;;  %v944_v27 = vadd.f32 %v4078_v60, %v943_v24  ;;  %3412 = vmatprep.mubr.msk.bf16.mxu0 %vm3706_vm2, %v4817_v0  ;;  %3522 = vmatprep.mubr.msk.bf16.mxu1 %vm3706_vm2, %v4817_v0 }
 0x112   :  { %v3194_v28 = vpop.f32.mrf.mxu0  ;;  %v3304_v29 = vpop.f32.mrf.mxu1 }
 0x113   :  { %v571_v32 = vmax.f32 %v416_v26, 0.0  ;;  %v1099_v33 = vmax.f32 %v944_v27, 0.0  ;;  %v3670_v26 = vld [vmem:[%s4813_s2 + $0x48] sm:$0xff]  }
 0x114   :  { %v418_v34 = vpop.f32.mrf.mxu0  ;;  %v946_v35 = vpop.f32.mrf.mxu1  ;;  %v3671_v27 = vld [vmem:[%s4814_s3 + $0x48] sm:$0xff]  }
 0x115   :  { %v4234_v38 = vmax.f32 %v571_v32, %v1099_v33  ;;  %v419_v40 = vadd.f32 %v4078_v60, %v418_v34  ;;  %v947_v42 = vadd.f32 %v4078_v60, %v946_v35 }
 0x116   :  { %v3195_v43 = vpop.f32.mrf.mxu0  ;;  %v3305_v44 = vpop.f32.mrf.mxu1 }
 0x117   :  { %v572_v45 = vmax.f32 %v419_v40, 0.0  ;;  %v1100_v46 = vmax.f32 %v947_v42, 0.0 }
 0x118   :  { %v423_v47 = vpop.f32.mrf.mxu0  ;;  %v951_v48 = vpop.f32.mrf.mxu1  ;;  %3413 = vmatmul.mubr.msk.bf16.gmra.mxu0 %vm242_vm3, %v3666_v36  ;;  %3523 = vmatmul.mubr.msk.bf16.gmra.mxu1 %vm242_vm3, %v3667_v37 }
 0x119   :  { %v4240_v49 = vmax.f32 %v572_v45, %v1100_v46  ;;  %v424_v51 = vadd.f32 %v4078_v60, %v423_v47  ;;  %v952_v52 = vadd.f32 %v4078_v60, %v951_v48  ;;  %3416 = vmatprep.mubr.msk.bf16.mxu0 %vm3706_vm2, %v4817_v0  ;;  %3526 = vmatprep.mubr.msk.bf16.mxu1 %vm3706_vm2, %v4817_v0 }
 0x11a   :  { %v3198_v54 = vpop.f32.mrf.mxu0  ;;  %v3308_v55 = vpop.f32.mrf.mxu1 }
 0x11b   :  { %v573_v56 = vmax.f32 %v424_v51, 0.0  ;;  %v1101_v57 = vmax.f32 %v952_v52, 0.0  ;;  %v3672_v54 = vld [vmem:[%s4813_s2 + $0x50] sm:$0xff]  }
 0x11c   :  { %v426_v58 = vpop.f32.mrf.mxu0  ;;  %v954_v61 = vpop.f32.mrf.mxu1  ;;  %v3673_v55 = vld [vmem:[%s4814_s3 + $0x50] sm:$0xff]  }
 0x11d   :  { %v4254_v2 = vmax.f32 %v573_v56, %v1101_v57  ;;  %v427_v3 = vadd.f32 %v4078_v60, %v426_v58  ;;  %v955_v4 = vadd.f32 %v4078_v60, %v954_v61 }
 0x11e   :  { %v3199_v5 = vpop.f32.mrf.mxu0  ;;  %v3309_v6 = vpop.f32.mrf.mxu1 }
 0x11f   :  { %v574_v7 = vmax.f32 %v427_v3, 0.0  ;;  %v1102_v9 = vmax.f32 %v955_v4, 0.0 }
 0x120   :  { %v431_v11 = vpop.f32.mrf.mxu0  ;;  %v959_v12 = vpop.f32.mrf.mxu1  ;;  %3417 = vmatmul.mubr.msk.bf16.gmra.mxu0 %vm242_vm3, %v3668_v62  ;;  %3527 = vmatmul.mubr.msk.bf16.gmra.mxu1 %vm242_vm3, %v3669_v63 }
 0x121   :  { %v4260_v13 = vmax.f32 %v574_v7, %v1102_v9  ;;  %v432_v15 = vadd.f32 %v4078_v60, %v431_v11  ;;  %v960_v16 = vadd.f32 %v4078_v60, %v959_v12  ;;  %3420 = vmatprep.mubr.msk.bf16.mxu0 %vm3706_vm2, %v4817_v0  ;;  %3530 = vmatprep.mubr.msk.bf16.mxu1 %vm3706_vm2, %v4817_v0 }
 0x122   :  { %v3202_v17 = vpop.f32.mrf.mxu0  ;;  %v3312_v20 = vpop.f32.mrf.mxu1 }
 0x123   :  { %v575_v21 = vmax.f32 %v432_v15, 0.0  ;;  %v1103_v22 = vmax.f32 %v960_v16, 0.0 }
 0x124   :  { %v434_v23 = vpop.f32.mrf.mxu0  ;;  %v962_v24 = vpop.f32.mrf.mxu1 }
 0x125   :  { %v4274_v28 = vmax.f32 %v575_v21, %v1103_v22  ;;  %v435_v29 = vadd.f32 %v4078_v60, %v434_v23  ;;  %v963_v32 = vadd.f32 %v4078_v60, %v962_v24  ;;  %v3674_v21 = vld [vmem:[%s4813_s2 + $0x58] sm:$0xff]  }
 0x126   :  { %v3203_v33 = vpop.f32.mrf.mxu0  ;;  %v3313_v34 = vpop.f32.mrf.mxu1  ;;  %v3675_v22 = vld [vmem:[%s4814_s3 + $0x58] sm:$0xff]  }
 0x127   :  { %v576_v35 = vmax.f32 %v435_v29, 0.0  ;;  %v1104_v36 = vmax.f32 %v963_v32, 0.0 }
 0x128   :  { %v439_v37 = vpop.f32.mrf.mxu0  ;;  %v967_v40 = vpop.f32.mrf.mxu1  ;;  %3421 = vmatmul.mubr.msk.bf16.gmra.mxu0 %vm242_vm3, %v3670_v26  ;;  %3531 = vmatmul.mubr.msk.bf16.gmra.mxu1 %vm242_vm3, %v3671_v27 }
 0x129   :  { %v4280_v42 = vmax.f32 %v576_v35, %v1104_v36  ;;  %v440_v43 = vadd.f32 %v4078_v60, %v439_v37  ;;  %v968_v44 = vadd.f32 %v4078_v60, %v967_v40  ;;  %3424 = vmatprep.mubr.msk.bf16.mxu0 %vm3706_vm2, %v4817_v0  ;;  %3534 = vmatprep.mubr.msk.bf16.mxu1 %vm3706_vm2, %v4817_v0 }
 0x12a   :  { %v3206_v45 = vpop.f32.mrf.mxu0  ;;  %v3316_v46 = vpop.f32.mrf.mxu1 }
 0x12b   :  { %v577_v47 = vmax.f32 %v440_v43, 0.0  ;;  %v1105_v48 = vmax.f32 %v968_v44, 0.0 }
 0x12c   :  { %v442_v51 = vpop.f32.mrf.mxu0  ;;  %v970_v52 = vpop.f32.mrf.mxu1 }
 0x12d   :  { %v4294_v56 = vmax.f32 %v577_v47, %v1105_v48  ;;  %v443_v57 = vadd.f32 %v4078_v60, %v442_v51  ;;  %v971_v58 = vadd.f32 %v4078_v60, %v970_v52  ;;  %v3676_v51 = vld [vmem:[%s4813_s2 + $0x60] sm:$0xff]  }
 0x12e   :  { %v3207_v61 = vpop.f32.mrf.mxu0  ;;  %v3317_v62 = vpop.f32.mrf.mxu1  ;;  %v3677_v52 = vld [vmem:[%s4814_s3 + $0x60] sm:$0xff]  }
 0x12f   :  { %v578_v63 = vmax.f32 %v443_v57, 0.0  ;;  %v1106_v3 = vmax.f32 %v971_v58, 0.0 }
 0x130   :  { %v447_v4 = vpop.f32.mrf.mxu0  ;;  %v975_v5 = vpop.f32.mrf.mxu1  ;;  %3425 = vmatmul.mubr.msk.bf16.gmra.mxu0 %vm242_vm3, %v3672_v54  ;;  %3535 = vmatmul.mubr.msk.bf16.gmra.mxu1 %vm242_vm3, %v3673_v55 }
 0x131   :  { %v4300_v6 = vmax.f32 %v578_v63, %v1106_v3  ;;  %v448_v7 = vadd.f32 %v4078_v60, %v447_v4  ;;  %v976_v9 = vadd.f32 %v4078_v60, %v975_v5  ;;  %3428 = vmatprep.mubr.msk.bf16.mxu0 %vm3706_vm2, %v4817_v0  ;;  %3538 = vmatprep.mubr.msk.bf16.mxu1 %vm3706_vm2, %v4817_v0 }
 0x132   :  { %v3210_v11 = vpop.f32.mrf.mxu0  ;;  %v3320_v12 = vpop.f32.mrf.mxu1 }
 0x133   :  { %v579_v15 = vmax.f32 %v448_v7, 0.0  ;;  %v1107_v16 = vmax.f32 %v976_v9, 0.0 }
 0x134   :  { %v450_v17 = vpop.f32.mrf.mxu0  ;;  %v978_v20 = vpop.f32.mrf.mxu1 }
 0x135   :  { %v4314_v23 = vmax.f32 %v579_v15, %v1107_v16  ;;  %v451_v24 = vadd.f32 %v4078_v60, %v450_v17  ;;  %v979_v26 = vadd.f32 %v4078_v60, %v978_v20 }
 0x136   :  { %v3211_v27 = vpop.f32.mrf.mxu0  ;;  %v3321_v29 = vpop.f32.mrf.mxu1 }
 0x137   :  { %v580_v32 = vmax.f32 %v451_v24, 0.0  ;;  %v1108_v33 = vmax.f32 %v979_v26, 0.0 }
 0x138   :  { %v455_v34 = vpop.f32.mrf.mxu0  ;;  %v983_v35 = vpop.f32.mrf.mxu1  ;;  %3429 = vmatmul.mubr.msk.bf16.gmra.mxu0 %vm242_vm3, %v3674_v21  ;;  %3539 = vmatmul.mubr.msk.bf16.gmra.mxu1 %vm242_vm3, %v3675_v22  ;;  %v3678_v21 = vld [vmem:[%s4813_s2 + $0x68] sm:$0xff]  }
 0x139   :  { %v4320_v36 = vmax.f32 %v580_v32, %v1108_v33  ;;  %v456_v37 = vadd.f32 %v4078_v60, %v455_v34  ;;  %v984_v40 = vadd.f32 %v4078_v60, %v983_v35  ;;  %3432 = vmatprep.mubr.msk.bf16.mxu0 %vm3706_vm2, %v4817_v0  ;;  %3542 = vmatprep.mubr.msk.bf16.mxu1 %vm3706_vm2, %v4817_v0  ;;  %v3679_v22 = vld [vmem:[%s4814_s3 + $0x68] sm:$0xff]  }
 0x13a   :  { %v3214_v43 = vpop.f32.mrf.mxu0  ;;  %v3324_v44 = vpop.f32.mrf.mxu1 }
 0x13b   :  { %v581_v45 = vmax.f32 %v456_v37, 0.0  ;;  %v1109_v46 = vmax.f32 %v984_v40, 0.0 }
 0x13c   :  { %v458_v47 = vpop.f32.mrf.mxu0  ;;  %v986_v48 = vpop.f32.mrf.mxu1 }
 0x13d   :  { %v4334_v54 = vmax.f32 %v581_v45, %v1109_v46  ;;  %v459_v55 = vadd.f32 %v4078_v60, %v458_v47  ;;  %v987_v57 = vadd.f32 %v4078_v60, %v986_v48 }
 0x13e   :  { %v3215_v58 = vpop.f32.mrf.mxu0  ;;  %v3325_v61 = vpop.f32.mrf.mxu1 }
 0x13f   :  { %v582_v62 = vmax.f32 %v459_v55, 0.0  ;;  %v1110_v63 = vmax.f32 %v987_v57, 0.0  ;;  %v3680_v55 = vld [vmem:[%s4813_s2 + $0x70] sm:$0xff]  }
 0x140   :  { %v463_v3 = vpop.f32.mrf.mxu0  ;;  %v991_v4 = vpop.f32.mrf.mxu1  ;;  %3433 = vmatmul.mubr.msk.bf16.gmra.mxu0 %vm242_vm3, %v3676_v51  ;;  %3543 = vmatmul.mubr.msk.bf16.gmra.mxu1 %vm242_vm3, %v3677_v52  ;;  %v3681_v57 = vld [vmem:[%s4814_s3 + $0x70] sm:$0xff]  }
 0x141   :  { %v4340_v5 = vmax.f32 %v582_v62, %v1110_v63  ;;  %v464_v7 = vadd.f32 %v4078_v60, %v463_v3  ;;  %v992_v9 = vadd.f32 %v4078_v60, %v991_v4  ;;  %3436 = vmatprep.mubr.msk.bf16.mxu0 %vm3706_vm2, %v4817_v0  ;;  %3546 = vmatprep.mubr.msk.bf16.mxu1 %vm3706_vm2, %v4817_v0 }
 0x142   :  { %v3218_v11 = vpop.f32.mrf.mxu0  ;;  %v3328_v12 = vpop.f32.mrf.mxu1 }
 0x143   :  { %v583_v15 = vmax.f32 %v464_v7, 0.0  ;;  %v1111_v16 = vmax.f32 %v992_v9, 0.0 }
 0x144   :  { %v466_v17 = vpop.f32.mrf.mxu0  ;;  %v994_v20 = vpop.f32.mrf.mxu1 }
 0x145   :  { %v4354_v24 = vmax.f32 %v583_v15, %v1111_v16  ;;  %v467_v26 = vadd.f32 %v4078_v60, %v466_v17  ;;  %v995_v27 = vadd.f32 %v4078_v60, %v994_v20 }
 0x146   :  { %v3219_v29 = vpop.f32.mrf.mxu0  ;;  %v3329_v32 = vpop.f32.mrf.mxu1 }
 0x147   :  { %v584_v33 = vmax.f32 %v467_v26, 0.0  ;;  %v1112_v34 = vmax.f32 %v995_v27, 0.0  ;;  %v3682_v29 = vld [vmem:[%s4813_s2 + $0x78] sm:$0xff]  }
 0x148   :  { %v471_v35 = vpop.f32.mrf.mxu0  ;;  %v999_v37 = vpop.f32.mrf.mxu1  ;;  %3437 = vmatmul.mubr.msk.bf16.gmra.mxu0 %vm242_vm3, %v3678_v21  ;;  %3547 = vmatmul.mubr.msk.bf16.gmra.mxu1 %vm242_vm3, %v3679_v22  ;;  %v3683_v32 = vld [vmem:[%s4814_s3 + $0x78] sm:$0xff]  }
 0x149   :  { %v4360_v40 = vmax.f32 %v584_v33, %v1112_v34  ;;  %v472_v43 = vadd.f32 %v4078_v60, %v471_v35  ;;  %v1000_v44 = vadd.f32 %v4078_v60, %v999_v37  ;;  %3440 = vmatprep.mubr.msk.bf16.mxu0 %vm3706_vm2, %v4817_v0  ;;  %3550 = vmatprep.mubr.msk.bf16.mxu1 %vm3706_vm2, %v4817_v0 }
 0x14a   :  { %v3222_v45 = vpop.f32.mrf.mxu0  ;;  %v3332_v46 = vpop.f32.mrf.mxu1 }
 0x14b   :  { %v585_v47 = vmax.f32 %v472_v43, 0.0  ;;  %v1113_v48 = vmax.f32 %v1000_v44, 0.0 }
 0x14c   :  { %v474_v51 = vpop.f32.mrf.mxu0  ;;  %v1002_v52 = vpop.f32.mrf.mxu1 }
 0x14d   :  { %v4374_v58 = vmax.f32 %v585_v47, %v1113_v48  ;;  %v475_v61 = vadd.f32 %v4078_v60, %v474_v51  ;;  %v1003_v62 = vadd.f32 %v4078_v60, %v1002_v52 }
 0x14e   :  { %v3223_v63 = vpop.f32.mrf.mxu0  ;;  %v3333_v3 = vpop.f32.mrf.mxu1 }
 0x14f   :  { %v586_v4 = vmax.f32 %v475_v61, 0.0  ;;  %v1114_v7 = vmax.f32 %v1003_v62, 0.0 }
 0x150   :  { %v479_v9 = vpop.f32.mrf.mxu0  ;;  %v1007_v11 = vpop.f32.mrf.mxu1  ;;  %3441 = vmatmul.mubr.msk.bf16.gmra.mxu0 %vm242_vm3, %v3680_v55  ;;  %3551 = vmatmul.mubr.msk.bf16.gmra.mxu1 %vm242_vm3, %v3681_v57 }
 0x151   :  { %v4380_v12 = vmax.f32 %v586_v4, %v1114_v7  ;;  %v480_v15 = vadd.f32 %v4078_v60, %v479_v9  ;;  %v1008_v16 = vadd.f32 %v4078_v60, %v1007_v11  ;;  %3444 = vmatprep.mubr.msk.bf16.mxu0 %vm3706_vm2, %v4817_v0  ;;  %3554 = vmatprep.mubr.msk.bf16.mxu1 %vm3706_vm2, %v4817_v0  ;;  %v3684_v4 = vld [vmem:[%s4813_s2 + $0x80] sm:$0xff]  }
 0x152   :  { %v3226_v17 = vpop.f32.mrf.mxu0  ;;  %v3336_v20 = vpop.f32.mrf.mxu1  ;;  %v3685_v7 = vld [vmem:[%s4814_s3 + $0x80] sm:$0xff]  }
 0x153   :  { %v587_v21 = vmax.f32 %v480_v15, 0.0  ;;  %v1115_v22 = vmax.f32 %v1008_v16, 0.0 }
 0x154   :  { %v482_v26 = vpop.f32.mrf.mxu0  ;;  %v1010_v27 = vpop.f32.mrf.mxu1 }
 0x155   :  { %v4394_v33 = vmax.f32 %v587_v21, %v1115_v22  ;;  %v483_v34 = vadd.f32 %v4078_v60, %v482_v26  ;;  %v1011_v35 = vadd.f32 %v4078_v60, %v1010_v27 }
 0x156   :  { %v3227_v37 = vpop.f32.mrf.mxu0  ;;  %v3337_v43 = vpop.f32.mrf.mxu1 }
 0x157   :  { %v588_v44 = vmax.f32 %v483_v34, 0.0  ;;  %v1116_v45 = vmax.f32 %v1011_v35, 0.0 }
 0x158   :  { %v487_v46 = vpop.f32.mrf.mxu0  ;;  %v1015_v47 = vpop.f32.mrf.mxu1  ;;  %3445 = vmatmul.mubr.msk.bf16.gmra.mxu0 %vm242_vm3, %v3682_v29  ;;  %3555 = vmatmul.mubr.msk.bf16.gmra.mxu1 %vm242_vm3, %v3683_v32 }
 0x159   :  { %v4400_v48 = vmax.f32 %v588_v44, %v1116_v45  ;;  %v488_v51 = vadd.f32 %v4078_v60, %v487_v46  ;;  %v1016_v52 = vadd.f32 %v4078_v60, %v1015_v47  ;;  %3448 = vmatprep.mubr.msk.bf16.mxu0 %vm3706_vm2, %v4817_v0  ;;  %3558 = vmatprep.mubr.msk.bf16.mxu1 %vm3706_vm2, %v4817_v0  ;;  %v3686_v46 = vld [vmem:[%s4813_s2 + $0x88] sm:$0xff]  }
 0x15a   :  { %v3230_v55 = vpop.f32.mrf.mxu0  ;;  %v3340_v57 = vpop.f32.mrf.mxu1  ;;  %v3687_v47 = vld [vmem:[%s4814_s3 + $0x88] sm:$0xff]  }
 0x15b   :  { %v589_v61 = vmax.f32 %v488_v51, 0.0  ;;  %v1117_v62 = vmax.f32 %v1016_v52, 0.0 }
 0x15c   :  { %v490_v63 = vpop.f32.mrf.mxu0  ;;  %v1018_v3 = vpop.f32.mrf.mxu1 }
 0x15d   :  { %v4414_v9 = vmax.f32 %v589_v61, %v1117_v62  ;;  %v491_v11 = vadd.f32 %v4078_v60, %v490_v63  ;;  %v1019_v15 = vadd.f32 %v4078_v60, %v1018_v3 }
 0x15e   :  { %v3231_v16 = vpop.f32.mrf.mxu0  ;;  %v3341_v17 = vpop.f32.mrf.mxu1 }
 0x15f   :  { %v590_v20 = vmax.f32 %v491_v11, 0.0  ;;  %v1118_v21 = vmax.f32 %v1019_v15, 0.0 }
 0x160   :  { %v495_v22 = vpop.f32.mrf.mxu0  ;;  %v1023_v26 = vpop.f32.mrf.mxu1  ;;  %3449 = vmatmul.mubr.msk.bf16.gmra.mxu0 %vm242_vm3, %v3684_v4  ;;  %3559 = vmatmul.mubr.msk.bf16.gmra.mxu1 %vm242_vm3, %v3685_v7 }
 0x161   :  { %v4420_v27 = vmax.f32 %v590_v20, %v1118_v21  ;;  %v496_v29 = vadd.f32 %v4078_v60, %v495_v22  ;;  %v1024_v32 = vadd.f32 %v4078_v60, %v1023_v26  ;;  %3452 = vmatprep.mubr.msk.bf16.mxu0 %vm3706_vm2, %v4817_v0  ;;  %3562 = vmatprep.mubr.msk.bf16.mxu1 %vm3706_vm2, %v4817_v0 }
 0x162   :  { %v3234_v34 = vpop.f32.mrf.mxu0  ;;  %v3344_v35 = vpop.f32.mrf.mxu1 }
 0x163   :  { %v591_v37 = vmax.f32 %v496_v29, 0.0  ;;  %v1119_v43 = vmax.f32 %v1024_v32, 0.0  ;;  %v3688_v29 = vld [vmem:[%s4813_s2 + $0x90] sm:$0xff]  }
 0x164   :  { %v498_v44 = vpop.f32.mrf.mxu0  ;;  %v1026_v45 = vpop.f32.mrf.mxu1  ;;  %v3689_v32 = vld [vmem:[%s4814_s3 + $0x90] sm:$0xff]  }
 0x165   :  { %v4434_v51 = vmax.f32 %v591_v37, %v1119_v43  ;;  %v499_v52 = vadd.f32 %v4078_v60, %v498_v44  ;;  %v1027_v55 = vadd.f32 %v4078_v60, %v1026_v45 }
 0x166   :  { %v3235_v57 = vpop.f32.mrf.mxu0  ;;  %v3345_v61 = vpop.f32.mrf.mxu1 }
 0x167   :  { %v592_v62 = vmax.f32 %v499_v52, 0.0  ;;  %v1120_v63 = vmax.f32 %v1027_v55, 0.0 }
 0x168   :  { %v503_v3 = vpop.f32.mrf.mxu0  ;;  %v1031_v4 = vpop.f32.mrf.mxu1  ;;  %3453 = vmatmul.mubr.msk.bf16.gmra.mxu0 %vm242_vm3, %v3686_v46  ;;  %3563 = vmatmul.mubr.msk.bf16.gmra.mxu1 %vm242_vm3, %v3687_v47 }
 0x169   :  { %v4440_v7 = vmax.f32 %v592_v62, %v1120_v63  ;;  %v504_v11 = vadd.f32 %v4078_v60, %v503_v3  ;;  %v1032_v15 = vadd.f32 %v4078_v60, %v1031_v4  ;;  %3456 = vmatprep.mubr.msk.bf16.mxu0 %vm3706_vm2, %v4817_v0  ;;  %3566 = vmatprep.mubr.msk.bf16.mxu1 %vm3706_vm2, %v4817_v0 }
 0x16a   :  { %v3238_v16 = vpop.f32.mrf.mxu0  ;;  %v3348_v17 = vpop.f32.mrf.mxu1 }
 0x16b   :  { %v593_v20 = vmax.f32 %v504_v11, 0.0  ;;  %v1121_v21 = vmax.f32 %v1032_v15, 0.0  ;;  %v3690_v16 = vld [vmem:[%s4813_s2 + $0x98] sm:$0xff]  }
 0x16c   :  { %v506_v22 = vpop.f32.mrf.mxu0  ;;  %v1034_v26 = vpop.f32.mrf.mxu1  ;;  %v3691_v17 = vld [vmem:[%s4814_s3 + $0x98] sm:$0xff]  }
 0x16d   :  { %v4454_v34 = vmax.f32 %v593_v20, %v1121_v21  ;;  %v507_v35 = vadd.f32 %v4078_v60, %v506_v22  ;;  %v1035_v37 = vadd.f32 %v4078_v60, %v1034_v26 }
 0x16e   :  { %v3239_v43 = vpop.f32.mrf.mxu0  ;;  %v3349_v44 = vpop.f32.mrf.mxu1 }
 0x16f   :  { %v594_v45 = vmax.f32 %v507_v35, 0.0  ;;  %v1122_v46 = vmax.f32 %v1035_v37, 0.0 }
 0x170   :  { %v511_v47 = vpop.f32.mrf.mxu0  ;;  %v1039_v52 = vpop.f32.mrf.mxu1  ;;  %3457 = vmatmul.mubr.msk.bf16.gmra.mxu0 %vm242_vm3, %v3688_v29  ;;  %3567 = vmatmul.mubr.msk.bf16.gmra.mxu1 %vm242_vm3, %v3689_v32 }
 0x171   :  { %v4460_v55 = vmax.f32 %v594_v45, %v1122_v46  ;;  %v512_v57 = vadd.f32 %v4078_v60, %v511_v47  ;;  %v1040_v61 = vadd.f32 %v4078_v60, %v1039_v52  ;;  %3460 = vmatprep.mubr.msk.bf16.mxu0 %vm3706_vm2, %v4817_v0  ;;  %3570 = vmatprep.mubr.msk.bf16.mxu1 %vm3706_vm2, %v4817_v0 }
 0x172   :  { %v3242_v62 = vpop.f32.mrf.mxu0  ;;  %v3352_v63 = vpop.f32.mrf.mxu1 }
 0x173   :  { %v595_v3 = vmax.f32 %v512_v57, 0.0  ;;  %v1123_v4 = vmax.f32 %v1040_v61, 0.0 }
 0x174   :  { %v514_v11 = vpop.f32.mrf.mxu0  ;;  %v1042_v15 = vpop.f32.mrf.mxu1 }
 0x175   :  { %v4474_v20 = vmax.f32 %v595_v3, %v1123_v4  ;;  %v515_v21 = vadd.f32 %v4078_v60, %v514_v11  ;;  %v1043_v22 = vadd.f32 %v4078_v60, %v1042_v15  ;;  %v3692_v3 = vld [vmem:[%s4813_s2 + $0xa0] sm:$0xff]  }
 0x176   :  { %v3243_v26 = vpop.f32.mrf.mxu0  ;;  %v3353_v29 = vpop.f32.mrf.mxu1  ;;  %v3693_v4 = vld [vmem:[%s4814_s3 + $0xa0] sm:$0xff]  }
 0x177   :  { %v596_v32 = vmax.f32 %v515_v21, 0.0  ;;  %v1124_v35 = vmax.f32 %v1043_v22, 0.0 }
 0x178   :  { %v519_v37 = vpop.f32.mrf.mxu0  ;;  %v1047_v43 = vpop.f32.mrf.mxu1  ;;  %3461 = vmatmul.mubr.msk.bf16.gmra.mxu0 %vm242_vm3, %v3690_v16  ;;  %3571 = vmatmul.mubr.msk.bf16.gmra.mxu1 %vm242_vm3, %v3691_v17 }
 0x179   :  { %v4480_v44 = vmax.f32 %v596_v32, %v1124_v35  ;;  %v520_v45 = vadd.f32 %v4078_v60, %v519_v37  ;;  %v1048_v46 = vadd.f32 %v4078_v60, %v1047_v43  ;;  %3464 = vmatprep.mubr.msk.bf16.mxu0 %vm3706_vm2, %v4817_v0  ;;  %3574 = vmatprep.mubr.msk.bf16.mxu1 %vm3706_vm2, %v4817_v0 }
 0x17a   :  { %v3246_v47 = vpop.f32.mrf.mxu0  ;;  %v3356_v52 = vpop.f32.mrf.mxu1 }
 0x17b   :  { %v597_v57 = vmax.f32 %v520_v45, 0.0  ;;  %v1125_v61 = vmax.f32 %v1048_v46, 0.0 }
 0x17c   :  { %v522_v62 = vpop.f32.mrf.mxu0  ;;  %v1050_v63 = vpop.f32.mrf.mxu1 }
 0x17d   :  { %v4494_v11 = vmax.f32 %v597_v57, %v1125_v61  ;;  %v523_v15 = vadd.f32 %v4078_v60, %v522_v62  ;;  %v1051_v16 = vadd.f32 %v4078_v60, %v1050_v63  ;;  %v3694_v62 = vld [vmem:[%s4813_s2 + $0xa8] sm:$0xff]  }
 0x17e   :  { %v3247_v17 = vpop.f32.mrf.mxu0  ;;  %v3357_v21 = vpop.f32.mrf.mxu1 }
 0x17f   :  { %v598_v22 = vmax.f32 %v523_v15, 0.0  ;;  %v1126_v26 = vmax.f32 %v1051_v16, 0.0 }
 0x180   :  { %v527_v29 = vpop.f32.mrf.mxu0  ;;  %v1055_v32 = vpop.f32.mrf.mxu1  ;;  %3465 = vmatmul.mubr.msk.bf16.gmra.mxu0 %vm242_vm3, %v3692_v3  ;;  %3575 = vmatmul.mubr.msk.bf16.gmra.mxu1 %vm242_vm3, %v3693_v4  ;;  %v4519_v3 = vld [vmem:[%s4815_s5] ss:$0 sm:$0xff] }
 0x181   :  { %v4500_v35 = vmax.f32 %v598_v22, %v1126_v26  ;;  %v528_v37 = vadd.f32 %v4078_v60, %v527_v29  ;;  %v1056_v43 = vadd.f32 %v4078_v60, %v1055_v32  ;;  %3468 = vmatprep.mubr.msk.bf16.mxu0 %vm3706_vm2, %v4817_v0  ;;  %3578 = vmatprep.mubr.msk.bf16.mxu1 %vm3706_vm2, %v4817_v0  ;;  %v3695_v60 = vld [vmem:[%s4814_s3 + $0xa8] sm:$0xff]  }
 0x182   :  { %v3250_v45 = vpop.f32.mrf.mxu0  ;;  %v3360_v46 = vpop.f32.mrf.mxu1 }
 0x183   :  { %v599_v47 = vmax.f32 %v528_v37, 0.0  ;;  %v1127_v52 = vmax.f32 %v1056_v43, 0.0 }
 0x184   :  { %v530_v57 = vpop.f32.mrf.mxu0  ;;  %v1058_v61 = vpop.f32.mrf.mxu1 }
 0x185   :  { %v4514_v63 = vmax.f32 %v599_v47, %v1127_v52  ;;  %v531_v4 = vadd.f32 %v4519_v3, %v530_v57  ;;  %v1059_v15 = vadd.f32 %v4519_v3, %v1058_v61 }
 0x186   :  { %v3251_v16 = vpop.f32.mrf.mxu0  ;;  %v3361_v17 = vpop.f32.mrf.mxu1 }
 0x187   :  { %v600_v21 = vmax.f32 %v531_v4, 0.0  ;;  %v1128_v22 = vmax.f32 %v1059_v15, 0.0 }
 0x188   :  { %v535_v26 = vpop.f32.mrf.mxu0  ;;  %v1063_v29 = vpop.f32.mrf.mxu1  ;;  %3469 = vmatmul.mubr.msk.bf16.gmra.mxu0 %vm242_vm3, %v3694_v62  ;;  %3579 = vmatmul.mubr.msk.bf16.gmra.mxu1 %vm242_vm3, %v3695_v60  ;;  %v3696_v62 = vld [vmem:[%s4813_s2 + $0xb0] sm:$0xff]  }
 0x189   :  { %v4525_v32 = vmax.f32 %v600_v21, %v1128_v22  ;;  %v536_v37 = vadd.f32 %v4519_v3, %v535_v26  ;;  %v1064_v43 = vadd.f32 %v4519_v3, %v1063_v29  ;;  %3472 = vmatprep.mubr.msk.bf16.mxu0 %vm3706_vm2, %v4817_v0  ;;  %3582 = vmatprep.mubr.msk.bf16.mxu1 %vm3706_vm2, %v4817_v0  ;;  %v3697_v60 = vld [vmem:[%s4814_s3 + $0xb0] sm:$0xff]  }
 0x18a   :  { %v3254_v45 = vpop.f32.mrf.mxu0  ;;  %v3364_v46 = vpop.f32.mrf.mxu1 }
 0x18b   :  { %4819 = vst [vmem:[#allocation2_spill] sm:$0xff] %v4525_v32  ;;  %v601_v47 = vmax.f32 %v536_v37, 0.0  ;;  %v1129_v52 = vmax.f32 %v1064_v43, 0.0 }
 0x18c   :  { %v538_v57 = vpop.f32.mrf.mxu0  ;;  %v1066_v61 = vpop.f32.mrf.mxu1 }
 0x18d   :  { %v4539_v4 = vmax.f32 %v601_v47, %v1129_v52  ;;  %v539_v15 = vadd.f32 %v4519_v3, %v538_v57  ;;  %v1067_v16 = vadd.f32 %v4519_v3, %v1066_v61 }
 0x18e   :  { %v3255_v17 = vpop.f32.mrf.mxu0  ;;  %v3365_v21 = vpop.f32.mrf.mxu1 }
 0x18f   :  { %4820 = vst [vmem:[#allocation3_spill] sm:$0xff] %v4539_v4  ;;  %v602_v22 = vmax.f32 %v539_v15, 0.0  ;;  %v1130_v26 = vmax.f32 %v1067_v16, 0.0  ;;  %v3699_v16 = vld [vmem:[%s4814_s3 + $0xb8] sm:$0xff]  }
 0x190   :  { %v543_v29 = vpop.f32.mrf.mxu0  ;;  %v1071_v37 = vpop.f32.mrf.mxu1  ;;  %3473 = vmatmul.mubr.msk.bf16.gmra.mxu0 %vm242_vm3, %v3696_v62  ;;  %3583 = vmatmul.mubr.msk.bf16.gmra.mxu1 %vm242_vm3, %v3697_v60  ;;  %v3698_v60 = vld [vmem:[%s4813_s2 + $0xb8] sm:$0xff]  }
 0x191   :  { %v4545_v43 = vmax.f32 %v602_v22, %v1130_v26  ;;  %v544_v45 = vadd.f32 %v4519_v3, %v543_v29  ;;  %v1072_v46 = vadd.f32 %v4519_v3, %v1071_v37  ;;  %3476 = vmatprep.mubr.msk.bf16.mxu0 %vm3706_vm2, %v4817_v0  ;;  %3586 = vmatprep.mubr.msk.bf16.mxu1 %vm3706_vm2, %v4817_v0 }
 0x192   :  { %v3258_v47 = vpop.f32.mrf.mxu0  ;;  %v3368_v52 = vpop.f32.mrf.mxu1 }
 0x193   :  { %4821 = vst [vmem:[#allocation4_spill] sm:$0xff] %v4545_v43  ;;  %v603_v57 = vmax.f32 %v544_v45, 0.0  ;;  %v1131_v61 = vmax.f32 %v1072_v46, 0.0 }
 0x194   :  { %v546_v15 = vpop.f32.mrf.mxu0  ;;  %v1074_v62 = vpop.f32.mrf.mxu1 }
 0x195   :  { %v4559_v17 = vmax.f32 %v603_v57, %v1131_v61  ;;  %v547_v21 = vadd.f32 %v4519_v3, %v546_v15  ;;  %v1075_v22 = vadd.f32 %v4519_v3, %v1074_v62  ;;  %v4824_v61 = vmov 0.0  }
 0x196   :  { %v3259_v26 = vpop.f32.mrf.mxu0  ;;  %v3369_v29 = vpop.f32.mrf.mxu1 }
 0x197   :  { %4822 = vst [vmem:[#allocation5_spill] sm:$0xff] %v4559_v17  ;;  %v604_v37 = vmax.f32 %v547_v21, 0.0  ;;  %v1132_v45 = vmax.f32 %v1075_v22, 0.0  ;;  %v3701_v29 = vld [vmem:[%s4814_s3 + $0xc0] ss:$0 sps:$4 sm:$0xff]  }
 0x198   :  { %v551_v46 = vpop.f32.mrf.mxu0  ;;  %v1079_v47 = vpop.f32.mrf.mxu1  ;;  %3477 = vmatmul.mubr.msk.bf16.gmra.mxu0 %vm242_vm3, %v3698_v60  ;;  %3587 = vmatmul.mubr.msk.bf16.gmra.mxu1 %vm242_vm3, %v3699_v16  ;;  %v3700_v16 = vld [vmem:[%s4813_s2 + $0xc0] ss:$0 sps:$4 sm:$0xff]  }
 0x199   :  { %v4565_v52 = vmax.f32 %v604_v37, %v1132_v45  ;;  %v552_v0 = vadd.f32 %v4519_v3, %v551_v46  ;;  %v1080_v57 = vadd.f32 %v4519_v3, %v1079_v47  ;;  %3480 = vmatprep.mubr.msk.bf16.mxu0 %vm3706_vm2, %v4824_v61  ;;  %3590 = vmatprep.mubr.msk.bf16.mxu1 %vm3706_vm2, %v4824_v61 }
 0x19a   :  { %v3262_v15 = vpop.f32.mrf.mxu0  ;;  %v3372_v62 = vpop.f32.mrf.mxu1 }
 0x19b   :  { %4823 = vst [vmem:[#allocation6_spill] sm:$0xff] %v4565_v52  ;;  %v605_v21 = vmax.f32 %v552_v0, 0.0  ;;  %v1133_v22 = vmax.f32 %v1080_v57, 0.0 }
 0x19c   :  { %v554_v26 = vpop.f32.mrf.mxu0  ;;  %v1082_v60 = vpop.f32.mrf.mxu1 }
 0x19d   :  { %v4579_v37 = vmax.f32 %v605_v21, %v1133_v22 }
 0x19e   :  { %v3263_v45 = vpop.f32.mrf.mxu0  ;;  %v3373_v46 = vpop.f32.mrf.mxu1 }
 0x19f   :  { %4825 = vst [vmem:[#allocation7_spill] sm:$0xff] %v4579_v37 }
 0x1a0   :  { %v1464_v47 = vpop.f32.mrf.mxu0  ;;  %3481 = vmatmul.mubr.msk.bf16.gmra.mxu0 %vm242_vm3, %v3700_v16  ;;  %v1992_v61 = vpop.f32.mrf.mxu1  ;;  %3591 = vmatmul.mubr.msk.bf16.gmra.mxu1 %vm242_vm3, %v3701_v29 }
 0x1a1   :  { %v1465_v0 = vadd.f32 %v4519_v3, %v1464_v47  ;;  %v1993_v57 = vadd.f32 %v4519_v3, %v1992_v61 }
 0x1a2   :  { %v3386_v15 = vpop.f32.mrf.mxu0  ;;  %v3496_v62 = vpop.f32.mrf.mxu1 }
 0x1a3   :  { %v1662_v26 = vmax.f32 %v1465_v0, 0.0  ;;  %v2190_v60 = vmax.f32 %v1993_v57, 0.0 }
 0x1a4   :  { %v1467_v52 = vpop.f32.mrf.mxu0  ;;  %v1995_v17 = vpop.f32.mrf.mxu1 }
 0x1a5   :  { %v1468_v21 = vadd.f32 %v4519_v3, %v1467_v52  ;;  %v1996_v22 = vadd.f32 %v4519_v3, %v1995_v17  ;;  %v2239_v16 = vmax.f32 %v1662_v26, %v2190_v60 }
 0x1a6   :  { %v3387_v45 = vpop.f32.mrf.mxu0  ;;  %v3497_v46 = vpop.f32.mrf.mxu1 }
 0x1a7   :  { %v1663_v37 = vmax.f32 %v1468_v21, 0.0  ;;  %v2191_v43 = vmax.f32 %v1996_v22, 0.0  ;;  %v2288_v62 = vmax.f32 %v4094_v10, %v2239_v16 }
 0x1a8   :  { %v1472_v29 = vpop.f32.mrf.mxu0  ;;  %v2000_v4 = vpop.f32.mrf.mxu1 }
 0x1a9   :  { %v2240_v47 = vmax.f32 %v1663_v37, %v2191_v43  ;;  %v1473_v61 = vadd.f32 %v4519_v3, %v1472_v29  ;;  %v2001_v15 = vadd.f32 %v4519_v3, %v2000_v4 }
 0x1aa   :  { %v3390_v0 = vpop.f32.mrf.mxu0  ;;  %v3500_v57 = vpop.f32.mrf.mxu1 }
 0x1ab   :  { %v2289_v52 = vmax.f32 %v4100_v19, %v2240_v47  ;;  %v1664_v32 = vmax.f32 %v1473_v61, 0.0  ;;  %v2192_v17 = vmax.f32 %v2001_v15, 0.0 }
 0x1ac   :  { %v1475_v45 = vpop.f32.mrf.mxu0  ;;  %v2003_v46 = vpop.f32.mrf.mxu1 }
 0x1ad   :  { %v2894_v26 = vpack.c.bf16 %v2289_v52, %v2288_v62  ;;  %v1476_v60 = vadd.f32 %v4519_v3, %v1475_v45  ;;  %v2004_v21 = vadd.f32 %v4519_v3, %v2003_v46  ;;  %v2241_v4 = vmax.f32 %v1664_v32, %v2192_v17 }
 0x1ae   :  { %v3391_v43 = vpop.f32.mrf.mxu0  ;;  %v3501_v37 = vpop.f32.mrf.mxu1 }
 0x1af   :  { %2895 = vst [vmem:[%s4816_s6] sm:$0xff] %v2894_v26   ;;  %v1665_v22 = vmax.f32 %v1476_v60, 0.0  ;;  %v2193_v10 = vmax.f32 %v2004_v21, 0.0  ;;  %v2290_v57 = vmax.f32 %v4114_v30, %v2241_v4 }
 0x1b0   :  { %v1480_v16 = vpop.f32.mrf.mxu0  ;;  %v2008_v19 = vpop.f32.mrf.mxu1 }
 0x1b1   :  { %v2242_v29 = vmax.f32 %v1665_v22, %v2193_v10  ;;  %v1481_v47 = vadd.f32 %v4519_v3, %v1480_v16  ;;  %v2009_v61 = vadd.f32 %v4519_v3, %v2008_v19 }
 0x1b2   :  { %v3394_v15 = vpop.f32.mrf.mxu0  ;;  %v3504_v0 = vpop.f32.mrf.mxu1 }
 0x1b3   :  { %v2291_v62 = vmax.f32 %v4120_v39, %v2242_v29  ;;  %v1666_v52 = vmax.f32 %v1481_v47, 0.0  ;;  %v2194_v45 = vmax.f32 %v2009_v61, 0.0 }
 0x1b4   :  { %v1483_v46 = vpop.f32.mrf.mxu0  ;;  %v2011_v26 = vpop.f32.mrf.mxu1 }
 0x1b5   :  { %v2899_v32 = vpack.c.bf16 %v2291_v62, %v2290_v57  ;;  %v1484_v17 = vadd.f32 %v4519_v3, %v1483_v46  ;;  %v2012_v60 = vadd.f32 %v4519_v3, %v2011_v26  ;;  %v2243_v37 = vmax.f32 %v1666_v52, %v2194_v45 }
 0x1b6   :  { %v3395_v21 = vpop.f32.mrf.mxu0  ;;  %v3505_v43 = vpop.f32.mrf.mxu1 }
 0x1b7   :  { %3011 = vst [vmem:[%s4816_s6 + $0x8] sm:$0xff] %v2899_v32   ;;  %v1667_v22 = vmax.f32 %v1484_v17, 0.0  ;;  %v2195_v30 = vmax.f32 %v2012_v60, 0.0  ;;  %v2292_v61 = vmax.f32 %v4134_v50, %v2243_v37 }
 0x1b8   :  { %v1488_v4 = vpop.f32.mrf.mxu0  ;;  %v2016_v39 = vpop.f32.mrf.mxu1 }
 0x1b9   :  { %v2244_v10 = vmax.f32 %v1667_v22, %v2195_v30  ;;  %v1489_v16 = vadd.f32 %v4519_v3, %v1488_v4  ;;  %v2017_v19 = vadd.f32 %v4519_v3, %v2016_v39 }
 0x1ba   :  { %v3398_v29 = vpop.f32.mrf.mxu0  ;;  %v3508_v47 = vpop.f32.mrf.mxu1 }
 0x1bb   :  { %v2293_v15 = vmax.f32 %v4140_v59, %v2244_v10  ;;  %v1668_v0 = vmax.f32 %v1489_v16, 0.0  ;;  %v2196_v57 = vmax.f32 %v2017_v19, 0.0 }
 0x1bc   :  { %v1491_v62 = vpop.f32.mrf.mxu0  ;;  %v2019_v46 = vpop.f32.mrf.mxu1 }
 0x1bd   :  { %v2904_v52 = vpack.c.bf16 %v2293_v15, %v2292_v61  ;;  %v1492_v45 = vadd.f32 %v4519_v3, %v1491_v62  ;;  %v2020_v26 = vadd.f32 %v4519_v3, %v2019_v46  ;;  %v2245_v60 = vmax.f32 %v1668_v0, %v2196_v57 }
 0x1be   :  { %v3399_v32 = vpop.f32.mrf.mxu0  ;;  %v3509_v17 = vpop.f32.mrf.mxu1 }
 0x1bf   :  { %3012 = vst [vmem:[%s4816_s6 + $0x10] sm:$0xff] %v2904_v52   ;;  %v1669_v21 = vmax.f32 %v1492_v45, 0.0  ;;  %v2197_v50 = vmax.f32 %v2020_v26, 0.0  ;;  %v2294_v10 = vmax.f32 %v4154_v8, %v2245_v60 }
 0x1c0   :  { %v1496_v43 = vpop.f32.mrf.mxu0  ;;  %v2024_v59 = vpop.f32.mrf.mxu1 }
 0x1c1   :  { %v2246_v37 = vmax.f32 %v1669_v21, %v2197_v50  ;;  %v1497_v22 = vadd.f32 %v4519_v3, %v1496_v43  ;;  %v2025_v30 = vadd.f32 %v4519_v3, %v2024_v59 }
 0x1c2   :  { %v3402_v4 = vpop.f32.mrf.mxu0  ;;  %v3512_v39 = vpop.f32.mrf.mxu1 }
 0x1c3   :  { %v2295_v16 = vmax.f32 %v4160_v18, %v2246_v37  ;;  %v1670_v19 = vmax.f32 %v1497_v22, 0.0  ;;  %v2198_v29 = vmax.f32 %v2025_v30, 0.0 }
 0x1c4   :  { %v1499_v47 = vpop.f32.mrf.mxu0  ;;  %v2027_v61 = vpop.f32.mrf.mxu1 }
 0x1c5   :  { %v2909_v15 = vpack.c.bf16 %v2295_v16, %v2294_v10  ;;  %v1500_v0 = vadd.f32 %v4519_v3, %v1499_v47  ;;  %v2028_v57 = vadd.f32 %v4519_v3, %v2027_v61  ;;  %v2247_v52 = vmax.f32 %v1670_v19, %v2198_v29 }
 0x1c6   :  { %v3403_v62 = vpop.f32.mrf.mxu0  ;;  %v3513_v46 = vpop.f32.mrf.mxu1 }
 0x1c7   :  { %3013 = vst [vmem:[%s4816_s6 + $0x18] sm:$0xff] %v2909_v15   ;;  %v1671_v45 = vmax.f32 %v1500_v0, 0.0  ;;  %v2199_v8 = vmax.f32 %v2028_v57, 0.0  ;;  %v2296_v43 = vmax.f32 %v4174_v31, %v2247_v52 }
 0x1c8   :  { %v1504_v26 = vpop.f32.mrf.mxu0  ;;  %v2032_v18 = vpop.f32.mrf.mxu1 }
 0x1c9   :  { %v2248_v32 = vmax.f32 %v1671_v45, %v2199_v8  ;;  %v1505_v17 = vadd.f32 %v4519_v3, %v1504_v26  ;;  %v2033_v60 = vadd.f32 %v4519_v3, %v2032_v18 }
 0x1ca   :  { %v3406_v21 = vpop.f32.mrf.mxu0  ;;  %v3516_v50 = vpop.f32.mrf.mxu1 }
 0x1cb   :  { %v2297_v59 = vmax.f32 %v4180_v41, %v2248_v32  ;;  %v1672_v37 = vmax.f32 %v1505_v17, 0.0  ;;  %v2200_v22 = vmax.f32 %v2033_v60, 0.0 }
 0x1cc   :  { %v1507_v30 = vpop.f32.mrf.mxu0  ;;  %v2035_v4 = vpop.f32.mrf.mxu1 }
 0x1cd   :  { %v2914_v39 = vpack.c.bf16 %v2297_v59, %v2296_v43  ;;  %v1508_v10 = vadd.f32 %v4519_v3, %v1507_v30  ;;  %v2036_v16 = vadd.f32 %v4519_v3, %v2035_v4  ;;  %v2249_v47 = vmax.f32 %v1672_v37, %v2200_v22 }
 0x1ce   :  { %v3407_v19 = vpop.f32.mrf.mxu0  ;;  %v3517_v29 = vpop.f32.mrf.mxu1 }
 0x1cf   :  { %3014 = vst [vmem:[%s4816_s6 + $0x20] sm:$0xff] %v2914_v39   ;;  %v1673_v61 = vmax.f32 %v1508_v10, 0.0  ;;  %v2201_v31 = vmax.f32 %v2036_v16, 0.0  ;;  %v2298_v45 = vmax.f32 %v4194_v53, %v2249_v47 }
 0x1d0   :  { %v1512_v15 = vpop.f32.mrf.mxu0  ;;  %v2040_v41 = vpop.f32.mrf.mxu1 }
 0x1d1   :  { %v2250_v0 = vmax.f32 %v1673_v61, %v2201_v31  ;;  %v1513_v57 = vadd.f32 %v4519_v3, %v1512_v15  ;;  %v2041_v62 = vadd.f32 %v4519_v3, %v2040_v41 }
 0x1d2   :  { %v3410_v46 = vpop.f32.mrf.mxu0  ;;  %v3520_v52 = vpop.f32.mrf.mxu1 }
 0x1d3   :  { %v2299_v8 = vmax.f32 %v4200_v1, %v2250_v0  ;;  %v1674_v26 = vmax.f32 %v1513_v57, 0.0  ;;  %v2202_v18 = vmax.f32 %v2041_v62, 0.0 }
 0x1d4   :  { %v1515_v32 = vpop.f32.mrf.mxu0  ;;  %v2043_v17 = vpop.f32.mrf.mxu1 }
 0x1d5   :  { %v2919_v60 = vpack.c.bf16 %v2299_v8, %v2298_v45  ;;  %v1516_v21 = vadd.f32 %v4519_v3, %v1515_v32  ;;  %v2044_v50 = vadd.f32 %v4519_v3, %v2043_v17  ;;  %v2251_v37 = vmax.f32 %v1674_v26, %v2202_v18 }
 0x1d6   :  { %v3411_v43 = vpop.f32.mrf.mxu0  ;;  %v3521_v59 = vpop.f32.mrf.mxu1 }
 0x1d7   :  { %3015 = vst [vmem:[%s4816_s6 + $0x28] sm:$0xff] %v2919_v60   ;;  %v1675_v22 = vmax.f32 %v1516_v21, 0.0  ;;  %v2203_v53 = vmax.f32 %v2044_v50, 0.0  ;;  %v2300_v29 = vmax.f32 %v4214_v14, %v2251_v37 }
 0x1d8   :  { %v1520_v30 = vpop.f32.mrf.mxu0  ;;  %v2048_v1 = vpop.f32.mrf.mxu1 }
 0x1d9   :  { %v2252_v4 = vmax.f32 %v1675_v22, %v2203_v53  ;;  %v1521_v39 = vadd.f32 %v4519_v3, %v1520_v30  ;;  %v2049_v10 = vadd.f32 %v4519_v3, %v2048_v1 }
 0x1da   :  { %v3414_v16 = vpop.f32.mrf.mxu0  ;;  %v3524_v19 = vpop.f32.mrf.mxu1 }
 0x1db   :  { %v2301_v47 = vmax.f32 %v4220_v25, %v2252_v4  ;;  %v1676_v61 = vmax.f32 %v1521_v39, 0.0  ;;  %v2204_v31 = vmax.f32 %v2049_v10, 0.0 }
 0x1dc   :  { %v1523_v15 = vpop.f32.mrf.mxu0  ;;  %v2051_v41 = vpop.f32.mrf.mxu1 }
 0x1dd   :  { %v2924_v0 = vpack.c.bf16 %v2301_v47, %v2300_v29  ;;  %v1524_v57 = vadd.f32 %v4519_v3, %v1523_v15  ;;  %v2052_v62 = vadd.f32 %v4519_v3, %v2051_v41  ;;  %v2253_v45 = vmax.f32 %v1676_v61, %v2204_v31 }
 0x1de   :  { %v3415_v46 = vpop.f32.mrf.mxu0  ;;  %v3525_v52 = vpop.f32.mrf.mxu1 }
 0x1df   :  { %3016 = vst [vmem:[%s4816_s6 + $0x30] sm:$0xff] %v2924_v0   ;;  %v1677_v8 = vmax.f32 %v1524_v57, 0.0  ;;  %v2205_v14 = vmax.f32 %v2052_v62, 0.0  ;;  %v2302_v50 = vmax.f32 %v4234_v38, %v2253_v45 }
 0x1e0   :  { %v1528_v26 = vpop.f32.mrf.mxu0  ;;  %v2056_v25 = vpop.f32.mrf.mxu1 }
 0x1e1   :  { %v2254_v18 = vmax.f32 %v1677_v8, %v2205_v14  ;;  %v1529_v32 = vadd.f32 %v4519_v3, %v1528_v26  ;;  %v2057_v17 = vadd.f32 %v4519_v3, %v2056_v25 }
 0x1e2   :  { %v3418_v60 = vpop.f32.mrf.mxu0  ;;  %v3528_v21 = vpop.f32.mrf.mxu1 }
 0x1e3   :  { %v2303_v43 = vmax.f32 %v4240_v49, %v2254_v18  ;;  %v1678_v59 = vmax.f32 %v1529_v32, 0.0  ;;  %v2206_v37 = vmax.f32 %v2057_v17, 0.0 }
 0x1e4   :  { %v1531_v22 = vpop.f32.mrf.mxu0  ;;  %v2059_v53 = vpop.f32.mrf.mxu1 }
 0x1e5   :  { %v2929_v30 = vpack.c.bf16 %v2303_v43, %v2302_v50  ;;  %v1532_v1 = vadd.f32 %v4519_v3, %v1531_v22  ;;  %v2060_v4 = vadd.f32 %v4519_v3, %v2059_v53  ;;  %v2255_v16 = vmax.f32 %v1678_v59, %v2206_v37 }
 0x1e6   :  { %v3419_v39 = vpop.f32.mrf.mxu0  ;;  %v3529_v10 = vpop.f32.mrf.mxu1 }
 0x1e7   :  { %3017 = vst [vmem:[%s4816_s6 + $0x38] sm:$0xff] %v2929_v30   ;;  %v1679_v19 = vmax.f32 %v1532_v1, 0.0  ;;  %v2207_v38 = vmax.f32 %v2060_v4, 0.0  ;;  %v2304_v0 = vmax.f32 %v4254_v2, %v2255_v16 }
 0x1e8   :  { %v1536_v29 = vpop.f32.mrf.mxu0  ;;  %v2064_v49 = vpop.f32.mrf.mxu1 }
 0x1e9   :  { %v2256_v47 = vmax.f32 %v1679_v19, %v2207_v38  ;;  %v1537_v61 = vadd.f32 %v4519_v3, %v1536_v29  ;;  %v2065_v31 = vadd.f32 %v4519_v3, %v2064_v49 }
 0x1ea   :  { %v3422_v15 = vpop.f32.mrf.mxu0  ;;  %v3532_v41 = vpop.f32.mrf.mxu1 }
 0x1eb   :  { %v2305_v57 = vmax.f32 %v4260_v13, %v2256_v47  ;;  %v1680_v62 = vmax.f32 %v1537_v61, 0.0  ;;  %v2208_v46 = vmax.f32 %v2065_v31, 0.0 }
 0x1ec   :  { %v1539_v52 = vpop.f32.mrf.mxu0  ;;  %v2067_v45 = vpop.f32.mrf.mxu1 }
 0x1ed   :  { %v2934_v8 = vpack.c.bf16 %v2305_v57, %v2304_v0  ;;  %v1540_v14 = vadd.f32 %v4519_v3, %v1539_v52  ;;  %v2068_v26 = vadd.f32 %v4519_v3, %v2067_v45  ;;  %v2257_v32 = vmax.f32 %v1680_v62, %v2208_v46 }
 0x1ee   :  { %v3423_v25 = vpop.f32.mrf.mxu0  ;;  %v3533_v18 = vpop.f32.mrf.mxu1 }
 0x1ef   :  { %3018 = vst [vmem:[%s4816_s6 + $0x40] sm:$0xff] %v2934_v8   ;;  %v1681_v17 = vmax.f32 %v1540_v14, 0.0  ;;  %v2209_v2 = vmax.f32 %v2068_v26, 0.0  ;;  %v2306_v22 = vmax.f32 %v4274_v28, %v2257_v32 }
 0x1f0   :  { %v1544_v60 = vpop.f32.mrf.mxu0  ;;  %v2072_v13 = vpop.f32.mrf.mxu1 }
 0x1f1   :  { %v2258_v21 = vmax.f32 %v1681_v17, %v2209_v2  ;;  %v1545_v50 = vadd.f32 %v4519_v3, %v1544_v60  ;;  %v2073_v43 = vadd.f32 %v4519_v3, %v2072_v13 }
 0x1f2   :  { %v3426_v59 = vpop.f32.mrf.mxu0  ;;  %v3536_v37 = vpop.f32.mrf.mxu1 }
 0x1f3   :  { %v2307_v53 = vmax.f32 %v4280_v42, %v2258_v21  ;;  %v1682_v30 = vmax.f32 %v1545_v50, 0.0  ;;  %v2210_v1 = vmax.f32 %v2073_v43, 0.0 }
 0x1f4   :  { %v1547_v4 = vpop.f32.mrf.mxu0  ;;  %v2075_v39 = vpop.f32.mrf.mxu1 }
 0x1f5   :  { %v2939_v10 = vpack.c.bf16 %v2307_v53, %v2306_v22  ;;  %v1548_v16 = vadd.f32 %v4519_v3, %v1547_v4  ;;  %v2076_v19 = vadd.f32 %v4519_v3, %v2075_v39  ;;  %v2259_v49 = vmax.f32 %v1682_v30, %v2210_v1 }
 0x1f6   :  { %v3427_v38 = vpop.f32.mrf.mxu0  ;;  %v3537_v29 = vpop.f32.mrf.mxu1 }
 0x1f7   :  { %3019 = vst [vmem:[%s4816_s6 + $0x48] sm:$0xff] %v2939_v10   ;;  %v1683_v47 = vmax.f32 %v1548_v16, 0.0  ;;  %v2211_v28 = vmax.f32 %v2076_v19, 0.0  ;;  %v2308_v62 = vmax.f32 %v4294_v56, %v2259_v49 }
 0x1f8   :  { %v1552_v61 = vpop.f32.mrf.mxu0  ;;  %v2080_v42 = vpop.f32.mrf.mxu1 }
 0x1f9   :  { %v2260_v31 = vmax.f32 %v1683_v47, %v2211_v28  ;;  %v1553_v15 = vadd.f32 %v4519_v3, %v1552_v61  ;;  %v2081_v41 = vadd.f32 %v4519_v3, %v2080_v42 }
 0x1fa   :  { %v3430_v0 = vpop.f32.mrf.mxu0  ;;  %v3540_v57 = vpop.f32.mrf.mxu1 }
 0x1fb   :  { %v2309_v46 = vmax.f32 %v4300_v6, %v2260_v31  ;;  %v1684_v52 = vmax.f32 %v1553_v15, 0.0  ;;  %v2212_v45 = vmax.f32 %v2081_v41, 0.0 }
 0x1fc   :  { %v1555_v8 = vpop.f32.mrf.mxu0  ;;  %v2083_v14 = vpop.f32.mrf.mxu1 }
 0x1fd   :  { %v2944_v26 = vpack.c.bf16 %v2309_v46, %v2308_v62  ;;  %v1556_v25 = vadd.f32 %v4519_v3, %v1555_v8  ;;  %v2084_v18 = vadd.f32 %v4519_v3, %v2083_v14  ;;  %v2261_v2 = vmax.f32 %v1684_v52, %v2212_v45 }
 0x1fe   :  { %v3431_v32 = vpop.f32.mrf.mxu0  ;;  %v3541_v17 = vpop.f32.mrf.mxu1 }
 0x1ff   :  { %3020 = vst [vmem:[%s4816_s6 + $0x50] sm:$0xff] %v2944_v26   ;;  %v1685_v60 = vmax.f32 %v1556_v25, 0.0  ;;  %v2213_v56 = vmax.f32 %v2084_v18, 0.0  ;;  %v2310_v22 = vmax.f32 %v4314_v23, %v2261_v2 }
 0x200   :  { %v1560_v13 = vpop.f32.mrf.mxu0  ;;  %v2088_v6 = vpop.f32.mrf.mxu1 }
 0x201   :  { %v2262_v21 = vmax.f32 %v1685_v60, %v2213_v56  ;;  %v1561_v50 = vadd.f32 %v4519_v3, %v1560_v13  ;;  %v2089_v43 = vadd.f32 %v4519_v3, %v2088_v6 }
 0x202   :  { %v3434_v59 = vpop.f32.mrf.mxu0  ;;  %v3544_v37 = vpop.f32.mrf.mxu1 }
 0x203   :  { %v2311_v53 = vmax.f32 %v4320_v36, %v2262_v21  ;;  %v1686_v30 = vmax.f32 %v1561_v50, 0.0  ;;  %v2214_v1 = vmax.f32 %v2089_v43, 0.0 }
 0x204   :  { %v1563_v4 = vpop.f32.mrf.mxu0  ;;  %v2091_v39 = vpop.f32.mrf.mxu1 }
 0x205   :  { %v2949_v10 = vpack.c.bf16 %v2311_v53, %v2310_v22  ;;  %v1564_v16 = vadd.f32 %v4519_v3, %v1563_v4  ;;  %v2092_v19 = vadd.f32 %v4519_v3, %v2091_v39  ;;  %v2263_v49 = vmax.f32 %v1686_v30, %v2214_v1 }
 0x206   :  { %v3435_v38 = vpop.f32.mrf.mxu0  ;;  %v3545_v29 = vpop.f32.mrf.mxu1 }
 0x207   :  { %3021 = vst [vmem:[%s4816_s6 + $0x58] sm:$0xff] %v2949_v10   ;;  %v1687_v47 = vmax.f32 %v1564_v16, 0.0  ;;  %v2215_v23 = vmax.f32 %v2092_v19, 0.0  ;;  %v2312_v0 = vmax.f32 %v4334_v54, %v2263_v49 }
 0x208   :  { %v1568_v28 = vpop.f32.mrf.mxu0  ;;  %v2096_v36 = vpop.f32.mrf.mxu1 }
 0x209   :  { %v2264_v61 = vmax.f32 %v1687_v47, %v2215_v23  ;;  %v1569_v42 = vadd.f32 %v4519_v3, %v1568_v28  ;;  %v2097_v31 = vadd.f32 %v4519_v3, %v2096_v36 }
 0x20a   :  { %v3438_v15 = vpop.f32.mrf.mxu0  ;;  %v3548_v41 = vpop.f32.mrf.mxu1 }
 0x20b   :  { %v2313_v57 = vmax.f32 %v4340_v5, %v2264_v61  ;;  %v1688_v62 = vmax.f32 %v1569_v42, 0.0  ;;  %v2216_v46 = vmax.f32 %v2097_v31, 0.0 }
 0x20c   :  { %v1571_v52 = vpop.f32.mrf.mxu0  ;;  %v2099_v45 = vpop.f32.mrf.mxu1 }
 0x20d   :  { %v2954_v8 = vpack.c.bf16 %v2313_v57, %v2312_v0  ;;  %v1572_v14 = vadd.f32 %v4519_v3, %v1571_v52  ;;  %v2100_v26 = vadd.f32 %v4519_v3, %v2099_v45  ;;  %v2265_v32 = vmax.f32 %v1688_v62, %v2216_v46 }
 0x20e   :  { %v3439_v25 = vpop.f32.mrf.mxu0  ;;  %v3549_v18 = vpop.f32.mrf.mxu1 }
 0x20f   :  { %3022 = vst [vmem:[%s4816_s6 + $0x60] sm:$0xff] %v2954_v8   ;;  %v1689_v17 = vmax.f32 %v1572_v14, 0.0  ;;  %v2217_v54 = vmax.f32 %v2100_v26, 0.0  ;;  %v2314_v50 = vmax.f32 %v4354_v24, %v2265_v32 }
 0x210   :  { %v1576_v2 = vpop.f32.mrf.mxu0  ;;  %v2104_v5 = vpop.f32.mrf.mxu1 }
 0x211   :  { %v2266_v60 = vmax.f32 %v1689_v17, %v2217_v54  ;;  %v1577_v56 = vadd.f32 %v4519_v3, %v1576_v2  ;;  %v2105_v13 = vadd.f32 %v4519_v3, %v2104_v5 }
 0x212   :  { %v3442_v6 = vpop.f32.mrf.mxu0  ;;  %v3552_v21 = vpop.f32.mrf.mxu1 }
 0x213   :  { %v2315_v43 = vmax.f32 %v4360_v40, %v2266_v60  ;;  %v1690_v59 = vmax.f32 %v1577_v56, 0.0  ;;  %v2218_v37 = vmax.f32 %v2105_v13, 0.0 }
 0x214   :  { %v1579_v22 = vpop.f32.mrf.mxu0  ;;  %v2107_v53 = vpop.f32.mrf.mxu1 }
 0x215   :  { %v2959_v30 = vpack.c.bf16 %v2315_v43, %v2314_v50  ;;  %v1580_v1 = vadd.f32 %v4519_v3, %v1579_v22  ;;  %v2108_v4 = vadd.f32 %v4519_v3, %v2107_v53  ;;  %v2267_v16 = vmax.f32 %v1690_v59, %v2218_v37 }
 0x216   :  { %v3443_v39 = vpop.f32.mrf.mxu0  ;;  %v3553_v10 = vpop.f32.mrf.mxu1 }
 0x217   :  { %3023 = vst [vmem:[%s4816_s6 + $0x68] sm:$0xff] %v2959_v30   ;;  %v1691_v19 = vmax.f32 %v1580_v1, 0.0  ;;  %v2219_v24 = vmax.f32 %v2108_v4, 0.0  ;;  %v2316_v36 = vmax.f32 %v4374_v58, %v2267_v16 }
 0x218   :  { %v1584_v38 = vpop.f32.mrf.mxu0  ;;  %v2112_v40 = vpop.f32.mrf.mxu1 }
 0x219   :  { %v2268_v29 = vmax.f32 %v1691_v19, %v2219_v24  ;;  %v1585_v49 = vadd.f32 %v4519_v3, %v1584_v38  ;;  %v2113_v47 = vadd.f32 %v4519_v3, %v2112_v40 }
 0x21a   :  { %v3446_v23 = vpop.f32.mrf.mxu0  ;;  %v3556_v28 = vpop.f32.mrf.mxu1 }
 0x21b   :  { %v2317_v61 = vmax.f32 %v4380_v12, %v2268_v29  ;;  %v1692_v42 = vmax.f32 %v1585_v49, 0.0  ;;  %v2220_v31 = vmax.f32 %v2113_v47, 0.0 }
 0x21c   :  { %v1587_v15 = vpop.f32.mrf.mxu0  ;;  %v2115_v41 = vpop.f32.mrf.mxu1 }
 0x21d   :  { %v2964_v0 = vpack.c.bf16 %v2317_v61, %v2316_v36  ;;  %v1588_v57 = vadd.f32 %v4519_v3, %v1587_v15  ;;  %v2116_v62 = vadd.f32 %v4519_v3, %v2115_v41  ;;  %v2269_v45 = vmax.f32 %v1692_v42, %v2220_v31 }
 0x21e   :  { %v3447_v46 = vpop.f32.mrf.mxu0  ;;  %v3557_v52 = vpop.f32.mrf.mxu1 }
 0x21f   :  { %3024 = vst [vmem:[%s4816_s6 + $0x70] sm:$0xff] %v2964_v0   ;;  %v1693_v8 = vmax.f32 %v1588_v57, 0.0  ;;  %v2221_v58 = vmax.f32 %v2116_v62, 0.0  ;;  %v2318_v54 = vmax.f32 %v4394_v33, %v2269_v45 }
 0x220   :  { %v1592_v14 = vpop.f32.mrf.mxu0  ;;  %v2120_v12 = vpop.f32.mrf.mxu1 }
 0x221   :  { %v2270_v26 = vmax.f32 %v1693_v8, %v2221_v58  ;;  %v1593_v25 = vadd.f32 %v4519_v3, %v1592_v14  ;;  %v2121_v18 = vadd.f32 %v4519_v3, %v2120_v12 }
 0x222   :  { %v3450_v32 = vpop.f32.mrf.mxu0  ;;  %v3560_v17 = vpop.f32.mrf.mxu1 }
 0x223   :  { %v2319_v2 = vmax.f32 %v4400_v48, %v2270_v26  ;;  %v1694_v5 = vmax.f32 %v1593_v25, 0.0  ;;  %v2222_v60 = vmax.f32 %v2121_v18, 0.0 }
 0x224   :  { %v1595_v56 = vpop.f32.mrf.mxu0  ;;  %v2123_v13 = vpop.f32.mrf.mxu1 }
 0x225   :  { %v2969_v6 = vpack.c.bf16 %v2319_v2, %v2318_v54  ;;  %v1596_v21 = vadd.f32 %v4519_v3, %v1595_v56  ;;  %v2124_v50 = vadd.f32 %v4519_v3, %v2123_v13  ;;  %v2271_v37 = vmax.f32 %v1694_v5, %v2222_v60 }
 0x226   :  { %v3451_v43 = vpop.f32.mrf.mxu0  ;;  %v3561_v59 = vpop.f32.mrf.mxu1 }
 0x227   :  { %3025 = vst [vmem:[%s4816_s6 + $0x78] sm:$0xff] %v2969_v6   ;;  %v1695_v22 = vmax.f32 %v1596_v21, 0.0  ;;  %v2223_v33 = vmax.f32 %v2124_v50, 0.0  ;;  %v2320_v16 = vmax.f32 %v4414_v9, %v2271_v37 }
 0x228   :  { %v1600_v53 = vpop.f32.mrf.mxu0  ;;  %v2128_v48 = vpop.f32.mrf.mxu1 }
 0x229   :  { %v2272_v30 = vmax.f32 %v1695_v22, %v2223_v33  ;;  %v1601_v1 = vadd.f32 %v4519_v3, %v1600_v53  ;;  %v2129_v4 = vadd.f32 %v4519_v3, %v2128_v48 }
 0x22a   :  { %v3454_v39 = vpop.f32.mrf.mxu0  ;;  %v3564_v10 = vpop.f32.mrf.mxu1 }
 0x22b   :  { %v2321_v19 = vmax.f32 %v4420_v27, %v2272_v30  ;;  %v1696_v24 = vmax.f32 %v1601_v1, 0.0  ;;  %v2224_v38 = vmax.f32 %v2129_v4, 0.0 }
 0x22c   :  { %v1603_v40 = vpop.f32.mrf.mxu0  ;;  %v2131_v29 = vpop.f32.mrf.mxu1 }
 0x22d   :  { %v2974_v49 = vpack.c.bf16 %v2321_v19, %v2320_v16  ;;  %v1604_v47 = vadd.f32 %v4519_v3, %v1603_v40  ;;  %v2132_v23 = vadd.f32 %v4519_v3, %v2131_v29  ;;  %v2273_v61 = vmax.f32 %v1696_v24, %v2224_v38  ;;  %v4761_v19 = vld [vmem:[%s4815_s5] ss:$0 sm:$0xff] }
 0x22e   :  { %v3455_v28 = vpop.f32.mrf.mxu0  ;;  %v3565_v36 = vpop.f32.mrf.mxu1 }
 0x22f   :  { %3026 = vst [vmem:[%s4816_s6 + $0x80] sm:$0xff] %v2974_v49   ;;  %v1697_v42 = vmax.f32 %v1604_v47, 0.0  ;;  %v2225_v9 = vmax.f32 %v2132_v23, 0.0  ;;  %v2322_v46 = vmax.f32 %v4434_v51, %v2273_v61 }
 0x230   :  { %v1608_v31 = vpop.f32.mrf.mxu0  ;;  %v2136_v27 = vpop.f32.mrf.mxu1 }
 0x231   :  { %v2274_v15 = vmax.f32 %v1697_v42, %v2225_v9  ;;  %v1609_v41 = vadd.f32 %v4519_v3, %v1608_v31  ;;  %v2137_v0 = vadd.f32 %v4519_v3, %v2136_v27 }
 0x232   :  { %v3458_v57 = vpop.f32.mrf.mxu0  ;;  %v3568_v62 = vpop.f32.mrf.mxu1 }
 0x233   :  { %v2323_v52 = vmax.f32 %v4440_v7, %v2274_v15  ;;  %v1698_v45 = vmax.f32 %v1609_v41, 0.0  ;;  %v2226_v8 = vmax.f32 %v2137_v0, 0.0 }
 0x234   :  { %v1611_v58 = vpop.f32.mrf.mxu0  ;;  %v2139_v14 = vpop.f32.mrf.mxu1 }
 0x235   :  { %v2979_v12 = vpack.c.bf16 %v2323_v52, %v2322_v46  ;;  %v1612_v26 = vadd.f32 %v4519_v3, %v1611_v58  ;;  %v2140_v25 = vadd.f32 %v4519_v3, %v2139_v14  ;;  %v2275_v17 = vmax.f32 %v1698_v45, %v2226_v8 }
 0x236   :  { %v3459_v18 = vpop.f32.mrf.mxu0  ;;  %v3569_v32 = vpop.f32.mrf.mxu1 }
 0x237   :  { %3027 = vst [vmem:[%s4816_s6 + $0x88] sm:$0xff] %v2979_v12   ;;  %v1699_v54 = vmax.f32 %v1612_v26, 0.0  ;;  %v2227_v51 = vmax.f32 %v2140_v25, 0.0  ;;  %v2324_v21 = vmax.f32 %v4454_v34, %v2275_v17 }
 0x238   :  { %v1616_v2 = vpop.f32.mrf.mxu0  ;;  %v2144_v7 = vpop.f32.mrf.mxu1 }
 0x239   :  { %v2276_v5 = vmax.f32 %v1699_v54, %v2227_v51  ;;  %v1617_v60 = vadd.f32 %v4519_v3, %v1616_v2  ;;  %v2145_v56 = vadd.f32 %v4519_v3, %v2144_v7 }
 0x23a   :  { %v3462_v13 = vpop.f32.mrf.mxu0  ;;  %v3572_v6 = vpop.f32.mrf.mxu1 }
 0x23b   :  { %v2325_v50 = vmax.f32 %v4460_v55, %v2276_v5  ;;  %v1700_v43 = vmax.f32 %v1617_v60, 0.0  ;;  %v2228_v59 = vmax.f32 %v2145_v56, 0.0 }
 0x23c   :  { %v1619_v37 = vpop.f32.mrf.mxu0  ;;  %v2147_v22 = vpop.f32.mrf.mxu1 }
 0x23d   :  { %v2984_v33 = vpack.c.bf16 %v2325_v50, %v2324_v21  ;;  %v1620_v53 = vadd.f32 %v4519_v3, %v1619_v37  ;;  %v2148_v48 = vadd.f32 %v4519_v3, %v2147_v22  ;;  %v2277_v4 = vmax.f32 %v1700_v43, %v2228_v59  ;;  %v4826_v43 = vld [vmem:[#allocation2_spill] sm:$0xff] }
 0x23e   :  { %v3463_v30 = vpop.f32.mrf.mxu0  ;;  %v3573_v1 = vpop.f32.mrf.mxu1 }
 0x23f   :  { %3028 = vst [vmem:[%s4816_s6 + $0x90] sm:$0xff] %v2984_v33   ;;  %v1701_v39 = vmax.f32 %v1620_v53, 0.0  ;;  %v2229_v34 = vmax.f32 %v2148_v48, 0.0  ;;  %v2326_v29 = vmax.f32 %v4474_v20, %v2277_v4 }
 0x240   :  { %v1624_v10 = vpop.f32.mrf.mxu0  ;;  %v2152_v55 = vpop.f32.mrf.mxu1 }
 0x241   :  { %v2278_v16 = vmax.f32 %v1701_v39, %v2229_v34  ;;  %v1625_v24 = vadd.f32 %v4761_v19, %v1624_v10  ;;  %v2153_v3 = vadd.f32 %v4761_v19, %v2152_v55 }
 0x242   :  { %v3466_v38 = vpop.f32.mrf.mxu0  ;;  %v3576_v40 = vpop.f32.mrf.mxu1 }
 0x243   :  { %v2327_v49 = vmax.f32 %v4480_v44, %v2278_v16  ;;  %v1702_v47 = vmax.f32 %v1625_v24, 0.0  ;;  %v2230_v23 = vmax.f32 %v2153_v3, 0.0 }
 0x244   :  { %v1627_v28 = vpop.f32.mrf.mxu0  ;;  %v2155_v36 = vpop.f32.mrf.mxu1 }
 0x245   :  { %v2989_v61 = vpack.c.bf16 %v2327_v49, %v2326_v29  ;;  %v1628_v42 = vadd.f32 %v4761_v19, %v1627_v28  ;;  %v2156_v9 = vadd.f32 %v4761_v19, %v2155_v36  ;;  %v2279_v15 = vmax.f32 %v1702_v47, %v2230_v23  ;;  %v4827_v49 = vld [vmem:[#allocation3_spill] sm:$0xff]  ;;  %v4828_v23 = vld [vmem:[#allocation4_spill] sm:$0xff] }
 0x246   :  { %v3467_v31 = vpop.f32.mrf.mxu0  ;;  %v3577_v27 = vpop.f32.mrf.mxu1 }
 0x247   :  { %3029 = vst [vmem:[%s4816_s6 + $0x98] sm:$0xff] %v2989_v61   ;;  %v1703_v41 = vmax.f32 %v1628_v42, 0.0  ;;  %v2231_v20 = vmax.f32 %v2156_v9, 0.0  ;;  %v2328_v8 = vmax.f32 %v4494_v11, %v2279_v15 }
 0x248   :  { %v1632_v0 = vpop.f32.mrf.mxu0  ;;  %v2160_v44 = vpop.f32.mrf.mxu1 }
 0x249   :  { %v2280_v57 = vmax.f32 %v1703_v41, %v2231_v20  ;;  %v1633_v62 = vadd.f32 %v4761_v19, %v1632_v0  ;;  %v2161_v46 = vadd.f32 %v4761_v19, %v2160_v44 }
 0x24a   :  { %v3470_v52 = vpop.f32.mrf.mxu0  ;;  %v3580_v45 = vpop.f32.mrf.mxu1 }
 0x24b   :  { %v2329_v58 = vmax.f32 %v4500_v35, %v2280_v57  ;;  %v1704_v14 = vmax.f32 %v1633_v62, 0.0  ;;  %v2232_v12 = vmax.f32 %v2161_v46, 0.0 }
 0x24c   :  { %v1635_v26 = vpop.f32.mrf.mxu0  ;;  %v2163_v25 = vpop.f32.mrf.mxu1 }
 0x24d   :  { %v2994_v18 = vpack.c.bf16 %v2329_v58, %v2328_v8  ;;  %v1636_v32 = vadd.f32 %v4761_v19, %v1635_v26  ;;  %v2164_v17 = vadd.f32 %v4761_v19, %v2163_v25  ;;  %v2281_v2 = vmax.f32 %v1704_v14, %v2232_v12  ;;  %v4829_v12 = vld [vmem:[#allocation5_spill] sm:$0xff]  ;;  %v4830_v25 = vld [vmem:[#allocation6_spill] sm:$0xff] }
 0x24e   :  { %v3471_v54 = vpop.f32.mrf.mxu0  ;;  %v3581_v51 = vpop.f32.mrf.mxu1 }
 0x24f   :  { %3030 = vst [vmem:[%s4816_s6 + $0xa0] sm:$0xff] %v2994_v18   ;;  %v1705_v7 = vmax.f32 %v1636_v32, 0.0  ;;  %v2233_v11 = vmax.f32 %v2164_v17, 0.0  ;;  %v2330_v50 = vmax.f32 %v4514_v63, %v2281_v2 }
 0x250   :  { %v1640_v5 = vpop.f32.mrf.mxu0  ;;  %v2168_v35 = vpop.f32.mrf.mxu1 }
 0x251   :  { %v2282_v60 = vmax.f32 %v1705_v7, %v2233_v11  ;;  %v1641_v56 = vadd.f32 %v4761_v19, %v1640_v5  ;;  %v2169_v13 = vadd.f32 %v4761_v19, %v2168_v35  ;;  %v4831_v35 = vld [vmem:[#allocation7_spill] sm:$0xff] }
 0x252   :  { %v3474_v6 = vpop.f32.mrf.mxu0  ;;  %v3584_v21 = vpop.f32.mrf.mxu1 }
 0x253   :  { %v2331_v59 = vmax.f32 %v4826_v43, %v2282_v60  ;;  %v1706_v37 = vmax.f32 %v1641_v56, 0.0  ;;  %v2234_v22 = vmax.f32 %v2169_v13, 0.0 }
 0x254   :  { %v1643_v33 = vpop.f32.mrf.mxu0  ;;  %v2171_v53 = vpop.f32.mrf.mxu1 }
 0x255   :  { %v2999_v48 = vpack.c.bf16 %v2331_v59, %v2330_v50  ;;  %v1644_v30 = vadd.f32 %v4761_v19, %v1643_v33  ;;  %v2172_v1 = vadd.f32 %v4761_v19, %v2171_v53  ;;  %v2283_v34 = vmax.f32 %v1706_v37, %v2234_v22 }
 0x256   :  { %v3475_v4 = vpop.f32.mrf.mxu0  ;;  %v3585_v39 = vpop.f32.mrf.mxu1 }
 0x257   :  { %3031 = vst [vmem:[%s4816_s6 + $0xa8] sm:$0xff] %v2999_v48   ;;  %v1707_v10 = vmax.f32 %v1644_v30, 0.0  ;;  %v2235_v63 = vmax.f32 %v2172_v1, 0.0  ;;  %v2332_v47 = vmax.f32 %v4827_v49, %v2283_v34 }
 0x258   :  { %v1648_v55 = vpop.f32.mrf.mxu0  ;;  %v2176_v16 = vpop.f32.mrf.mxu1 }
 0x259   :  { %v2284_v24 = vmax.f32 %v1707_v10, %v2235_v63  ;;  %v1649_v3 = vadd.f32 %v4761_v19, %v1648_v55  ;;  %v2177_v38 = vadd.f32 %v4761_v19, %v2176_v16 }
 0x25a   :  { %v3478_v40 = vpop.f32.mrf.mxu0  ;;  %v3588_v29 = vpop.f32.mrf.mxu1 }
 0x25b   :  { %v2333_v28 = vmax.f32 %v4828_v23, %v2284_v24  ;;  %v1708_v36 = vmax.f32 %v1649_v3, 0.0  ;;  %v2236_v61 = vmax.f32 %v2177_v38, 0.0 }
 0x25c   :  { %v1651_v42 = vpop.f32.mrf.mxu0  ;;  %v2179_v9 = vpop.f32.mrf.mxu1 }
 0x25d   :  { %v3004_v31 = vpack.c.bf16 %v2333_v28, %v2332_v47  ;;  %v1652_v27 = vadd.f32 %v4761_v19, %v1651_v42  ;;  %v2180_v15 = vadd.f32 %v4761_v19, %v2179_v9  ;;  %v2285_v0 = vmax.f32 %v1708_v36, %v2236_v61 }
 0x25e   :  { %v3479_v41 = vpop.f32.mrf.mxu0  ;;  %v3589_v20 = vpop.f32.mrf.mxu1 }
 0x25f   :  { %3032 = vst [vmem:[%s4816_s6 + $0xb0] sm:$0xff] %v3004_v31   ;;  %v1709_v44 = vmax.f32 %v1652_v27, 0.0  ;;  %v2237_v57 = vmax.f32 %v2180_v15, 0.0  ;;  %v2334_v26 = vmax.f32 %v4829_v12, %v2285_v0 }
 0x260   :  { %v1656_v62 = vpop.f32.mrf.mxu0  ;;  %v2184_v46 = vpop.f32.mrf.mxu1 }
 0x261   :  { %v2286_v52 = vmax.f32 %v1709_v44, %v2237_v57  ;;  %v1657_v45 = vadd.f32 %v4761_v19, %v1656_v62  ;;  %v2185_v8 = vadd.f32 %v4761_v19, %v2184_v46 }
 0x262   :  { %v3482_v58 = vpop.f32.mrf.mxu0  ;;  %v3592_v14 = vpop.f32.mrf.mxu1 }
 0x263   :  { %v2335_v18 = vmax.f32 %v4830_v25, %v2286_v52  ;;  %v1710_v32 = vmax.f32 %v1657_v45, 0.0  ;;  %v2238_v17 = vmax.f32 %v2185_v8, 0.0 }
 0x264   :  { %v1659_v54 = vpop.f32.mrf.mxu0  ;;  %v2187_v51 = vpop.f32.mrf.mxu1 }
 0x265   :  { %v3009_v2 = vpack.c.bf16 %v2335_v18, %v2334_v26  ;;  %v2287_v7 = vmax.f32 %v1710_v32, %v2238_v17 }
 0x266   :  { %v3483_v11 = vpop.f32.mrf.mxu0  ;;  %v3593_v5 = vpop.f32.mrf.mxu1 }
 0x267   :  { %3033 = vst [vmem:[%s4816_s6 + $0xb8] sm:$0xff] %v3009_v2   ;;  %v2336_v19 = vmax.f32 %v4831_v35, %v2287_v7 }
 0x269   :  { %v2890_v60 = vpack.c.bf16 %v2336_v19, %v2336_v19 }
 0x26b   :  { %2582 = vst [vmem:[%s4816_s6 + $0xc0] sm:$0xf] %v2890_v60 }

// kernel: net_forward.5
= control target key start
LH: loop header
LB: loop body
LE: loop exit
PB: predicated region body
PF: predicated region fallthrough
CT: control target
= control target key end

     0   :  { %v783_v1 = vmov 0   ;;  %v98_v20 = vlaneseq  ;;  %v784_v25 = vmov 1966171168   ;;  %vm264_vm0 = vcmask 130048   ;;  %s993_s0 = inlined_call_operand.vmem [shape: bf16[2,400], index: 0, kind: input, shape index: {}]   ;;  %s994_s1 = inlined_call_operand.vmem [shape: bf16[400,128], index: 1, kind: input, shape index: {}]   ;;  %s995_s2 = inlined_call_operand.vmem [shape: f32[1,128], index: 2, kind: input, shape index: {}]   ;;  %s996_s3 = inlined_call_operand.vmem [shape: bf16[128,128], index: 3, kind: input, shape index: {}]   ;;  %s997_s4 = inlined_call_operand.vmem [shape: f32[1,128], index: 4, kind: input, shape index: {}]   ;;  %s998_s5 = inlined_call_operand.vmem [shape: bf16[128,128], index: 5, kind: input, shape index: {}]   ;;  %s999_s6 = inlined_call_operand.vmem [shape: f32[1,128], index: 6, kind: input, shape index: {}]   ;;  %s1000_s7 = inlined_call_operand.hbm [shape: f32[2,128], index: 7, kind: output, shape index: {}]  }
   0x1   :  { %v720_v0 = vld [vmem:[%s994_s1 + $0x78] sm:$0xff]   ;;  %308 = vmatprep.subr.bf16.mxu1 %v783_v1  ;;  %v723_v4 = vld [vmem:[%s994_s1 + $0x70] sm:$0xff]   ;;  %v726_v7 = vld [vmem:[%s994_s1 + $0x68] sm:$0xff]   ;;  %v96_v26 = vunpack.c.l.s4 %v784_v25  ;;  %v785_v38 = vmov 0.0  }
   0x2   :  { %v721_v2 = vld [vmem:[%s994_s1 + $0xb8] sm:$0xff]   ;;  %635 = vmatprep.subr.bf16.mxu0 %v720_v0  ;;  %v724_v5 = vld [vmem:[%s994_s1 + $0xb0] sm:$0xff]   ;;  %v727_v8 = vld [vmem:[%s994_s1 + $0xa8] sm:$0xff]   ;;  %v99_v27 = vshrl.u32 %v98_v20, 7 }
   0x3   :  { %v722_v3 = vld [vmem:[%s994_s1 + $0x38] sm:$0xff]   ;;  %309 = vmatpush1.bf16.msra.mxu1 %v721_v2  ;;  %v725_v6 = vld [vmem:[%s994_s1 + $0x30] sm:$0xff]   ;;  %v728_v9 = vld [vmem:[%s994_s1 + $0x28] sm:$0xff]   ;;  %v97_v30 = vunpack.c.0.s8 %v96_v26 }
   0x4   :  { %636 = vmatpush3.bf16.msra.mxu0 %v722_v3  ;;  %310 = vmatprep.subr.bf16.mxu1 %v783_v1  ;;  %v729_v10 = vld [vmem:[%s994_s1 + $0x60] sm:$0xff]   ;;  %v732_v13 = vld [vmem:[%s994_s1 + $0x58] sm:$0xff]   ;;  %v735_v16 = vld [vmem:[%s994_s1 + $0x50] sm:$0xff]  }
   0x5   :  { %637 = vmatprep.subr.bf16.mxu0 %v723_v4  ;;  %v730_v11 = vld [vmem:[%s994_s1 + $0xa0] sm:$0xff]   ;;  %v733_v14 = vld [vmem:[%s994_s1 + $0x98] sm:$0xff]   ;;  %v736_v17 = vld [vmem:[%s994_s1 + $0x90] sm:$0xff]   ;;  %v100_v32 = vsub.s32 %v97_v30, %v99_v27 }
   0x6   :  { %v731_v12 = vld [vmem:[%s994_s1 + $0x20] sm:$0xff]   ;;  %v734_v15 = vld [vmem:[%s994_s1 + $0x18] sm:$0xff]   ;;  %v737_v18 = vld [vmem:[%s994_s1 + $0x10] sm:$0xff]  }
   0x7   :  { %311 = vmatpush1.bf16.msra.mxu1 %v724_v5  ;;  %v738_v19 = vld [vmem:[%s994_s1 + $0x48] sm:$0xff]   ;;  %v590_v23 = vld.sshfl [vmem:[%s993_s0] sm:$0x33 pattern:$0x75316420]  ;;  %v745_v34 = vld [vmem:[%s996_s3 + $0x38] sm:$0xff]  }
   0x8   :  { %638 = vmatpush3.bf16.msra.mxu0 %v725_v6  ;;  %312 = vmatprep.subr.bf16.mxu1 %v783_v1  ;;  %v739_v21 = vld [vmem:[%s994_s1 + $0x88] sm:$0xff]   ;;  %v741_v24 = vld [vmem:[%s994_s1 + $0x40] sm:$0xff]   ;;  %v94_v29 = vcombine.high %v590_v23, %v590_v23  ;;  %v101_v36 = vrot.slane %v590_v23, %v100_v32  ;;  %v746_v40 = vld [vmem:[%s996_s3 + $0x30] sm:$0xff]  }
   0x9   :  { %639 = vmatprep.subr.bf16.mxu0 %v726_v7  ;;  %v740_v22 = vld [vmem:[%s994_s1 + $0x8] sm:$0xff]   ;;  %v742_v28 = vld [vmem:[%s994_s1 + $0x80] sm:$0xff]  }
   0xa   :  { %v743_v31 = vld [vmem:[%s994_s1] sm:$0xff]   ;;  %v108_v35 = vrot.slane %v94_v29, %v100_v32  ;;  %v109_v39 = vcombine.high %v101_v36, %v101_v36 }
   0xb   :  { %313 = vmatpush1.bf16.msra.mxu1 %v727_v8  ;;  %v744_v33 = vld [vmem:[%s994_s1 + $0xc0] sm:$0xff]  }
   0xc   :  { %640 = vmatpush3.bf16.msra.mxu0 %v728_v9  ;;  %314 = vmatprep.subr.bf16.mxu1 %v783_v1  ;;  %v110_v37 = vcombine.high %v108_v35, %v108_v35 }
   0xd   :  { %641 = vmatprep.subr.bf16.mxu0 %v729_v10  ;;  %300 = vmatprep.mubr.bf16.mxu0 %v108_v35 }
   0xe   :  { %616 = vmatprep.mubr.msk.bf16.mxu1 %vm264_vm0, %v110_v37 }
   0xf   :  { %315 = vmatpush1.bf16.msra.mxu1 %v730_v11 }
  0x10   :  { %642 = vmatpush3.bf16.msra.mxu0 %v731_v12  ;;  %316 = vmatprep.subr.bf16.mxu1 %v783_v1 }
  0x11   :  { %643 = vmatprep.subr.bf16.mxu0 %v732_v13 }
  0x13   :  { %317 = vmatpush1.bf16.msra.mxu1 %v733_v14 }
  0x14   :  { %644 = vmatpush3.bf16.msra.mxu0 %v734_v15  ;;  %318 = vmatprep.subr.bf16.mxu1 %v783_v1 }
  0x15   :  { %645 = vmatprep.subr.bf16.mxu0 %v735_v16 }
  0x17   :  { %319 = vmatpush1.bf16.msra.mxu1 %v736_v17 }
  0x18   :  { %646 = vmatpush3.bf16.msra.mxu0 %v737_v18  ;;  %320 = vmatprep.subr.bf16.mxu1 %v783_v1 }
  0x19   :  { %647 = vmatprep.subr.bf16.mxu0 %v738_v19 }
  0x1b   :  { %321 = vmatpush1.bf16.msra.mxu1 %v739_v21 }
  0x1c   :  { %648 = vmatpush3.bf16.msra.mxu0 %v740_v22  ;;  %322 = vmatprep.subr.bf16.mxu1 %v783_v1 }
  0x1d   :  { %649 = vmatprep.subr.bf16.mxu0 %v741_v24 }
  0x1f   :  { %323 = vmatpush1.bf16.msra.mxu1 %v742_v28 }
  0x20   :  { %650 = vmatpush3.bf16.msra.mxu0 %v743_v31  ;;  %338 = vmatprep.subr.bf16.mxu1 %v783_v1 }
  0x21   :  { %675 = vmatprep.subr.bf16.mxu0 %v785_v38 }
  0x23   :  { %301 = vmatmul.mubr.bf16.vlgmr.msra.gmra.mxu0 %v101_v36  ;;  %339 = vmatpush2.bf16.msra.mxu1 %v744_v33 }
  0x24   :  { %676 = vmatpush3.bf16.msra.mxu0 %v745_v34  ;;  %695 = vmatprep.subr.bf16.mxu1 %v785_v38 }
  0x25   :  { %677 = vmatprep.subr.bf16.mxu0 %v785_v38 }
  0x26   :  { %341 = vmatmul.mubr.bf16.vlgmr.msra.gmra.mxu1 %v109_v39 }
  0x27   :  { %12 = vsyncpa [#allocation3], 0  ;;  %v747_v41 = vld [vmem:[%s996_s3 + $0x28] sm:$0xff]   ;;  %v748_v42 = vld [vmem:[%s996_s3 + $0x20] sm:$0xff]   ;;  %vm786_vm1 = vmmov 0   ;;  %s787_s16 = smov [#allocation2]  }
  0x28   :  { %678 = vmatpush3.bf16.msra.mxu0 %v746_v40  ;;  %v749_v43 = vld [vmem:[%s996_s3 + $0x18] sm:$0xff]   ;;  %v750_v44 = vld [vmem:[%s996_s3 + $0x10] sm:$0xff]   ;;  %v751_v45 = vld [vmem:[%s996_s3 + $0x8] sm:$0xff]   ;;  %691 = vmatprep.mubr.msk.bf16.mxu0 %vm786_vm1, %v785_v38  ;;  %s581_s17 = sshll.u32 %s787_s16, 4  ;;  %s582_s17 = int_to_ptr.vmem [resolvable:$true] %s581_s17 }
  0x29   :  { %679 = vmatprep.subr.bf16.mxu0 %v785_v38  ;;  %v752_v46 = vld [vmem:[%s996_s3] sm:$0xff]   ;;  %711 = vmatprep.mubr.msk.bf16.mxu1 %vm786_vm1, %v785_v38  ;;  %v753_v47 = vld [vmem:[%s998_s5 + $0x38] sm:$0xff]   ;;  %v754_v48 = vld [vmem:[%s998_s5 + $0x30] sm:$0xff]   ;;  %p766_p1 = scmp.lt.s32.totalorder %s582_s17, %s582_s17 }
  0x2a   :  { %696 = vmatpush3.bf16.msra.mxu1 %v753_v47  ;;  %v755_v49 = vld [vmem:[%s998_s5 + $0x28] sm:$0xff]   ;;  %v756_v50 = vld [vmem:[%s998_s5 + $0x20] sm:$0xff]   ;;  %v757_v51 = vld [vmem:[%s998_s5 + $0x18] sm:$0xff]  }
  0x2b   :  { %697 = vmatprep.subr.bf16.mxu1 %v785_v38  ;;  %v758_v52 = vld [vmem:[%s998_s5 + $0x10] sm:$0xff]   ;;  %v589_v55 = vld [vmem:[%s995_s2] ss:$0 sm:$0xff]  ;;  %v759_v3 = vld [vmem:[%s998_s5 + $0x8] sm:$0xff]  }
  0x2c   :  { %680 = vmatpush3.bf16.msra.mxu0 %v747_v41  ;;  %v760_v4 = vld [vmem:[%s998_s5] sm:$0xff]  }
  0x2d   :  { %681 = vmatprep.subr.bf16.mxu0 %v785_v38  ;;  %v617_v5 = vld [vmem:[%s997_s4] ss:$0 sm:$0xff]  ;;  %s761_s4 = scalar_lea.vmem %s582_s17, 32 }
  0x2e   :  { %698 = vmatpush3.bf16.msra.mxu1 %v754_v48  ;;  %v626_v13 = vld [vmem:[%s999_s6] ss:$0 sm:$0xff]  ;;  %p762_p0 = scmp.ne.s32.totalorder %s582_s17, %s761_s4  ;;  %p767_p2 = scmp.lt.s32.totalorder %s761_s4, %s761_s4 }
  0x2f   :  { %699 = vmatprep.subr.bf16.mxu1 %v785_v38 }
  0x30   :  { %682 = vmatpush3.bf16.msra.mxu0 %v748_v42  ;;  %p768_p3 = por %p767_p2, %p766_p1 }
  0x31   :  { %683 = vmatprep.subr.bf16.mxu0 %v785_v38 }
  0x32   :  { %700 = vmatpush3.bf16.msra.mxu1 %v755_v49  ;;  %p769_p4 = pnand %p768_p3, %p762_p0 }
  0x33   :  { %701 = vmatprep.subr.bf16.mxu1 %v785_v38 }
  0x34   :  { %684 = vmatpush3.bf16.msra.mxu0 %v749_v43 }
  0x35   :  { %685 = vmatprep.subr.bf16.mxu0 %v785_v38 }
  0x36   :  { %702 = vmatpush3.bf16.msra.mxu1 %v756_v50 }
  0x37   :  { %703 = vmatprep.subr.bf16.mxu1 %v785_v38 }
  0x38   :  { %686 = vmatpush3.bf16.msra.mxu0 %v750_v44 }
  0x39   :  { %687 = vmatprep.subr.bf16.mxu0 %v785_v38 }
  0x3a   :  { %704 = vmatpush3.bf16.msra.mxu1 %v757_v51 }
  0x3b   :  { %705 = vmatprep.subr.bf16.mxu1 %v785_v38 }
  0x3c   :  { %688 = vmatpush3.bf16.msra.mxu0 %v751_v45 }
  0x3d   :  { %689 = vmatprep.subr.bf16.mxu0 %v785_v38 }
  0x3e   :  { %706 = vmatpush3.bf16.msra.mxu1 %v758_v52 }
  0x3f   :  { %707 = vmatprep.subr.bf16.mxu1 %v785_v38 }
  0x40   :  { %690 = vmatpush3.bf16.msra.mxu0 %v752_v46 }
  0x42   :  { %708 = vmatpush3.bf16.msra.mxu1 %v759_v3 }
  0x43   :  { %709 = vmatprep.subr.bf16.mxu1 %v785_v38 }
  0x46   :  { %710 = vmatpush3.bf16.msra.mxu1 %v760_v4 }
  0xe3   :  { %v651_v53 = vpop.f32.mrf.mxu0 }
  0xe5   :  { %v652_v54 = vpop.f32.mrf.mxu0 }
  0xe6   :  { %v653_v56 = vadd.f32 %v652_v54, %v651_v53  ;;  %v342_v57 = vpop.f32.mrf.mxu1 }
  0xe7   :  { %v654_v58 = vpop.f32.mrf.mxu0 }
  0xe8   :  { %v303_v59 = vadd.f32 %v653_v56, %v589_v55  ;;  %v344_v60 = vpop.f32.mrf.mxu1 }
  0xe9   :  { %v655_v61 = vpop.f32.mrf.mxu0 }
  0xea   :  { %v343_v62 = vadd.f32 %v342_v57, %v303_v59  ;;  %v345_v63 = vpop.f32.mrf.mxu1 }
  0xec   :  { %v348_v0 = vmax.f32 %v343_v62, 0.0  ;;  %v346_v1 = vpop.f32.mrf.mxu1 }
  0xee   :  { %v349_v2 = vpack.c.bf16 %v348_v0, %v348_v0 }
  0xf0   :  { %692 = vmatmul.mubr.bf16.vlgmr.msra.gmra.mxu0 %v349_v2 }
 0x1b0   :  { %v455_v6 = vpop.f32.mrf.mxu0 }
 0x1b1   :  { %v456_v7 = vadd.f32 %v617_v5, %v455_v6 }
 0x1b2   :  { %v693_v8 = vpop.f32.mrf.mxu0 }
 0x1b3   :  { %v461_v9 = vmax.f32 %v456_v7, 0.0 }
 0x1b4   :  { %v458_v10 = vpop.f32.mrf.mxu0 }
 0x1b5   :  { %v462_v11 = vpack.c.bf16 %v461_v9, %v461_v9 }
 0x1b6   :  { %v694_v12 = vpop.f32.mrf.mxu0 }
 0x1b7   :  { %712 = vmatmul.mubr.bf16.vlgmr.msra.gmra.mxu1 %v462_v11 }
 0x277   :  { %v568_v14 = vpop.f32.mrf.mxu1 }
 0x278   :  { %v569_v15 = vadd.f32 %v626_v13, %v568_v14 }
 0x279   :  { %v713_v16 = vpop.f32.mrf.mxu1 }
 0x27a   :  { %574 = vst [vmem:[#allocation2] sm:$0x3] %v569_v15 }
 0x27b   :  { %v571_v17 = vpop.f32.mrf.mxu1 }
 0x27c   :  { %772 = shalt.err (!%p769_p4)
}
 0x27d   :  { %584 = dma.vmem_to_hbm [thread:$0]  %s582_s17, 32, %s1000_s7, [#allocation3]   ;;  %v714_v18 = vpop.f32.mrf.mxu1 }
 0x27e   :  { %781 = dma.done.wait [#allocation3], 32  }
 0x27f   :  { %782 = vsyncadd [#allocation3], 4294967264 }
 0x280   :  { %588 = vsyncpa [#allocation3], 1 }

</bundles_post_ra>
